<compile_context>
chip_gen: v7x
topology: tpu7x:2x2x1
jax: 0.10.0
libtpu: 0.0.40
codegen_flags: <defaults>
</compile_context>

<pallas_src>
import jax
import jax.numpy as jnp
import numpy as np
from jax.experimental import pallas as pl
from jax.experimental.pallas import tpu as pltpu


# ----------------------------------------------------------------------------
# Fused kernel
# ----------------------------------------------------------------------------
def _make_qst_kernel(Bp, T, H, L, V, D):
    TB = T * Bp
    f32 = jnp.float32

    def kernel(ids_ref, emb_ref, *rest):
        # rest = [wa_0, wb_0, whh_0, b_0, ..., fc_w, fc_b, gamma, beta,
        #         o_ref, xbuf, xrev, hseq, hrev, sem]
        lstm_refs = rest[:4 * L]
        (fc_w_ref, fc_b_ref, gamma_ref, beta_ref, o_ref,
         xbuf_ref, xrev_ref, hseq_ref, hrev_ref, sem_ref) = rest[4 * L:]

        # ------------------------------------------------------------------
        # Embedding gather: ids in SMEM drive row DMAs from the HBM-resident
        # table into VMEM (no whole-table-in-VMEM / one-hot matmul).
        # ------------------------------------------------------------------
        copies = [
            pltpu.make_async_copy(
                emb_ref.at[pl.ds(ids_ref[k], 1), :],
                xbuf_ref.at[pl.ds(k, 1), :],
                sem_ref.at[0],
            )
            for k in range(TB)
        ]
        for cp in copies:
            cp.start()
        for cp in copies:
            cp.wait()

        x0 = xbuf_ref[...]                              # (TB, D), row = t*Bp + b

        # Time-reversed copy of the layer-0 input (sublane-aligned block copies,
        # once, outside the recurrence).
        for t in range(T):
            xrev_ref[t * Bp:(t + 1) * Bp, :] = x0[(T - 1 - t) * Bp:(T - t) * Bp, :]

        # Static lane mask selecting the g-gate lanes [4H, 6H) of the packed
        # (Bp, 8H) gate vector -> tanh there, sigmoid elsewhere.  Hoisted.
        lane = jax.lax.broadcasted_iota(jnp.int32, (Bp, 8 * H), 1)
        g_mask = (lane >= 4 * H) & (lane < 6 * H)

        # a_nat row block t  = layer input "as stored"   (layer0: x(t))
        # a_rev row block t  = same, time reversed       (layer0: x(T-1-t))
        a_nat = x0
        a_rev = xrev_ref[...]

        finals = []
        for l in range(L):
            wa_ref, wb_ref, whh_ref, b_ref = lstm_refs[4 * l:4 * l + 4]

            # Hoisted input projection: two wide matmuls -> (TB, 8H) packed gate
            # pre-activations.  The wrapper arranged wa/wb so that row block t
            # holds [i_f i_b f_f f_b g_f g_b o_f o_b] with fwd gates at original
            # time t and bwd gates at original time T-1-t.
            xp = (jnp.dot(a_nat, wa_ref[...], preferred_element_type=f32)
                  + jnp.dot(a_rev, wb_ref[...], preferred_element_type=f32)
                  + b_ref[...])                          # (TB, 8H)

            whh = whh_ref[...]                           # (2H, 8H) block-diag, packed cols
            h_cat = jnp.zeros((Bp, 2 * H), f32)          # [h_f | h_b]
            c_cat = jnp.zeros((Bp, 2 * H), f32)          # [c_f | c_b]
            is_last = (l == L - 1)

            # Fully unrolled time loop: per step ONE fused recurrent matmul
            # (both directions, all 4 gates) + full-vreg nonlinearities; only
            # row (sublane) slices of xp.
            # TODO(synk): at realistic T/H switch to lax.fori_loop(unroll=True)
            #             reading xp from VMEM scratch via pl.ds to bound live ranges.
            for t in range(T):
                pre = xp[t * Bp:(t + 1) * Bp, :]                        # (Bp, 8H)
                g = pre + jnp.dot(h_cat, whh, preferred_element_type=f32)
                gates = jnp.where(g_mask, jnp.tanh(g), jax.nn.sigmoid(g))
                i_g = gates[:, 0:2 * H]                  # [i_f | i_b]
                f_g = gates[:, 2 * H:4 * H]              # [f_f | f_b]
                g_g = gates[:, 4 * H:6 * H]              # [g_f | g_b]
                o_g = gates[:, 6 * H:8 * H]              # [o_f | o_b]
                c_cat = f_g * c_cat + i_g * g_g
                h_cat = o_g * jnp.tanh(c_cat)            # = [h_f(t) | h_b(T-1-t)]
                if not is_last:
                    # Packed, sublane-aligned (Bp, 2H) stores; not on the
                    # recurrence's data-dependence chain (read only after loop).
                    hseq_ref[t * Bp:(t + 1) * Bp, :] = h_cat
                    hrev_ref[(T - 1 - t) * Bp:(T - t) * Bp, :] = h_cat

            # Final hidden states of BOTH directions live in the last step:
            # h_cat = [h_f(T-1) | h_b(0)].
            finals.append(h_cat)
            if not is_last:
                a_nat = hseq_ref[...]                    # block t = [h_f(t) | h_b(T-1-t)]
                a_rev = hrev_ref[...]                    # block t = [h_f(T-1-t) | h_b(t)]

        # ------------------------------------------------------------------
        # Head: fc -> tanh -> LayerNorm (rsqrt on EUP).  The concat of final
        # hidden states is folded into row-blocks of fc_w (no in-kernel concat).
        # ------------------------------------------------------------------
        fc_w = fc_w_ref[...]                              # (2*L*H, E)
        y = fc_b_ref[...]
        for l in range(L):
            y = y + jnp.dot(finals[l], fc_w[2 * l * H:2 * (l + 1) * H, :],
                            preferred_element_type=f32)
        y = jnp.tanh(y)
        mean = jnp.mean(y, axis=-1, keepdims=True)
        dlt = y - mean
        var = jnp.mean(dlt * dlt, axis=-1, keepdims=True)
        y = dlt * jax.lax.rsqrt(var + 1e-5)
        o_ref[...] = y * gamma_ref[...] + beta_ref[...]

    return kernel


# ----------------------------------------------------------------------------
# Wrapper-side weight repacking (natural layout -> kernel's packed layout)
# ----------------------------------------------------------------------------
def _pack_layer(w_ih, w_hh, b, H, is_first):
    """Packed gate-column order: block p = 2*gate + dir (gates i,f,g,o; dir f,b)."""
    w_ih = np.asarray(w_ih, np.float32)   # (Din, 8H), cols [fwd i f g o | bwd i f g o]
    w_hh = np.asarray(w_hh, np.float32)   # (8, H, H), leading index 4*dir + gate
    b = np.asarray(b, np.float32)         # (1, 8H), same column order as w_ih
    Din = w_ih.shape[0]
    wa = np.zeros((Din, 8 * H), np.float32)        # multiplies a_nat
    wb = np.zeros((Din, 8 * H), np.float32)        # multiplies a_rev
    whh_pack = np.zeros((2 * H, 8 * H), np.float32)
    b_pack = np.zeros((1, 8 * H), np.float32)
    for g in range(4):
        for d in range(2):
            n = 4 * d + g                  # natural column block
            p = 2 * g + d                  # packed column block
            cn = slice(n * H, (n + 1) * H)
            cp = slice(p * H, (p + 1) * H)
            b_pack[:, cp] = b[:, cn]
            whh_pack[d * H:(d + 1) * H, cp] = w_hh[n]
            if is_first:
                # a_nat block t = x(t); a_rev block t = x(T-1-t)
                (wa if d == 0 else wb)[:, cp] = w_ih[:, cn]
            else:
                # a_nat block t = [h_f(t) | h_b(T-1-t)]; a_rev block t = [h_f(T-1-t) | h_b(t)]
                if d == 0:   # fwd gates read h_f(t), h_b(t)
                    wa[0:H, cp] = w_ih[0:H, cn]
                    wb[H:2 * H, cp] = w_ih[H:2 * H, cn]
                else:        # bwd gates read h_f(T-1-t), h_b(T-1-t)
                    wb[0:H, cp] = w_ih[0:H, cn]
                    wa[H:2 * H, cp] = w_ih[H:2 * H, cn]
    return tuple(jnp.asarray(m) for m in (wa, wb, whh_pack, b_pack))


def _pad2d_bytes(shape, itemsize=4):
    if len(shape) == 1:
        r, c = 1, shape[0]
    else:
        r, c = shape[-2], shape[-1]
    return (-(-r // 8) * 8) * (-(-c // 128) * 128) * itemsize


# ----------------------------------------------------------------------------
# Wrapper around pallas_call
# ----------------------------------------------------------------------------
def qst_encoder_forward(question, params):
    B, T = question.shape
    emb = params["embedding"]
    V, D = emb.shape
    H = params["hidden_size"]
    L = params["num_layers"]
    E = params["fc_w"].shape[1]

    # Pad batch to sublane granularity (rows are fully independent; sliced off).
    Bp = max(8, ((B + 7) // 8) * 8)
    TB = T * Bp
    q_pad = jnp.pad(question, ((0, Bp - B), (0, 0)))
    # Time-major flattened ids (row = t*Bp + b), clamped like jnp.take.
    ids = jnp.clip(jnp.transpose(q_pad, (1, 0)).reshape(TB), 0, V - 1).astype(jnp.int32)

    packed = []
    for l, lw in enumerate(params["lstm"]):
        packed += list(_pack_layer(lw["w_ih"], lw["w_hh"], lw["b"], H, l == 0))

    # Honest VMEM budget from actual buffer sizes (+ headroom).
    vmem_tensors = ([tuple(w.shape) for w in packed]
                    + [tuple(params["fc_w"].shape), tuple(params["fc_b"].shape),
                       tuple(params["ln_gamma"].shape), tuple(params["ln_beta"].shape),
                       (Bp, E),
                       (TB, D), (TB, D), (TB, 2 * H), (TB, 2 * H),   # scratch
                       (TB, 8 * H), (TB, 8 * H)])                     # xp temporaries
    vmem_limit = 2 * sum(_pad2d_bytes(s) for s in vmem_tensors) + (4 << 20)

    # Rough cost estimate (scheduler hint).
    din = [D] + [2 * H] * (L - 1)
    flops = 2 * Bp * (2 * L * H) * E
    for l in range(L):
        flops += 2 * 2 * TB * din[l] * 8 * H         # hoisted input projections
        flops += 2 * T * Bp * (2 * H) * (8 * H)      # fused recurrent matmuls
    trans = L * T * (2 * Bp * 8 * H + Bp * 2 * H) + Bp * E
    bytes_accessed = 4 * (TB * D + TB
                          + sum(int(np.prod(w.shape)) for w in packed)
                          + int(np.prod(params["fc_w"].shape)) + 3 * E + Bp * E)

    kernel = _make_qst_kernel(Bp, T, H, L, V, D)
    # TODO(synk): at production batch sizes add a batch grid axis with
    #             dimension_semantics=("parallel",) to use v7x's second TensorCore.
    out = pl.pallas_call(
        kernel,
        out_shape=jax.ShapeDtypeStruct((Bp, E), jnp.float32),
        in_specs=(
            [pl.BlockSpec(memory_space=pltpu.MemorySpace.SMEM),   # token ids
             pl.BlockSpec(memory_space=pl.ANY)]                    # embedding table (HBM)
            + [pl.BlockSpec(memory_space=pltpu.MemorySpace.VMEM)] * (4 * L + 4)
        ),
        out_specs=pl.BlockSpec(memory_space=pltpu.MemorySpace.VMEM),
        scratch_shapes=[
            pltpu.VMEM((TB, D), jnp.float32),        # gathered embeddings (natural order)
            pltpu.VMEM((TB, D), jnp.float32),        # gathered embeddings (time reversed)
            pltpu.VMEM((TB, 2 * H), jnp.float32),    # packed per-step hidden (natural)
            pltpu.VMEM((TB, 2 * H), jnp.float32),    # packed per-step hidden (reversed)
            pltpu.SemaphoreType.DMA((1,)),           # shared gather semaphore
        ],
        compiler_params=pltpu.CompilerParams(vmem_limit_bytes=int(vmem_limit)),
        cost_estimate=pl.CostEstimate(flops=int(flops),
                                      transcendentals=int(trans),
                                      bytes_accessed=int(bytes_accessed)),
    )(ids, emb, *packed, params["fc_w"], params["fc_b"],
      params["ln_gamma"], params["ln_beta"])
    return out[:B]


# ----------------------------------------------------------------------------
# Pure-JAX reference (same natural-layout weights, straightforward math)
# ----------------------------------------------------------------------------
def qst_encoder_reference(question, params):
    B, T = question.shape
    H = params["hidden_size"]
    x = jnp.take(params["embedding"], question, axis=0)         # (B, T, D)
    layer_in = jnp.transpose(x, (1, 0, 2)).astype(jnp.float32)  # (T, B, D)
    finals = []
    for lw in params["lstm"]:
        w_ih, w_hh, b = lw["w_ih"], lw["w_hh"], lw["b"]
        outs = []
        for d in range(2):
            wih_d = w_ih[:, d * 4 * H:(d + 1) * 4 * H]
            b_d = b[:, d * 4 * H:(d + 1) * 4 * H]
            whh_d = w_hh[4 * d: 4 * d + 4]
            seq = layer_in if d == 0 else layer_in[::-1]
            h = jnp.zeros((B, H), jnp.float32)
            c = jnp.zeros((B, H), jnp.float32)
            hs = []
            for t in range(T):
                g = seq[t] @ wih_d + b_d
                gi = jax.nn.sigmoid(g[:, 0:H] + h @ whh_d[0])
                gf = jax.nn.sigmoid(g[:, H:2 * H] + h @ whh_d[1])
                gg = jnp.tanh(g[:, 2 * H:3 * H] + h @ whh_d[2])
                go = jax.nn.sigmoid(g[:, 3 * H:4 * H] + h @ whh_d[3])
                c = gf * c + gi * gg
                h = go * jnp.tanh(c)
                hs.append(h)
            hs = jnp.stack(hs)
            if d == 1:
                hs = hs[::-1]
            outs.append(hs)
            finals.append(h)
        layer_in = jnp.concatenate(outs, axis=-1)
    hidden_cat = jnp.concatenate(finals, axis=-1)
    y = jnp.tanh(hidden_cat @ params["fc_w"] + params["fc_b"])
    mean = y.mean(-1, keepdims=True)
    var = ((y - mean) ** 2).mean(-1, keepdims=True)
    return (y - mean) / jnp.sqrt(var + 1e-5) * params["ln_gamma"] + params["ln_beta"]


# ----------------------------------------------------------------------------
# Deterministic parameter construction
# ----------------------------------------------------------------------------
def build_params(key, vocab_size, word_embed_size, hidden_size, embed_size,
                 num_layers):
    keys = iter(jax.random.split(key, 8 + 6 * num_layers))

    def nxt():
        return next(keys)

    H = hidden_size
    scale = 1.0 / np.sqrt(H)

    # GloVe substitute; rows 0/1 zeroed like <pad>/<unk>.
    emb = jax.random.normal(nxt(), (vocab_size, word_embed_size), jnp.float32) * 0.1
    emb = emb.at[0].set(0.0).at[1].set(0.0)

    lstm = []
    in_size = word_embed_size
    for _ in range(num_layers):
        # Column / leading-axis order: k = 4*dir + gate, gates (i, f, g, o).
        w_ih = jax.random.uniform(nxt(), (in_size, 8 * H), jnp.float32, -scale, scale)
        w_hh = jax.random.uniform(nxt(), (8, H, H), jnp.float32, -scale, scale)
        b = jax.random.uniform(nxt(), (1, 8 * H), jnp.float32, -scale, scale)  # b_ih + b_hh
        lstm.append({"w_ih": w_ih, "w_hh": w_hh, "b": b})
        in_size = 2 * H

    fc_in = 2 * num_layers * H
    fc_scale = 1.0 / np.sqrt(fc_in)
    fc_w = jax.random.uniform(nxt(), (fc_in, embed_size), jnp.float32, -fc_scale, fc_scale)
    fc_b = jax.random.uniform(nxt(), (1, embed_size), jnp.float32, -fc_scale, fc_scale)

    return {
        "embedding": emb,
        "lstm": lstm,
        "fc_w": fc_w,
        "fc_b": fc_b,
        "ln_gamma": jnp.ones((1, embed_size), jnp.float32),
        "ln_beta": jnp.zeros((1, embed_size), jnp.float32),
        "num_layers": num_layers,
        "hidden_size": hidden_size,
    }


# ----------------------------------------------------------------------------
# Main
# ----------------------------------------------------------------------------
if __name__ == "__main__":
    BATCH = 2
    SEQ = 8
    VOCAB = 32
    WORD_EMBED = 32
    HIDDEN = 16
    EMBED = 32
    NUM_LAYERS = 2

    root_key = jax.random.PRNGKey(0)
    k_params, k_q = jax.random.split(root_key)

    params = build_params(k_params, VOCAB, WORD_EMBED, HIDDEN, EMBED, NUM_LAYERS)
    question = jax.random.randint(k_q, (BATCH, SEQ), 0, VOCAB, dtype=jnp.int32)

    out = jax.block_until_ready(qst_encoder_forward(question, params))
    assert out.shape == (BATCH, EMBED), out.shape
    assert out.dtype == jnp.float32, out.dtype

    ref = jax.block_until_ready(qst_encoder_reference(question, params))
    np.testing.assert_allclose(np.asarray(out), np.asarray(ref), rtol=1e-3, atol=1e-3)

    print("KERNEL_OK")
</pallas_src>

<mosaic_0001>
module attributes {stable_mosaic.version = 11 : i64} {
  func.func @kernel(%arg0: memref<64xi32, #tpu.memory_space<smem>>, %arg1: memref<32x32xf32, #tpu.memory_space<any>>, %arg2: memref<32x128xf32, #tpu.memory_space<vmem>>, %arg3: memref<32x128xf32, #tpu.memory_space<vmem>>, %arg4: memref<32x128xf32, #tpu.memory_space<vmem>>, %arg5: memref<1x128xf32, #tpu.memory_space<vmem>>, %arg6: memref<32x128xf32, #tpu.memory_space<vmem>>, %arg7: memref<32x128xf32, #tpu.memory_space<vmem>>, %arg8: memref<32x128xf32, #tpu.memory_space<vmem>>, %arg9: memref<1x128xf32, #tpu.memory_space<vmem>>, %arg10: memref<64x32xf32, #tpu.memory_space<vmem>>, %arg11: memref<1x32xf32, #tpu.memory_space<vmem>>, %arg12: memref<1x32xf32, #tpu.memory_space<vmem>>, %arg13: memref<1x32xf32, #tpu.memory_space<vmem>>, %arg14: memref<8x32xf32, #tpu.memory_space<vmem>>, %arg15: memref<64x32xf32, #tpu.memory_space<vmem>>, %arg16: memref<64x32xf32, #tpu.memory_space<vmem>>, %arg17: memref<64x32xf32, #tpu.memory_space<vmem>>, %arg18: memref<64x32xf32, #tpu.memory_space<vmem>>, %arg19: memref<1x!tpu.dma_semaphore, #tpu.memory_space<semaphore_mem>>) attributes {dimension_semantics = [], scalar_prefetch = 0 : i64, scratch_operands = 5 : i64, tpu.core_type = #tpu.core_type<tc>} {
    %c0 = arith.constant 0 : index
    %0 = memref.load %arg0[%c0] : memref<64xi32, #tpu.memory_space<smem>>
    %c1 = arith.constant 1 : index
    %1 = memref.load %arg0[%c1] : memref<64xi32, #tpu.memory_space<smem>>
    %c2 = arith.constant 2 : index
    %2 = memref.load %arg0[%c2] : memref<64xi32, #tpu.memory_space<smem>>
    %c3 = arith.constant 3 : index
    %3 = memref.load %arg0[%c3] : memref<64xi32, #tpu.memory_space<smem>>
    %c4 = arith.constant 4 : index
    %4 = memref.load %arg0[%c4] : memref<64xi32, #tpu.memory_space<smem>>
    %c5 = arith.constant 5 : index
    %5 = memref.load %arg0[%c5] : memref<64xi32, #tpu.memory_space<smem>>
    %c6 = arith.constant 6 : index
    %6 = memref.load %arg0[%c6] : memref<64xi32, #tpu.memory_space<smem>>
    %c7 = arith.constant 7 : index
    %7 = memref.load %arg0[%c7] : memref<64xi32, #tpu.memory_space<smem>>
    %c8 = arith.constant 8 : index
    %8 = memref.load %arg0[%c8] : memref<64xi32, #tpu.memory_space<smem>>
    %c9 = arith.constant 9 : index
    %9 = memref.load %arg0[%c9] : memref<64xi32, #tpu.memory_space<smem>>
    %c10 = arith.constant 10 : index
    %10 = memref.load %arg0[%c10] : memref<64xi32, #tpu.memory_space<smem>>
    %c11 = arith.constant 11 : index
    %11 = memref.load %arg0[%c11] : memref<64xi32, #tpu.memory_space<smem>>
    %c12 = arith.constant 12 : index
    %12 = memref.load %arg0[%c12] : memref<64xi32, #tpu.memory_space<smem>>
    %c13 = arith.constant 13 : index
    %13 = memref.load %arg0[%c13] : memref<64xi32, #tpu.memory_space<smem>>
    %c14 = arith.constant 14 : index
    %14 = memref.load %arg0[%c14] : memref<64xi32, #tpu.memory_space<smem>>
    %c15 = arith.constant 15 : index
    %15 = memref.load %arg0[%c15] : memref<64xi32, #tpu.memory_space<smem>>
    %c16 = arith.constant 16 : index
    %16 = memref.load %arg0[%c16] : memref<64xi32, #tpu.memory_space<smem>>
    %c17 = arith.constant 17 : index
    %17 = memref.load %arg0[%c17] : memref<64xi32, #tpu.memory_space<smem>>
    %c18 = arith.constant 18 : index
    %18 = memref.load %arg0[%c18] : memref<64xi32, #tpu.memory_space<smem>>
    %c19 = arith.constant 19 : index
    %19 = memref.load %arg0[%c19] : memref<64xi32, #tpu.memory_space<smem>>
    %c20 = arith.constant 20 : index
    %20 = memref.load %arg0[%c20] : memref<64xi32, #tpu.memory_space<smem>>
    %c21 = arith.constant 21 : index
    %21 = memref.load %arg0[%c21] : memref<64xi32, #tpu.memory_space<smem>>
    %c22 = arith.constant 22 : index
    %22 = memref.load %arg0[%c22] : memref<64xi32, #tpu.memory_space<smem>>
    %c23 = arith.constant 23 : index
    %23 = memref.load %arg0[%c23] : memref<64xi32, #tpu.memory_space<smem>>
    %c24 = arith.constant 24 : index
    %24 = memref.load %arg0[%c24] : memref<64xi32, #tpu.memory_space<smem>>
    %c25 = arith.constant 25 : index
    %25 = memref.load %arg0[%c25] : memref<64xi32, #tpu.memory_space<smem>>
    %c26 = arith.constant 26 : index
    %26 = memref.load %arg0[%c26] : memref<64xi32, #tpu.memory_space<smem>>
    %c27 = arith.constant 27 : index
    %27 = memref.load %arg0[%c27] : memref<64xi32, #tpu.memory_space<smem>>
    %c28 = arith.constant 28 : index
    %28 = memref.load %arg0[%c28] : memref<64xi32, #tpu.memory_space<smem>>
    %c29 = arith.constant 29 : index
    %29 = memref.load %arg0[%c29] : memref<64xi32, #tpu.memory_space<smem>>
    %c30 = arith.constant 30 : index
    %30 = memref.load %arg0[%c30] : memref<64xi32, #tpu.memory_space<smem>>
    %c31 = arith.constant 31 : index
    %31 = memref.load %arg0[%c31] : memref<64xi32, #tpu.memory_space<smem>>
    %c32 = arith.constant 32 : index
    %32 = memref.load %arg0[%c32] : memref<64xi32, #tpu.memory_space<smem>>
    %c33 = arith.constant 33 : index
    %33 = memref.load %arg0[%c33] : memref<64xi32, #tpu.memory_space<smem>>
    %c34 = arith.constant 34 : index
    %34 = memref.load %arg0[%c34] : memref<64xi32, #tpu.memory_space<smem>>
    %c35 = arith.constant 35 : index
    %35 = memref.load %arg0[%c35] : memref<64xi32, #tpu.memory_space<smem>>
    %c36 = arith.constant 36 : index
    %36 = memref.load %arg0[%c36] : memref<64xi32, #tpu.memory_space<smem>>
    %c37 = arith.constant 37 : index
    %37 = memref.load %arg0[%c37] : memref<64xi32, #tpu.memory_space<smem>>
    %c38 = arith.constant 38 : index
    %38 = memref.load %arg0[%c38] : memref<64xi32, #tpu.memory_space<smem>>
    %c39 = arith.constant 39 : index
    %39 = memref.load %arg0[%c39] : memref<64xi32, #tpu.memory_space<smem>>
    %c40 = arith.constant 40 : index
    %40 = memref.load %arg0[%c40] : memref<64xi32, #tpu.memory_space<smem>>
    %c41 = arith.constant 41 : index
    %41 = memref.load %arg0[%c41] : memref<64xi32, #tpu.memory_space<smem>>
    %c42 = arith.constant 42 : index
    %42 = memref.load %arg0[%c42] : memref<64xi32, #tpu.memory_space<smem>>
    %c43 = arith.constant 43 : index
    %43 = memref.load %arg0[%c43] : memref<64xi32, #tpu.memory_space<smem>>
    %c44 = arith.constant 44 : index
    %44 = memref.load %arg0[%c44] : memref<64xi32, #tpu.memory_space<smem>>
    %c45 = arith.constant 45 : index
    %45 = memref.load %arg0[%c45] : memref<64xi32, #tpu.memory_space<smem>>
    %c46 = arith.constant 46 : index
    %46 = memref.load %arg0[%c46] : memref<64xi32, #tpu.memory_space<smem>>
    %c47 = arith.constant 47 : index
    %47 = memref.load %arg0[%c47] : memref<64xi32, #tpu.memory_space<smem>>
    %c48 = arith.constant 48 : index
    %48 = memref.load %arg0[%c48] : memref<64xi32, #tpu.memory_space<smem>>
    %c49 = arith.constant 49 : index
    %49 = memref.load %arg0[%c49] : memref<64xi32, #tpu.memory_space<smem>>
    %c50 = arith.constant 50 : index
    %50 = memref.load %arg0[%c50] : memref<64xi32, #tpu.memory_space<smem>>
    %c51 = arith.constant 51 : index
    %51 = memref.load %arg0[%c51] : memref<64xi32, #tpu.memory_space<smem>>
    %c52 = arith.constant 52 : index
    %52 = memref.load %arg0[%c52] : memref<64xi32, #tpu.memory_space<smem>>
    %c53 = arith.constant 53 : index
    %53 = memref.load %arg0[%c53] : memref<64xi32, #tpu.memory_space<smem>>
    %c54 = arith.constant 54 : index
    %54 = memref.load %arg0[%c54] : memref<64xi32, #tpu.memory_space<smem>>
    %c55 = arith.constant 55 : index
    %55 = memref.load %arg0[%c55] : memref<64xi32, #tpu.memory_space<smem>>
    %c56 = arith.constant 56 : index
    %56 = memref.load %arg0[%c56] : memref<64xi32, #tpu.memory_space<smem>>
    %c57 = arith.constant 57 : index
    %57 = memref.load %arg0[%c57] : memref<64xi32, #tpu.memory_space<smem>>
    %c58 = arith.constant 58 : index
    %58 = memref.load %arg0[%c58] : memref<64xi32, #tpu.memory_space<smem>>
    %c59 = arith.constant 59 : index
    %59 = memref.load %arg0[%c59] : memref<64xi32, #tpu.memory_space<smem>>
    %c60 = arith.constant 60 : index
    %60 = memref.load %arg0[%c60] : memref<64xi32, #tpu.memory_space<smem>>
    %c61 = arith.constant 61 : index
    %61 = memref.load %arg0[%c61] : memref<64xi32, #tpu.memory_space<smem>>
    %c62 = arith.constant 62 : index
    %62 = memref.load %arg0[%c62] : memref<64xi32, #tpu.memory_space<smem>>
    %c63 = arith.constant 63 : index
    %63 = memref.load %arg0[%c63] : memref<64xi32, #tpu.memory_space<smem>>
    %c0_i32 = arith.constant 0 : i32
    %c0_i32_0 = arith.constant 0 : i32
    %64 = tpu.memref_slice %arg1[%0, %c0_i32_0] : memref<32x32xf32, #tpu.memory_space<any>> -> memref<1x32xf32, #tpu.memory_space<any>>
    %c0_i32_1 = arith.constant 0 : i32
    %c0_i32_2 = arith.constant 0 : i32
    %65 = tpu.memref_slice %arg15[%c0_i32_1, %c0_i32_2] : memref<64x32xf32, #tpu.memory_space<vmem>> -> memref<1x32xf32, #tpu.memory_space<vmem>>
    %66 = tpu.memref_slice %arg19[%c0_i32] : memref<1x!tpu.dma_semaphore, #tpu.memory_space<semaphore_mem>> -> memref<1x!tpu.dma_semaphore, #tpu.memory_space<semaphore_mem>>
    %67 = tpu.memref_squeeze %66 : memref<1x!tpu.dma_semaphore, #tpu.memory_space<semaphore_mem>> -> memref<!tpu.dma_semaphore, #tpu.memory_space<semaphore_mem>>
    tpu.enqueue_dma source(%64 : memref<1x32xf32, #tpu.memory_space<any>>) target(%65 : memref<1x32xf32, #tpu.memory_space<vmem>>) target_semaphore(%67 : memref<!tpu.dma_semaphore, #tpu.memory_space<semaphore_mem>>)
    %c0_i32_3 = arith.constant 0 : i32
    %c0_i32_4 = arith.constant 0 : i32
    %68 = tpu.memref_slice %arg1[%1, %c0_i32_4] : memref<32x32xf32, #tpu.memory_space<any>> -> memref<1x32xf32, #tpu.memory_space<any>>
    %c1_i32 = arith.constant 1 : i32
    %c0_i32_5 = arith.constant 0 : i32
    %69 = tpu.memref_slice %arg15[%c1_i32, %c0_i32_5] : memref<64x32xf32, #tpu.memory_space<vmem>> -> memref<1x32xf32, #tpu.memory_space<vmem>>
    %70 = tpu.memref_slice %arg19[%c0_i32_3] : memref<1x!tpu.dma_semaphore, #tpu.memory_space<semaphore_mem>> -> memref<1x!tpu.dma_semaphore, #tpu.memory_space<semaphore_mem>>
    %71 = tpu.memref_squeeze %70 : memref<1x!tpu.dma_semaphore, #tpu.memory_space<semaphore_mem>> -> memref<!tpu.dma_semaphore, #tpu.memory_space<semaphore_mem>>
    tpu.enqueue_dma source(%68 : memref<1x32xf32, #tpu.memory_space<any>>) target(%69 : memref<1x32xf32, #tpu.memory_space<vmem>>) target_semaphore(%71 : memref<!tpu.dma_semaphore, #tpu.memory_space<semaphore_mem>>)
    %c0_i32_6 = arith.constant 0 : i32
    %c0_i32_7 = arith.constant 0 : i32
    %72 = tpu.memref_slice %arg1[%2, %c0_i32_7] : memref<32x32xf32, #tpu.memory_space<any>> -> memref<1x32xf32, #tpu.memory_space<any>>
    %c2_i32 = arith.constant 2 : i32
    %c0_i32_8 = arith.constant 0 : i32
    %73 = tpu.memref_slice %arg15[%c2_i32, %c0_i32_8] : memref<64x32xf32, #tpu.memory_space<vmem>> -> memref<1x32xf32, #tpu.memory_space<vmem>>
    %74 = tpu.memref_slice %arg19[%c0_i32_6] : memref<1x!tpu.dma_semaphore, #tpu.memory_space<semaphore_mem>> -> memref<1x!tpu.dma_semaphore, #tpu.memory_space<semaphore_mem>>
    %75 = tpu.memref_squeeze %74 : memref<1x!tpu.dma_semaphore, #tpu.memory_space<semaphore_mem>> -> memref<!tpu.dma_semaphore, #tpu.memory_space<semaphore_mem>>
    tpu.enqueue_dma source(%72 : memref<1x32xf32, #tpu.memory_space<any>>) target(%73 : memref<1x32xf32, #tpu.memory_space<vmem>>) target_semaphore(%75 : memref<!tpu.dma_semaphore, #tpu.memory_space<semaphore_mem>>)
    %c0_i32_9 = arith.constant 0 : i32
    %c0_i32_10 = arith.constant 0 : i32
    %76 = tpu.memref_slice %arg1[%3, %c0_i32_10] : memref<32x32xf32, #tpu.memory_space<any>> -> memref<1x32xf32, #tpu.memory_space<any>>
    %c3_i32 = arith.constant 3 : i32
    %c0_i32_11 = arith.constant 0 : i32
    %77 = tpu.memref_slice %arg15[%c3_i32, %c0_i32_11] : memref<64x32xf32, #tpu.memory_space<vmem>> -> memref<1x32xf32, #tpu.memory_space<vmem>>
    %78 = tpu.memref_slice %arg19[%c0_i32_9] : memref<1x!tpu.dma_semaphore, #tpu.memory_space<semaphore_mem>> -> memref<1x!tpu.dma_semaphore, #tpu.memory_space<semaphore_mem>>
    %79 = tpu.memref_squeeze %78 : memref<1x!tpu.dma_semaphore, #tpu.memory_space<semaphore_mem>> -> memref<!tpu.dma_semaphore, #tpu.memory_space<semaphore_mem>>
    tpu.enqueue_dma source(%76 : memref<1x32xf32, #tpu.memory_space<any>>) target(%77 : memref<1x32xf32, #tpu.memory_space<vmem>>) target_semaphore(%79 : memref<!tpu.dma_semaphore, #tpu.memory_space<semaphore_mem>>)
    %c0_i32_12 = arith.constant 0 : i32
    %c0_i32_13 = arith.constant 0 : i32
    %80 = tpu.memref_slice %arg1[%4, %c0_i32_13] : memref<32x32xf32, #tpu.memory_space<any>> -> memref<1x32xf32, #tpu.memory_space<any>>
    %c4_i32 = arith.constant 4 : i32
    %c0_i32_14 = arith.constant 0 : i32
    %81 = tpu.memref_slice %arg15[%c4_i32, %c0_i32_14] : memref<64x32xf32, #tpu.memory_space<vmem>> -> memref<1x32xf32, #tpu.memory_space<vmem>>
    %82 = tpu.memref_slice %arg19[%c0_i32_12] : memref<1x!tpu.dma_semaphore, #tpu.memory_space<semaphore_mem>> -> memref<1x!tpu.dma_semaphore, #tpu.memory_space<semaphore_mem>>
    %83 = tpu.memref_squeeze %82 : memref<1x!tpu.dma_semaphore, #tpu.memory_space<semaphore_mem>> -> memref<!tpu.dma_semaphore, #tpu.memory_space<semaphore_mem>>
    tpu.enqueue_dma source(%80 : memref<1x32xf32, #tpu.memory_space<any>>) target(%81 : memref<1x32xf32, #tpu.memory_space<vmem>>) target_semaphore(%83 : memref<!tpu.dma_semaphore, #tpu.memory_space<semaphore_mem>>)
    %c0_i32_15 = arith.constant 0 : i32
    %c0_i32_16 = arith.constant 0 : i32
    %84 = tpu.memref_slice %arg1[%5, %c0_i32_16] : memref<32x32xf32, #tpu.memory_space<any>> -> memref<1x32xf32, #tpu.memory_space<any>>
    %c5_i32 = arith.constant 5 : i32
    %c0_i32_17 = arith.constant 0 : i32
    %85 = tpu.memref_slice %arg15[%c5_i32, %c0_i32_17] : memref<64x32xf32, #tpu.memory_space<vmem>> -> memref<1x32xf32, #tpu.memory_space<vmem>>
    %86 = tpu.memref_slice %arg19[%c0_i32_15] : memref<1x!tpu.dma_semaphore, #tpu.memory_space<semaphore_mem>> -> memref<1x!tpu.dma_semaphore, #tpu.memory_space<semaphore_mem>>
    %87 = tpu.memref_squeeze %86 : memref<1x!tpu.dma_semaphore, #tpu.memory_space<semaphore_mem>> -> memref<!tpu.dma_semaphore, #tpu.memory_space<semaphore_mem>>
    tpu.enqueue_dma source(%84 : memref<1x32xf32, #tpu.memory_space<any>>) target(%85 : memref<1x32xf32, #tpu.memory_space<vmem>>) target_semaphore(%87 : memref<!tpu.dma_semaphore, #tpu.memory_space<semaphore_mem>>)
    %c0_i32_18 = arith.constant 0 : i32
    %c0_i32_19 = arith.constant 0 : i32
    %88 = tpu.memref_slice %arg1[%6, %c0_i32_19] : memref<32x32xf32, #tpu.memory_space<any>> -> memref<1x32xf32, #tpu.memory_space<any>>
    %c6_i32 = arith.constant 6 : i32
    %c0_i32_20 = arith.constant 0 : i32
    %89 = tpu.memref_slice %arg15[%c6_i32, %c0_i32_20] : memref<64x32xf32, #tpu.memory_space<vmem>> -> memref<1x32xf32, #tpu.memory_space<vmem>>
    %90 = tpu.memref_slice %arg19[%c0_i32_18] : memref<1x!tpu.dma_semaphore, #tpu.memory_space<semaphore_mem>> -> memref<1x!tpu.dma_semaphore, #tpu.memory_space<semaphore_mem>>
    %91 = tpu.memref_squeeze %90 : memref<1x!tpu.dma_semaphore, #tpu.memory_space<semaphore_mem>> -> memref<!tpu.dma_semaphore, #tpu.memory_space<semaphore_mem>>
    tpu.enqueue_dma source(%88 : memref<1x32xf32, #tpu.memory_space<any>>) target(%89 : memref<1x32xf32, #tpu.memory_space<vmem>>) target_semaphore(%91 : memref<!tpu.dma_semaphore, #tpu.memory_space<semaphore_mem>>)
    %c0_i32_21 = arith.constant 0 : i32
    %c0_i32_22 = arith.constant 0 : i32
    %92 = tpu.memref_slice %arg1[%7, %c0_i32_22] : memref<32x32xf32, #tpu.memory_space<any>> -> memref<1x32xf32, #tpu.memory_space<any>>
    %c7_i32 = arith.constant 7 : i32
    %c0_i32_23 = arith.constant 0 : i32
    %93 = tpu.memref_slice %arg15[%c7_i32, %c0_i32_23] : memref<64x32xf32, #tpu.memory_space<vmem>> -> memref<1x32xf32, #tpu.memory_space<vmem>>
    %94 = tpu.memref_slice %arg19[%c0_i32_21] : memref<1x!tpu.dma_semaphore, #tpu.memory_space<semaphore_mem>> -> memref<1x!tpu.dma_semaphore, #tpu.memory_space<semaphore_mem>>
    %95 = tpu.memref_squeeze %94 : memref<1x!tpu.dma_semaphore, #tpu.memory_space<semaphore_mem>> -> memref<!tpu.dma_semaphore, #tpu.memory_space<semaphore_mem>>
    tpu.enqueue_dma source(%92 : memref<1x32xf32, #tpu.memory_space<any>>) target(%93 : memref<1x32xf32, #tpu.memory_space<vmem>>) target_semaphore(%95 : memref<!tpu.dma_semaphore, #tpu.memory_space<semaphore_mem>>)
    %c0_i32_24 = arith.constant 0 : i32
    %c0_i32_25 = arith.constant 0 : i32
    %96 = tpu.memref_slice %arg1[%8, %c0_i32_25] : memref<32x32xf32, #tpu.memory_space<any>> -> memref<1x32xf32, #tpu.memory_space<any>>
    %c8_i32 = arith.constant 8 : i32
    %c0_i32_26 = arith.constant 0 : i32
    %97 = tpu.memref_slice %arg15[%c8_i32, %c0_i32_26] : memref<64x32xf32, #tpu.memory_space<vmem>> -> memref<1x32xf32, #tpu.memory_space<vmem>>
    %98 = tpu.memref_slice %arg19[%c0_i32_24] : memref<1x!tpu.dma_semaphore, #tpu.memory_space<semaphore_mem>> -> memref<1x!tpu.dma_semaphore, #tpu.memory_space<semaphore_mem>>
    %99 = tpu.memref_squeeze %98 : memref<1x!tpu.dma_semaphore, #tpu.memory_space<semaphore_mem>> -> memref<!tpu.dma_semaphore, #tpu.memory_space<semaphore_mem>>
    tpu.enqueue_dma source(%96 : memref<1x32xf32, #tpu.memory_space<any>>) target(%97 : memref<1x32xf32, #tpu.memory_space<vmem>>) target_semaphore(%99 : memref<!tpu.dma_semaphore, #tpu.memory_space<semaphore_mem>>)
    %c0_i32_27 = arith.constant 0 : i32
    %c0_i32_28 = arith.constant 0 : i32
    %100 = tpu.memref_slice %arg1[%9, %c0_i32_28] : memref<32x32xf32, #tpu.memory_space<any>> -> memref<1x32xf32, #tpu.memory_space<any>>
    %c9_i32 = arith.constant 9 : i32
    %c0_i32_29 = arith.constant 0 : i32
    %101 = tpu.memref_slice %arg15[%c9_i32, %c0_i32_29] : memref<64x32xf32, #tpu.memory_space<vmem>> -> memref<1x32xf32, #tpu.memory_space<vmem>>
    %102 = tpu.memref_slice %arg19[%c0_i32_27] : memref<1x!tpu.dma_semaphore, #tpu.memory_space<semaphore_mem>> -> memref<1x!tpu.dma_semaphore, #tpu.memory_space<semaphore_mem>>
    %103 = tpu.memref_squeeze %102 : memref<1x!tpu.dma_semaphore, #tpu.memory_space<semaphore_mem>> -> memref<!tpu.dma_semaphore, #tpu.memory_space<semaphore_mem>>
    tpu.enqueue_dma source(%100 : memref<1x32xf32, #tpu.memory_space<any>>) target(%101 : memref<1x32xf32, #tpu.memory_space<vmem>>) target_semaphore(%103 : memref<!tpu.dma_semaphore, #tpu.memory_space<semaphore_mem>>)
    %c0_i32_30 = arith.constant 0 : i32
    %c0_i32_31 = arith.constant 0 : i32
    %104 = tpu.memref_slice %arg1[%10, %c0_i32_31] : memref<32x32xf32, #tpu.memory_space<any>> -> memref<1x32xf32, #tpu.memory_space<any>>
    %c10_i32 = arith.constant 10 : i32
    %c0_i32_32 = arith.constant 0 : i32
    %105 = tpu.memref_slice %arg15[%c10_i32, %c0_i32_32] : memref<64x32xf32, #tpu.memory_space<vmem>> -> memref<1x32xf32, #tpu.memory_space<vmem>>
    %106 = tpu.memref_slice %arg19[%c0_i32_30] : memref<1x!tpu.dma_semaphore, #tpu.memory_space<semaphore_mem>> -> memref<1x!tpu.dma_semaphore, #tpu.memory_space<semaphore_mem>>
    %107 = tpu.memref_squeeze %106 : memref<1x!tpu.dma_semaphore, #tpu.memory_space<semaphore_mem>> -> memref<!tpu.dma_semaphore, #tpu.memory_space<semaphore_mem>>
    tpu.enqueue_dma source(%104 : memref<1x32xf32, #tpu.memory_space<any>>) target(%105 : memref<1x32xf32, #tpu.memory_space<vmem>>) target_semaphore(%107 : memref<!tpu.dma_semaphore, #tpu.memory_space<semaphore_mem>>)
    %c0_i32_33 = arith.constant 0 : i32
    %c0_i32_34 = arith.constant 0 : i32
    %108 = tpu.memref_slice %arg1[%11, %c0_i32_34] : memref<32x32xf32, #tpu.memory_space<any>> -> memref<1x32xf32, #tpu.memory_space<any>>
    %c11_i32 = arith.constant 11 : i32
    %c0_i32_35 = arith.constant 0 : i32
    %109 = tpu.memref_slice %arg15[%c11_i32, %c0_i32_35] : memref<64x32xf32, #tpu.memory_space<vmem>> -> memref<1x32xf32, #tpu.memory_space<vmem>>
    %110 = tpu.memref_slice %arg19[%c0_i32_33] : memref<1x!tpu.dma_semaphore, #tpu.memory_space<semaphore_mem>> -> memref<1x!tpu.dma_semaphore, #tpu.memory_space<semaphore_mem>>
    %111 = tpu.memref_squeeze %110 : memref<1x!tpu.dma_semaphore, #tpu.memory_space<semaphore_mem>> -> memref<!tpu.dma_semaphore, #tpu.memory_space<semaphore_mem>>
    tpu.enqueue_dma source(%108 : memref<1x32xf32, #tpu.memory_space<any>>) target(%109 : memref<1x32xf32, #tpu.memory_space<vmem>>) target_semaphore(%111 : memref<!tpu.dma_semaphore, #tpu.memory_space<semaphore_mem>>)
    %c0_i32_36 = arith.constant 0 : i32
    %c0_i32_37 = arith.constant 0 : i32
    %112 = tpu.memref_slice %arg1[%12, %c0_i32_37] : memref<32x32xf32, #tpu.memory_space<any>> -> memref<1x32xf32, #tpu.memory_space<any>>
    %c12_i32 = arith.constant 12 : i32
    %c0_i32_38 = arith.constant 0 : i32
    %113 = tpu.memref_slice %arg15[%c12_i32, %c0_i32_38] : memref<64x32xf32, #tpu.memory_space<vmem>> -> memref<1x32xf32, #tpu.memory_space<vmem>>
    %114 = tpu.memref_slice %arg19[%c0_i32_36] : memref<1x!tpu.dma_semaphore, #tpu.memory_space<semaphore_mem>> -> memref<1x!tpu.dma_semaphore, #tpu.memory_space<semaphore_mem>>
    %115 = tpu.memref_squeeze %114 : memref<1x!tpu.dma_semaphore, #tpu.memory_space<semaphore_mem>> -> memref<!tpu.dma_semaphore, #tpu.memory_space<semaphore_mem>>
    tpu.enqueue_dma source(%112 : memref<1x32xf32, #tpu.memory_space<any>>) target(%113 : memref<1x32xf32, #tpu.memory_space<vmem>>) target_semaphore(%115 : memref<!tpu.dma_semaphore, #tpu.memory_space<semaphore_mem>>)
    %c0_i32_39 = arith.constant 0 : i32
    %c0_i32_40 = arith.constant 0 : i32
    %116 = tpu.memref_slice %arg1[%13, %c0_i32_40] : memref<32x32xf32, #tpu.memory_space<any>> -> memref<1x32xf32, #tpu.memory_space<any>>
    %c13_i32 = arith.constant 13 : i32
    %c0_i32_41 = arith.constant 0 : i32
    %117 = tpu.memref_slice %arg15[%c13_i32, %c0_i32_41] : memref<64x32xf32, #tpu.memory_space<vmem>> -> memref<1x32xf32, #tpu.memory_space<vmem>>
    %118 = tpu.memref_slice %arg19[%c0_i32_39] : memref<1x!tpu.dma_semaphore, #tpu.memory_space<semaphore_mem>> -> memref<1x!tpu.dma_semaphore, #tpu.memory_space<semaphore_mem>>
    %119 = tpu.memref_squeeze %118 : memref<1x!tpu.dma_semaphore, #tpu.memory_space<semaphore_mem>> -> memref<!tpu.dma_semaphore, #tpu.memory_space<semaphore_mem>>
    tpu.enqueue_dma source(%116 : memref<1x32xf32, #tpu.memory_space<any>>) target(%117 : memref<1x32xf32, #tpu.memory_space<vmem>>) target_semaphore(%119 : memref<!tpu.dma_semaphore, #tpu.memory_space<semaphore_mem>>)
    %c0_i32_42 = arith.constant 0 : i32
    %c0_i32_43 = arith.constant 0 : i32
    %120 = tpu.memref_slice %arg1[%14, %c0_i32_43] : memref<32x32xf32, #tpu.memory_space<any>> -> memref<1x32xf32, #tpu.memory_space<any>>
    %c14_i32 = arith.constant 14 : i32
    %c0_i32_44 = arith.constant 0 : i32
    %121 = tpu.memref_slice %arg15[%c14_i32, %c0_i32_44] : memref<64x32xf32, #tpu.memory_space<vmem>> -> memref<1x32xf32, #tpu.memory_space<vmem>>
    %122 = tpu.memref_slice %arg19[%c0_i32_42] : memref<1x!tpu.dma_semaphore, #tpu.memory_space<semaphore_mem>> -> memref<1x!tpu.dma_semaphore, #tpu.memory_space<semaphore_mem>>
    %123 = tpu.memref_squeeze %122 : memref<1x!tpu.dma_semaphore, #tpu.memory_space<semaphore_mem>> -> memref<!tpu.dma_semaphore, #tpu.memory_space<semaphore_mem>>
    tpu.enqueue_dma source(%120 : memref<1x32xf32, #tpu.memory_space<any>>) target(%121 : memref<1x32xf32, #tpu.memory_space<vmem>>) target_semaphore(%123 : memref<!tpu.dma_semaphore, #tpu.memory_space<semaphore_mem>>)
    %c0_i32_45 = arith.constant 0 : i32
    %c0_i32_46 = arith.constant 0 : i32
    %124 = tpu.memref_slice %arg1[%15, %c0_i32_46] : memref<32x32xf32, #tpu.memory_space<any>> -> memref<1x32xf32, #tpu.memory_space<any>>
    %c15_i32 = arith.constant 15 : i32
    %c0_i32_47 = arith.constant 0 : i32
    %125 = tpu.memref_slice %arg15[%c15_i32, %c0_i32_47] : memref<64x32xf32, #tpu.memory_space<vmem>> -> memref<1x32xf32, #tpu.memory_space<vmem>>
    %126 = tpu.memref_slice %arg19[%c0_i32_45] : memref<1x!tpu.dma_semaphore, #tpu.memory_space<semaphore_mem>> -> memref<1x!tpu.dma_semaphore, #tpu.memory_space<semaphore_mem>>
    %127 = tpu.memref_squeeze %126 : memref<1x!tpu.dma_semaphore, #tpu.memory_space<semaphore_mem>> -> memref<!tpu.dma_semaphore, #tpu.memory_space<semaphore_mem>>
    tpu.enqueue_dma source(%124 : memref<1x32xf32, #tpu.memory_space<any>>) target(%125 : memref<1x32xf32, #tpu.memory_space<vmem>>) target_semaphore(%127 : memref<!tpu.dma_semaphore, #tpu.memory_space<semaphore_mem>>)
    %c0_i32_48 = arith.constant 0 : i32
    %c0_i32_49 = arith.constant 0 : i32
    %128 = tpu.memref_slice %arg1[%16, %c0_i32_49] : memref<32x32xf32, #tpu.memory_space<any>> -> memref<1x32xf32, #tpu.memory_space<any>>
    %c16_i32 = arith.constant 16 : i32
    %c0_i32_50 = arith.constant 0 : i32
    %129 = tpu.memref_slice %arg15[%c16_i32, %c0_i32_50] : memref<64x32xf32, #tpu.memory_space<vmem>> -> memref<1x32xf32, #tpu.memory_space<vmem>>
    %130 = tpu.memref_slice %arg19[%c0_i32_48] : memref<1x!tpu.dma_semaphore, #tpu.memory_space<semaphore_mem>> -> memref<1x!tpu.dma_semaphore, #tpu.memory_space<semaphore_mem>>
    %131 = tpu.memref_squeeze %130 : memref<1x!tpu.dma_semaphore, #tpu.memory_space<semaphore_mem>> -> memref<!tpu.dma_semaphore, #tpu.memory_space<semaphore_mem>>
    tpu.enqueue_dma source(%128 : memref<1x32xf32, #tpu.memory_space<any>>) target(%129 : memref<1x32xf32, #tpu.memory_space<vmem>>) target_semaphore(%131 : memref<!tpu.dma_semaphore, #tpu.memory_space<semaphore_mem>>)
    %c0_i32_51 = arith.constant 0 : i32
    %c0_i32_52 = arith.constant 0 : i32
    %132 = tpu.memref_slice %arg1[%17, %c0_i32_52] : memref<32x32xf32, #tpu.memory_space<any>> -> memref<1x32xf32, #tpu.memory_space<any>>
    %c17_i32 = arith.constant 17 : i32
    %c0_i32_53 = arith.constant 0 : i32
    %133 = tpu.memref_slice %arg15[%c17_i32, %c0_i32_53] : memref<64x32xf32, #tpu.memory_space<vmem>> -> memref<1x32xf32, #tpu.memory_space<vmem>>
    %134 = tpu.memref_slice %arg19[%c0_i32_51] : memref<1x!tpu.dma_semaphore, #tpu.memory_space<semaphore_mem>> -> memref<1x!tpu.dma_semaphore, #tpu.memory_space<semaphore_mem>>
    %135 = tpu.memref_squeeze %134 : memref<1x!tpu.dma_semaphore, #tpu.memory_space<semaphore_mem>> -> memref<!tpu.dma_semaphore, #tpu.memory_space<semaphore_mem>>
    tpu.enqueue_dma source(%132 : memref<1x32xf32, #tpu.memory_space<any>>) target(%133 : memref<1x32xf32, #tpu.memory_space<vmem>>) target_semaphore(%135 : memref<!tpu.dma_semaphore, #tpu.memory_space<semaphore_mem>>)
    %c0_i32_54 = arith.constant 0 : i32
    %c0_i32_55 = arith.constant 0 : i32
    %136 = tpu.memref_slice %arg1[%18, %c0_i32_55] : memref<32x32xf32, #tpu.memory_space<any>> -> memref<1x32xf32, #tpu.memory_space<any>>
    %c18_i32 = arith.constant 18 : i32
    %c0_i32_56 = arith.constant 0 : i32
    %137 = tpu.memref_slice %arg15[%c18_i32, %c0_i32_56] : memref<64x32xf32, #tpu.memory_space<vmem>> -> memref<1x32xf32, #tpu.memory_space<vmem>>
    %138 = tpu.memref_slice %arg19[%c0_i32_54] : memref<1x!tpu.dma_semaphore, #tpu.memory_space<semaphore_mem>> -> memref<1x!tpu.dma_semaphore, #tpu.memory_space<semaphore_mem>>
    %139 = tpu.memref_squeeze %138 : memref<1x!tpu.dma_semaphore, #tpu.memory_space<semaphore_mem>> -> memref<!tpu.dma_semaphore, #tpu.memory_space<semaphore_mem>>
    tpu.enqueue_dma source(%136 : memref<1x32xf32, #tpu.memory_space<any>>) target(%137 : memref<1x32xf32, #tpu.memory_space<vmem>>) target_semaphore(%139 : memref<!tpu.dma_semaphore, #tpu.memory_space<semaphore_mem>>)
    %c0_i32_57 = arith.constant 0 : i32
    %c0_i32_58 = arith.constant 0 : i32
    %140 = tpu.memref_slice %arg1[%19, %c0_i32_58] : memref<32x32xf32, #tpu.memory_space<any>> -> memref<1x32xf32, #tpu.memory_space<any>>
    %c19_i32 = arith.constant 19 : i32
    %c0_i32_59 = arith.constant 0 : i32
    %141 = tpu.memref_slice %arg15[%c19_i32, %c0_i32_59] : memref<64x32xf32, #tpu.memory_space<vmem>> -> memref<1x32xf32, #tpu.memory_space<vmem>>
    %142 = tpu.memref_slice %arg19[%c0_i32_57] : memref<1x!tpu.dma_semaphore, #tpu.memory_space<semaphore_mem>> -> memref<1x!tpu.dma_semaphore, #tpu.memory_space<semaphore_mem>>
    %143 = tpu.memref_squeeze %142 : memref<1x!tpu.dma_semaphore, #tpu.memory_space<semaphore_mem>> -> memref<!tpu.dma_semaphore, #tpu.memory_space<semaphore_mem>>
    tpu.enqueue_dma source(%140 : memref<1x32xf32, #tpu.memory_space<any>>) target(%141 : memref<1x32xf32, #tpu.memory_space<vmem>>) target_semaphore(%143 : memref<!tpu.dma_semaphore, #tpu.memory_space<semaphore_mem>>)
    %c0_i32_60 = arith.constant 0 : i32
    %c0_i32_61 = arith.constant 0 : i32
    %144 = tpu.memref_slice %arg1[%20, %c0_i32_61] : memref<32x32xf32, #tpu.memory_space<any>> -> memref<1x32xf32, #tpu.memory_space<any>>
    %c20_i32 = arith.constant 20 : i32
    %c0_i32_62 = arith.constant 0 : i32
    %145 = tpu.memref_slice %arg15[%c20_i32, %c0_i32_62] : memref<64x32xf32, #tpu.memory_space<vmem>> -> memref<1x32xf32, #tpu.memory_space<vmem>>
    %146 = tpu.memref_slice %arg19[%c0_i32_60] : memref<1x!tpu.dma_semaphore, #tpu.memory_space<semaphore_mem>> -> memref<1x!tpu.dma_semaphore, #tpu.memory_space<semaphore_mem>>
    %147 = tpu.memref_squeeze %146 : memref<1x!tpu.dma_semaphore, #tpu.memory_space<semaphore_mem>> -> memref<!tpu.dma_semaphore, #tpu.memory_space<semaphore_mem>>
    tpu.enqueue_dma source(%144 : memref<1x32xf32, #tpu.memory_space<any>>) target(%145 : memref<1x32xf32, #tpu.memory_space<vmem>>) target_semaphore(%147 : memref<!tpu.dma_semaphore, #tpu.memory_space<semaphore_mem>>)
    %c0_i32_63 = arith.constant 0 : i32
    %c0_i32_64 = arith.constant 0 : i32
    %148 = tpu.memref_slice %arg1[%21, %c0_i32_64] : memref<32x32xf32, #tpu.memory_space<any>> -> memref<1x32xf32, #tpu.memory_space<any>>
    %c21_i32 = arith.constant 21 : i32
    %c0_i32_65 = arith.constant 0 : i32
    %149 = tpu.memref_slice %arg15[%c21_i32, %c0_i32_65] : memref<64x32xf32, #tpu.memory_space<vmem>> -> memref<1x32xf32, #tpu.memory_space<vmem>>
    %150 = tpu.memref_slice %arg19[%c0_i32_63] : memref<1x!tpu.dma_semaphore, #tpu.memory_space<semaphore_mem>> -> memref<1x!tpu.dma_semaphore, #tpu.memory_space<semaphore_mem>>
    %151 = tpu.memref_squeeze %150 : memref<1x!tpu.dma_semaphore, #tpu.memory_space<semaphore_mem>> -> memref<!tpu.dma_semaphore, #tpu.memory_space<semaphore_mem>>
    tpu.enqueue_dma source(%148 : memref<1x32xf32, #tpu.memory_space<any>>) target(%149 : memref<1x32xf32, #tpu.memory_space<vmem>>) target_semaphore(%151 : memref<!tpu.dma_semaphore, #tpu.memory_space<semaphore_mem>>)
    %c0_i32_66 = arith.constant 0 : i32
    %c0_i32_67 = arith.constant 0 : i32
    %152 = tpu.memref_slice %arg1[%22, %c0_i32_67] : memref<32x32xf32, #tpu.memory_space<any>> -> memref<1x32xf32, #tpu.memory_space<any>>
    %c22_i32 = arith.constant 22 : i32
    %c0_i32_68 = arith.constant 0 : i32
    %153 = tpu.memref_slice %arg15[%c22_i32, %c0_i32_68] : memref<64x32xf32, #tpu.memory_space<vmem>> -> memref<1x32xf32, #tpu.memory_space<vmem>>
    %154 = tpu.memref_slice %arg19[%c0_i32_66] : memref<1x!tpu.dma_semaphore, #tpu.memory_space<semaphore_mem>> -> memref<1x!tpu.dma_semaphore, #tpu.memory_space<semaphore_mem>>
    %155 = tpu.memref_squeeze %154 : memref<1x!tpu.dma_semaphore, #tpu.memory_space<semaphore_mem>> -> memref<!tpu.dma_semaphore, #tpu.memory_space<semaphore_mem>>
    tpu.enqueue_dma source(%152 : memref<1x32xf32, #tpu.memory_space<any>>) target(%153 : memref<1x32xf32, #tpu.memory_space<vmem>>) target_semaphore(%155 : memref<!tpu.dma_semaphore, #tpu.memory_space<semaphore_mem>>)
    %c0_i32_69 = arith.constant 0 : i32
    %c0_i32_70 = arith.constant 0 : i32
    %156 = tpu.memref_slice %arg1[%23, %c0_i32_70] : memref<32x32xf32, #tpu.memory_space<any>> -> memref<1x32xf32, #tpu.memory_space<any>>
    %c23_i32 = arith.constant 23 : i32
    %c0_i32_71 = arith.constant 0 : i32
    %157 = tpu.memref_slice %arg15[%c23_i32, %c0_i32_71] : memref<64x32xf32, #tpu.memory_space<vmem>> -> memref<1x32xf32, #tpu.memory_space<vmem>>
    %158 = tpu.memref_slice %arg19[%c0_i32_69] : memref<1x!tpu.dma_semaphore, #tpu.memory_space<semaphore_mem>> -> memref<1x!tpu.dma_semaphore, #tpu.memory_space<semaphore_mem>>
    %159 = tpu.memref_squeeze %158 : memref<1x!tpu.dma_semaphore, #tpu.memory_space<semaphore_mem>> -> memref<!tpu.dma_semaphore, #tpu.memory_space<semaphore_mem>>
    tpu.enqueue_dma source(%156 : memref<1x32xf32, #tpu.memory_space<any>>) target(%157 : memref<1x32xf32, #tpu.memory_space<vmem>>) target_semaphore(%159 : memref<!tpu.dma_semaphore, #tpu.memory_space<semaphore_mem>>)
    %c0_i32_72 = arith.constant 0 : i32
    %c0_i32_73 = arith.constant 0 : i32
    %160 = tpu.memref_slice %arg1[%24, %c0_i32_73] : memref<32x32xf32, #tpu.memory_space<any>> -> memref<1x32xf32, #tpu.memory_space<any>>
    %c24_i32 = arith.constant 24 : i32
    %c0_i32_74 = arith.constant 0 : i32
    %161 = tpu.memref_slice %arg15[%c24_i32, %c0_i32_74] : memref<64x32xf32, #tpu.memory_space<vmem>> -> memref<1x32xf32, #tpu.memory_space<vmem>>
    %162 = tpu.memref_slice %arg19[%c0_i32_72] : memref<1x!tpu.dma_semaphore, #tpu.memory_space<semaphore_mem>> -> memref<1x!tpu.dma_semaphore, #tpu.memory_space<semaphore_mem>>
    %163 = tpu.memref_squeeze %162 : memref<1x!tpu.dma_semaphore, #tpu.memory_space<semaphore_mem>> -> memref<!tpu.dma_semaphore, #tpu.memory_space<semaphore_mem>>
    tpu.enqueue_dma source(%160 : memref<1x32xf32, #tpu.memory_space<any>>) target(%161 : memref<1x32xf32, #tpu.memory_space<vmem>>) target_semaphore(%163 : memref<!tpu.dma_semaphore, #tpu.memory_space<semaphore_mem>>)
    %c0_i32_75 = arith.constant 0 : i32
    %c0_i32_76 = arith.constant 0 : i32
    %164 = tpu.memref_slice %arg1[%25, %c0_i32_76] : memref<32x32xf32, #tpu.memory_space<any>> -> memref<1x32xf32, #tpu.memory_space<any>>
    %c25_i32 = arith.constant 25 : i32
    %c0_i32_77 = arith.constant 0 : i32
    %165 = tpu.memref_slice %arg15[%c25_i32, %c0_i32_77] : memref<64x32xf32, #tpu.memory_space<vmem>> -> memref<1x32xf32, #tpu.memory_space<vmem>>
    %166 = tpu.memref_slice %arg19[%c0_i32_75] : memref<1x!tpu.dma_semaphore, #tpu.memory_space<semaphore_mem>> -> memref<1x!tpu.dma_semaphore, #tpu.memory_space<semaphore_mem>>
    %167 = tpu.memref_squeeze %166 : memref<1x!tpu.dma_semaphore, #tpu.memory_space<semaphore_mem>> -> memref<!tpu.dma_semaphore, #tpu.memory_space<semaphore_mem>>
    tpu.enqueue_dma source(%164 : memref<1x32xf32, #tpu.memory_space<any>>) target(%165 : memref<1x32xf32, #tpu.memory_space<vmem>>) target_semaphore(%167 : memref<!tpu.dma_semaphore, #tpu.memory_space<semaphore_mem>>)
    %c0_i32_78 = arith.constant 0 : i32
    %c0_i32_79 = arith.constant 0 : i32
    %168 = tpu.memref_slice %arg1[%26, %c0_i32_79] : memref<32x32xf32, #tpu.memory_space<any>> -> memref<1x32xf32, #tpu.memory_space<any>>
    %c26_i32 = arith.constant 26 : i32
    %c0_i32_80 = arith.constant 0 : i32
    %169 = tpu.memref_slice %arg15[%c26_i32, %c0_i32_80] : memref<64x32xf32, #tpu.memory_space<vmem>> -> memref<1x32xf32, #tpu.memory_space<vmem>>
    %170 = tpu.memref_slice %arg19[%c0_i32_78] : memref<1x!tpu.dma_semaphore, #tpu.memory_space<semaphore_mem>> -> memref<1x!tpu.dma_semaphore, #tpu.memory_space<semaphore_mem>>
    %171 = tpu.memref_squeeze %170 : memref<1x!tpu.dma_semaphore, #tpu.memory_space<semaphore_mem>> -> memref<!tpu.dma_semaphore, #tpu.memory_space<semaphore_mem>>
    tpu.enqueue_dma source(%168 : memref<1x32xf32, #tpu.memory_space<any>>) target(%169 : memref<1x32xf32, #tpu.memory_space<vmem>>) target_semaphore(%171 : memref<!tpu.dma_semaphore, #tpu.memory_space<semaphore_mem>>)
    %c0_i32_81 = arith.constant 0 : i32
    %c0_i32_82 = arith.constant 0 : i32
    %172 = tpu.memref_slice %arg1[%27, %c0_i32_82] : memref<32x32xf32, #tpu.memory_space<any>> -> memref<1x32xf32, #tpu.memory_space<any>>
    %c27_i32 = arith.constant 27 : i32
    %c0_i32_83 = arith.constant 0 : i32
    %173 = tpu.memref_slice %arg15[%c27_i32, %c0_i32_83] : memref<64x32xf32, #tpu.memory_space<vmem>> -> memref<1x32xf32, #tpu.memory_space<vmem>>
    %174 = tpu.memref_slice %arg19[%c0_i32_81] : memref<1x!tpu.dma_semaphore, #tpu.memory_space<semaphore_mem>> -> memref<1x!tpu.dma_semaphore, #tpu.memory_space<semaphore_mem>>
    %175 = tpu.memref_squeeze %174 : memref<1x!tpu.dma_semaphore, #tpu.memory_space<semaphore_mem>> -> memref<!tpu.dma_semaphore, #tpu.memory_space<semaphore_mem>>
    tpu.enqueue_dma source(%172 : memref<1x32xf32, #tpu.memory_space<any>>) target(%173 : memref<1x32xf32, #tpu.memory_space<vmem>>) target_semaphore(%175 : memref<!tpu.dma_semaphore, #tpu.memory_space<semaphore_mem>>)
    %c0_i32_84 = arith.constant 0 : i32
    %c0_i32_85 = arith.constant 0 : i32
    %176 = tpu.memref_slice %arg1[%28, %c0_i32_85] : memref<32x32xf32, #tpu.memory_space<any>> -> memref<1x32xf32, #tpu.memory_space<any>>
    %c28_i32 = arith.constant 28 : i32
    %c0_i32_86 = arith.constant 0 : i32
    %177 = tpu.memref_slice %arg15[%c28_i32, %c0_i32_86] : memref<64x32xf32, #tpu.memory_space<vmem>> -> memref<1x32xf32, #tpu.memory_space<vmem>>
    %178 = tpu.memref_slice %arg19[%c0_i32_84] : memref<1x!tpu.dma_semaphore, #tpu.memory_space<semaphore_mem>> -> memref<1x!tpu.dma_semaphore, #tpu.memory_space<semaphore_mem>>
    %179 = tpu.memref_squeeze %178 : memref<1x!tpu.dma_semaphore, #tpu.memory_space<semaphore_mem>> -> memref<!tpu.dma_semaphore, #tpu.memory_space<semaphore_mem>>
    tpu.enqueue_dma source(%176 : memref<1x32xf32, #tpu.memory_space<any>>) target(%177 : memref<1x32xf32, #tpu.memory_space<vmem>>) target_semaphore(%179 : memref<!tpu.dma_semaphore, #tpu.memory_space<semaphore_mem>>)
    %c0_i32_87 = arith.constant 0 : i32
    %c0_i32_88 = arith.constant 0 : i32
    %180 = tpu.memref_slice %arg1[%29, %c0_i32_88] : memref<32x32xf32, #tpu.memory_space<any>> -> memref<1x32xf32, #tpu.memory_space<any>>
    %c29_i32 = arith.constant 29 : i32
    %c0_i32_89 = arith.constant 0 : i32
    %181 = tpu.memref_slice %arg15[%c29_i32, %c0_i32_89] : memref<64x32xf32, #tpu.memory_space<vmem>> -> memref<1x32xf32, #tpu.memory_space<vmem>>
    %182 = tpu.memref_slice %arg19[%c0_i32_87] : memref<1x!tpu.dma_semaphore, #tpu.memory_space<semaphore_mem>> -> memref<1x!tpu.dma_semaphore, #tpu.memory_space<semaphore_mem>>
    %183 = tpu.memref_squeeze %182 : memref<1x!tpu.dma_semaphore, #tpu.memory_space<semaphore_mem>> -> memref<!tpu.dma_semaphore, #tpu.memory_space<semaphore_mem>>
    tpu.enqueue_dma source(%180 : memref<1x32xf32, #tpu.memory_space<any>>) target(%181 : memref<1x32xf32, #tpu.memory_space<vmem>>) target_semaphore(%183 : memref<!tpu.dma_semaphore, #tpu.memory_space<semaphore_mem>>)
    %c0_i32_90 = arith.constant 0 : i32
    %c0_i32_91 = arith.constant 0 : i32
    %184 = tpu.memref_slice %arg1[%30, %c0_i32_91] : memref<32x32xf32, #tpu.memory_space<any>> -> memref<1x32xf32, #tpu.memory_space<any>>
    %c30_i32 = arith.constant 30 : i32
    %c0_i32_92 = arith.constant 0 : i32
    %185 = tpu.memref_slice %arg15[%c30_i32, %c0_i32_92] : memref<64x32xf32, #tpu.memory_space<vmem>> -> memref<1x32xf32, #tpu.memory_space<vmem>>
    %186 = tpu.memref_slice %arg19[%c0_i32_90] : memref<1x!tpu.dma_semaphore, #tpu.memory_space<semaphore_mem>> -> memref<1x!tpu.dma_semaphore, #tpu.memory_space<semaphore_mem>>
    %187 = tpu.memref_squeeze %186 : memref<1x!tpu.dma_semaphore, #tpu.memory_space<semaphore_mem>> -> memref<!tpu.dma_semaphore, #tpu.memory_space<semaphore_mem>>
    tpu.enqueue_dma source(%184 : memref<1x32xf32, #tpu.memory_space<any>>) target(%185 : memref<1x32xf32, #tpu.memory_space<vmem>>) target_semaphore(%187 : memref<!tpu.dma_semaphore, #tpu.memory_space<semaphore_mem>>)
    %c0_i32_93 = arith.constant 0 : i32
    %c0_i32_94 = arith.constant 0 : i32
    %188 = tpu.memref_slice %arg1[%31, %c0_i32_94] : memref<32x32xf32, #tpu.memory_space<any>> -> memref<1x32xf32, #tpu.memory_space<any>>
    %c31_i32 = arith.constant 31 : i32
    %c0_i32_95 = arith.constant 0 : i32
    %189 = tpu.memref_slice %arg15[%c31_i32, %c0_i32_95] : memref<64x32xf32, #tpu.memory_space<vmem>> -> memref<1x32xf32, #tpu.memory_space<vmem>>
    %190 = tpu.memref_slice %arg19[%c0_i32_93] : memref<1x!tpu.dma_semaphore, #tpu.memory_space<semaphore_mem>> -> memref<1x!tpu.dma_semaphore, #tpu.memory_space<semaphore_mem>>
    %191 = tpu.memref_squeeze %190 : memref<1x!tpu.dma_semaphore, #tpu.memory_space<semaphore_mem>> -> memref<!tpu.dma_semaphore, #tpu.memory_space<semaphore_mem>>
    tpu.enqueue_dma source(%188 : memref<1x32xf32, #tpu.memory_space<any>>) target(%189 : memref<1x32xf32, #tpu.memory_space<vmem>>) target_semaphore(%191 : memref<!tpu.dma_semaphore, #tpu.memory_space<semaphore_mem>>)
    %c0_i32_96 = arith.constant 0 : i32
    %c0_i32_97 = arith.constant 0 : i32
    %192 = tpu.memref_slice %arg1[%32, %c0_i32_97] : memref<32x32xf32, #tpu.memory_space<any>> -> memref<1x32xf32, #tpu.memory_space<any>>
    %c32_i32 = arith.constant 32 : i32
    %c0_i32_98 = arith.constant 0 : i32
    %193 = tpu.memref_slice %arg15[%c32_i32, %c0_i32_98] : memref<64x32xf32, #tpu.memory_space<vmem>> -> memref<1x32xf32, #tpu.memory_space<vmem>>
    %194 = tpu.memref_slice %arg19[%c0_i32_96] : memref<1x!tpu.dma_semaphore, #tpu.memory_space<semaphore_mem>> -> memref<1x!tpu.dma_semaphore, #tpu.memory_space<semaphore_mem>>
    %195 = tpu.memref_squeeze %194 : memref<1x!tpu.dma_semaphore, #tpu.memory_space<semaphore_mem>> -> memref<!tpu.dma_semaphore, #tpu.memory_space<semaphore_mem>>
    tpu.enqueue_dma source(%192 : memref<1x32xf32, #tpu.memory_space<any>>) target(%193 : memref<1x32xf32, #tpu.memory_space<vmem>>) target_semaphore(%195 : memref<!tpu.dma_semaphore, #tpu.memory_space<semaphore_mem>>)
    %c0_i32_99 = arith.constant 0 : i32
    %c0_i32_100 = arith.constant 0 : i32
    %196 = tpu.memref_slice %arg1[%33, %c0_i32_100] : memref<32x32xf32, #tpu.memory_space<any>> -> memref<1x32xf32, #tpu.memory_space<any>>
    %c33_i32 = arith.constant 33 : i32
    %c0_i32_101 = arith.constant 0 : i32
    %197 = tpu.memref_slice %arg15[%c33_i32, %c0_i32_101] : memref<64x32xf32, #tpu.memory_space<vmem>> -> memref<1x32xf32, #tpu.memory_space<vmem>>
    %198 = tpu.memref_slice %arg19[%c0_i32_99] : memref<1x!tpu.dma_semaphore, #tpu.memory_space<semaphore_mem>> -> memref<1x!tpu.dma_semaphore, #tpu.memory_space<semaphore_mem>>
    %199 = tpu.memref_squeeze %198 : memref<1x!tpu.dma_semaphore, #tpu.memory_space<semaphore_mem>> -> memref<!tpu.dma_semaphore, #tpu.memory_space<semaphore_mem>>
    tpu.enqueue_dma source(%196 : memref<1x32xf32, #tpu.memory_space<any>>) target(%197 : memref<1x32xf32, #tpu.memory_space<vmem>>) target_semaphore(%199 : memref<!tpu.dma_semaphore, #tpu.memory_space<semaphore_mem>>)
    %c0_i32_102 = arith.constant 0 : i32
    %c0_i32_103 = arith.constant 0 : i32
    %200 = tpu.memref_slice %arg1[%34, %c0_i32_103] : memref<32x32xf32, #tpu.memory_space<any>> -> memref<1x32xf32, #tpu.memory_space<any>>
    %c34_i32 = arith.constant 34 : i32
    %c0_i32_104 = arith.constant 0 : i32
    %201 = tpu.memref_slice %arg15[%c34_i32, %c0_i32_104] : memref<64x32xf32, #tpu.memory_space<vmem>> -> memref<1x32xf32, #tpu.memory_space<vmem>>
    %202 = tpu.memref_slice %arg19[%c0_i32_102] : memref<1x!tpu.dma_semaphore, #tpu.memory_space<semaphore_mem>> -> memref<1x!tpu.dma_semaphore, #tpu.memory_space<semaphore_mem>>
    %203 = tpu.memref_squeeze %202 : memref<1x!tpu.dma_semaphore, #tpu.memory_space<semaphore_mem>> -> memref<!tpu.dma_semaphore, #tpu.memory_space<semaphore_mem>>
    tpu.enqueue_dma source(%200 : memref<1x32xf32, #tpu.memory_space<any>>) target(%201 : memref<1x32xf32, #tpu.memory_space<vmem>>) target_semaphore(%203 : memref<!tpu.dma_semaphore, #tpu.memory_space<semaphore_mem>>)
    %c0_i32_105 = arith.constant 0 : i32
    %c0_i32_106 = arith.constant 0 : i32
    %204 = tpu.memref_slice %arg1[%35, %c0_i32_106] : memref<32x32xf32, #tpu.memory_space<any>> -> memref<1x32xf32, #tpu.memory_space<any>>
    %c35_i32 = arith.constant 35 : i32
    %c0_i32_107 = arith.constant 0 : i32
    %205 = tpu.memref_slice %arg15[%c35_i32, %c0_i32_107] : memref<64x32xf32, #tpu.memory_space<vmem>> -> memref<1x32xf32, #tpu.memory_space<vmem>>
    %206 = tpu.memref_slice %arg19[%c0_i32_105] : memref<1x!tpu.dma_semaphore, #tpu.memory_space<semaphore_mem>> -> memref<1x!tpu.dma_semaphore, #tpu.memory_space<semaphore_mem>>
    %207 = tpu.memref_squeeze %206 : memref<1x!tpu.dma_semaphore, #tpu.memory_space<semaphore_mem>> -> memref<!tpu.dma_semaphore, #tpu.memory_space<semaphore_mem>>
    tpu.enqueue_dma source(%204 : memref<1x32xf32, #tpu.memory_space<any>>) target(%205 : memref<1x32xf32, #tpu.memory_space<vmem>>) target_semaphore(%207 : memref<!tpu.dma_semaphore, #tpu.memory_space<semaphore_mem>>)
    %c0_i32_108 = arith.constant 0 : i32
    %c0_i32_109 = arith.constant 0 : i32
    %208 = tpu.memref_slice %arg1[%36, %c0_i32_109] : memref<32x32xf32, #tpu.memory_space<any>> -> memref<1x32xf32, #tpu.memory_space<any>>
    %c36_i32 = arith.constant 36 : i32
    %c0_i32_110 = arith.constant 0 : i32
    %209 = tpu.memref_slice %arg15[%c36_i32, %c0_i32_110] : memref<64x32xf32, #tpu.memory_space<vmem>> -> memref<1x32xf32, #tpu.memory_space<vmem>>
    %210 = tpu.memref_slice %arg19[%c0_i32_108] : memref<1x!tpu.dma_semaphore, #tpu.memory_space<semaphore_mem>> -> memref<1x!tpu.dma_semaphore, #tpu.memory_space<semaphore_mem>>
    %211 = tpu.memref_squeeze %210 : memref<1x!tpu.dma_semaphore, #tpu.memory_space<semaphore_mem>> -> memref<!tpu.dma_semaphore, #tpu.memory_space<semaphore_mem>>
    tpu.enqueue_dma source(%208 : memref<1x32xf32, #tpu.memory_space<any>>) target(%209 : memref<1x32xf32, #tpu.memory_space<vmem>>) target_semaphore(%211 : memref<!tpu.dma_semaphore, #tpu.memory_space<semaphore_mem>>)
    %c0_i32_111 = arith.constant 0 : i32
    %c0_i32_112 = arith.constant 0 : i32
    %212 = tpu.memref_slice %arg1[%37, %c0_i32_112] : memref<32x32xf32, #tpu.memory_space<any>> -> memref<1x32xf32, #tpu.memory_space<any>>
    %c37_i32 = arith.constant 37 : i32
    %c0_i32_113 = arith.constant 0 : i32
    %213 = tpu.memref_slice %arg15[%c37_i32, %c0_i32_113] : memref<64x32xf32, #tpu.memory_space<vmem>> -> memref<1x32xf32, #tpu.memory_space<vmem>>
    %214 = tpu.memref_slice %arg19[%c0_i32_111] : memref<1x!tpu.dma_semaphore, #tpu.memory_space<semaphore_mem>> -> memref<1x!tpu.dma_semaphore, #tpu.memory_space<semaphore_mem>>
    %215 = tpu.memref_squeeze %214 : memref<1x!tpu.dma_semaphore, #tpu.memory_space<semaphore_mem>> -> memref<!tpu.dma_semaphore, #tpu.memory_space<semaphore_mem>>
    tpu.enqueue_dma source(%212 : memref<1x32xf32, #tpu.memory_space<any>>) target(%213 : memref<1x32xf32, #tpu.memory_space<vmem>>) target_semaphore(%215 : memref<!tpu.dma_semaphore, #tpu.memory_space<semaphore_mem>>)
    %c0_i32_114 = arith.constant 0 : i32
    %c0_i32_115 = arith.constant 0 : i32
    %216 = tpu.memref_slice %arg1[%38, %c0_i32_115] : memref<32x32xf32, #tpu.memory_space<any>> -> memref<1x32xf32, #tpu.memory_space<any>>
    %c38_i32 = arith.constant 38 : i32
    %c0_i32_116 = arith.constant 0 : i32
    %217 = tpu.memref_slice %arg15[%c38_i32, %c0_i32_116] : memref<64x32xf32, #tpu.memory_space<vmem>> -> memref<1x32xf32, #tpu.memory_space<vmem>>
    %218 = tpu.memref_slice %arg19[%c0_i32_114] : memref<1x!tpu.dma_semaphore, #tpu.memory_space<semaphore_mem>> -> memref<1x!tpu.dma_semaphore, #tpu.memory_space<semaphore_mem>>
    %219 = tpu.memref_squeeze %218 : memref<1x!tpu.dma_semaphore, #tpu.memory_space<semaphore_mem>> -> memref<!tpu.dma_semaphore, #tpu.memory_space<semaphore_mem>>
    tpu.enqueue_dma source(%216 : memref<1x32xf32, #tpu.memory_space<any>>) target(%217 : memref<1x32xf32, #tpu.memory_space<vmem>>) target_semaphore(%219 : memref<!tpu.dma_semaphore, #tpu.memory_space<semaphore_mem>>)
    %c0_i32_117 = arith.constant 0 : i32
    %c0_i32_118 = arith.constant 0 : i32
    %220 = tpu.memref_slice %arg1[%39, %c0_i32_118] : memref<32x32xf32, #tpu.memory_space<any>> -> memref<1x32xf32, #tpu.memory_space<any>>
    %c39_i32 = arith.constant 39 : i32
    %c0_i32_119 = arith.constant 0 : i32
    %221 = tpu.memref_slice %arg15[%c39_i32, %c0_i32_119] : memref<64x32xf32, #tpu.memory_space<vmem>> -> memref<1x32xf32, #tpu.memory_space<vmem>>
    %222 = tpu.memref_slice %arg19[%c0_i32_117] : memref<1x!tpu.dma_semaphore, #tpu.memory_space<semaphore_mem>> -> memref<1x!tpu.dma_semaphore, #tpu.memory_space<semaphore_mem>>
    %223 = tpu.memref_squeeze %222 : memref<1x!tpu.dma_semaphore, #tpu.memory_space<semaphore_mem>> -> memref<!tpu.dma_semaphore, #tpu.memory_space<semaphore_mem>>
    tpu.enqueue_dma source(%220 : memref<1x32xf32, #tpu.memory_space<any>>) target(%221 : memref<1x32xf32, #tpu.memory_space<vmem>>) target_semaphore(%223 : memref<!tpu.dma_semaphore, #tpu.memory_space<semaphore_mem>>)
    %c0_i32_120 = arith.constant 0 : i32
    %c0_i32_121 = arith.constant 0 : i32
    %224 = tpu.memref_slice %arg1[%40, %c0_i32_121] : memref<32x32xf32, #tpu.memory_space<any>> -> memref<1x32xf32, #tpu.memory_space<any>>
    %c40_i32 = arith.constant 40 : i32
    %c0_i32_122 = arith.constant 0 : i32
    %225 = tpu.memref_slice %arg15[%c40_i32, %c0_i32_122] : memref<64x32xf32, #tpu.memory_space<vmem>> -> memref<1x32xf32, #tpu.memory_space<vmem>>
    %226 = tpu.memref_slice %arg19[%c0_i32_120] : memref<1x!tpu.dma_semaphore, #tpu.memory_space<semaphore_mem>> -> memref<1x!tpu.dma_semaphore, #tpu.memory_space<semaphore_mem>>
    %227 = tpu.memref_squeeze %226 : memref<1x!tpu.dma_semaphore, #tpu.memory_space<semaphore_mem>> -> memref<!tpu.dma_semaphore, #tpu.memory_space<semaphore_mem>>
    tpu.enqueue_dma source(%224 : memref<1x32xf32, #tpu.memory_space<any>>) target(%225 : memref<1x32xf32, #tpu.memory_space<vmem>>) target_semaphore(%227 : memref<!tpu.dma_semaphore, #tpu.memory_space<semaphore_mem>>)
    %c0_i32_123 = arith.constant 0 : i32
    %c0_i32_124 = arith.constant 0 : i32
    %228 = tpu.memref_slice %arg1[%41, %c0_i32_124] : memref<32x32xf32, #tpu.memory_space<any>> -> memref<1x32xf32, #tpu.memory_space<any>>
    %c41_i32 = arith.constant 41 : i32
    %c0_i32_125 = arith.constant 0 : i32
    %229 = tpu.memref_slice %arg15[%c41_i32, %c0_i32_125] : memref<64x32xf32, #tpu.memory_space<vmem>> -> memref<1x32xf32, #tpu.memory_space<vmem>>
    %230 = tpu.memref_slice %arg19[%c0_i32_123] : memref<1x!tpu.dma_semaphore, #tpu.memory_space<semaphore_mem>> -> memref<1x!tpu.dma_semaphore, #tpu.memory_space<semaphore_mem>>
    %231 = tpu.memref_squeeze %230 : memref<1x!tpu.dma_semaphore, #tpu.memory_space<semaphore_mem>> -> memref<!tpu.dma_semaphore, #tpu.memory_space<semaphore_mem>>
    tpu.enqueue_dma source(%228 : memref<1x32xf32, #tpu.memory_space<any>>) target(%229 : memref<1x32xf32, #tpu.memory_space<vmem>>) target_semaphore(%231 : memref<!tpu.dma_semaphore, #tpu.memory_space<semaphore_mem>>)
    %c0_i32_126 = arith.constant 0 : i32
    %c0_i32_127 = arith.constant 0 : i32
    %232 = tpu.memref_slice %arg1[%42, %c0_i32_127] : memref<32x32xf32, #tpu.memory_space<any>> -> memref<1x32xf32, #tpu.memory_space<any>>
    %c42_i32 = arith.constant 42 : i32
    %c0_i32_128 = arith.constant 0 : i32
    %233 = tpu.memref_slice %arg15[%c42_i32, %c0_i32_128] : memref<64x32xf32, #tpu.memory_space<vmem>> -> memref<1x32xf32, #tpu.memory_space<vmem>>
    %234 = tpu.memref_slice %arg19[%c0_i32_126] : memref<1x!tpu.dma_semaphore, #tpu.memory_space<semaphore_mem>> -> memref<1x!tpu.dma_semaphore, #tpu.memory_space<semaphore_mem>>
    %235 = tpu.memref_squeeze %234 : memref<1x!tpu.dma_semaphore, #tpu.memory_space<semaphore_mem>> -> memref<!tpu.dma_semaphore, #tpu.memory_space<semaphore_mem>>
    tpu.enqueue_dma source(%232 : memref<1x32xf32, #tpu.memory_space<any>>) target(%233 : memref<1x32xf32, #tpu.memory_space<vmem>>) target_semaphore(%235 : memref<!tpu.dma_semaphore, #tpu.memory_space<semaphore_mem>>)
    %c0_i32_129 = arith.constant 0 : i32
    %c0_i32_130 = arith.constant 0 : i32
    %236 = tpu.memref_slice %arg1[%43, %c0_i32_130] : memref<32x32xf32, #tpu.memory_space<any>> -> memref<1x32xf32, #tpu.memory_space<any>>
    %c43_i32 = arith.constant 43 : i32
    %c0_i32_131 = arith.constant 0 : i32
    %237 = tpu.memref_slice %arg15[%c43_i32, %c0_i32_131] : memref<64x32xf32, #tpu.memory_space<vmem>> -> memref<1x32xf32, #tpu.memory_space<vmem>>
    %238 = tpu.memref_slice %arg19[%c0_i32_129] : memref<1x!tpu.dma_semaphore, #tpu.memory_space<semaphore_mem>> -> memref<1x!tpu.dma_semaphore, #tpu.memory_space<semaphore_mem>>
    %239 = tpu.memref_squeeze %238 : memref<1x!tpu.dma_semaphore, #tpu.memory_space<semaphore_mem>> -> memref<!tpu.dma_semaphore, #tpu.memory_space<semaphore_mem>>
    tpu.enqueue_dma source(%236 : memref<1x32xf32, #tpu.memory_space<any>>) target(%237 : memref<1x32xf32, #tpu.memory_space<vmem>>) target_semaphore(%239 : memref<!tpu.dma_semaphore, #tpu.memory_space<semaphore_mem>>)
    %c0_i32_132 = arith.constant 0 : i32
    %c0_i32_133 = arith.constant 0 : i32
    %240 = tpu.memref_slice %arg1[%44, %c0_i32_133] : memref<32x32xf32, #tpu.memory_space<any>> -> memref<1x32xf32, #tpu.memory_space<any>>
    %c44_i32 = arith.constant 44 : i32
    %c0_i32_134 = arith.constant 0 : i32
    %241 = tpu.memref_slice %arg15[%c44_i32, %c0_i32_134] : memref<64x32xf32, #tpu.memory_space<vmem>> -> memref<1x32xf32, #tpu.memory_space<vmem>>
    %242 = tpu.memref_slice %arg19[%c0_i32_132] : memref<1x!tpu.dma_semaphore, #tpu.memory_space<semaphore_mem>> -> memref<1x!tpu.dma_semaphore, #tpu.memory_space<semaphore_mem>>
    %243 = tpu.memref_squeeze %242 : memref<1x!tpu.dma_semaphore, #tpu.memory_space<semaphore_mem>> -> memref<!tpu.dma_semaphore, #tpu.memory_space<semaphore_mem>>
    tpu.enqueue_dma source(%240 : memref<1x32xf32, #tpu.memory_space<any>>) target(%241 : memref<1x32xf32, #tpu.memory_space<vmem>>) target_semaphore(%243 : memref<!tpu.dma_semaphore, #tpu.memory_space<semaphore_mem>>)
    %c0_i32_135 = arith.constant 0 : i32
    %c0_i32_136 = arith.constant 0 : i32
    %244 = tpu.memref_slice %arg1[%45, %c0_i32_136] : memref<32x32xf32, #tpu.memory_space<any>> -> memref<1x32xf32, #tpu.memory_space<any>>
    %c45_i32 = arith.constant 45 : i32
    %c0_i32_137 = arith.constant 0 : i32
    %245 = tpu.memref_slice %arg15[%c45_i32, %c0_i32_137] : memref<64x32xf32, #tpu.memory_space<vmem>> -> memref<1x32xf32, #tpu.memory_space<vmem>>
    %246 = tpu.memref_slice %arg19[%c0_i32_135] : memref<1x!tpu.dma_semaphore, #tpu.memory_space<semaphore_mem>> -> memref<1x!tpu.dma_semaphore, #tpu.memory_space<semaphore_mem>>
    %247 = tpu.memref_squeeze %246 : memref<1x!tpu.dma_semaphore, #tpu.memory_space<semaphore_mem>> -> memref<!tpu.dma_semaphore, #tpu.memory_space<semaphore_mem>>
    tpu.enqueue_dma source(%244 : memref<1x32xf32, #tpu.memory_space<any>>) target(%245 : memref<1x32xf32, #tpu.memory_space<vmem>>) target_semaphore(%247 : memref<!tpu.dma_semaphore, #tpu.memory_space<semaphore_mem>>)
    %c0_i32_138 = arith.constant 0 : i32
    %c0_i32_139 = arith.constant 0 : i32
    %248 = tpu.memref_slice %arg1[%46, %c0_i32_139] : memref<32x32xf32, #tpu.memory_space<any>> -> memref<1x32xf32, #tpu.memory_space<any>>
    %c46_i32 = arith.constant 46 : i32
    %c0_i32_140 = arith.constant 0 : i32
    %249 = tpu.memref_slice %arg15[%c46_i32, %c0_i32_140] : memref<64x32xf32, #tpu.memory_space<vmem>> -> memref<1x32xf32, #tpu.memory_space<vmem>>
    %250 = tpu.memref_slice %arg19[%c0_i32_138] : memref<1x!tpu.dma_semaphore, #tpu.memory_space<semaphore_mem>> -> memref<1x!tpu.dma_semaphore, #tpu.memory_space<semaphore_mem>>
    %251 = tpu.memref_squeeze %250 : memref<1x!tpu.dma_semaphore, #tpu.memory_space<semaphore_mem>> -> memref<!tpu.dma_semaphore, #tpu.memory_space<semaphore_mem>>
    tpu.enqueue_dma source(%248 : memref<1x32xf32, #tpu.memory_space<any>>) target(%249 : memref<1x32xf32, #tpu.memory_space<vmem>>) target_semaphore(%251 : memref<!tpu.dma_semaphore, #tpu.memory_space<semaphore_mem>>)
    %c0_i32_141 = arith.constant 0 : i32
    %c0_i32_142 = arith.constant 0 : i32
    %252 = tpu.memref_slice %arg1[%47, %c0_i32_142] : memref<32x32xf32, #tpu.memory_space<any>> -> memref<1x32xf32, #tpu.memory_space<any>>
    %c47_i32 = arith.constant 47 : i32
    %c0_i32_143 = arith.constant 0 : i32
    %253 = tpu.memref_slice %arg15[%c47_i32, %c0_i32_143] : memref<64x32xf32, #tpu.memory_space<vmem>> -> memref<1x32xf32, #tpu.memory_space<vmem>>
    %254 = tpu.memref_slice %arg19[%c0_i32_141] : memref<1x!tpu.dma_semaphore, #tpu.memory_space<semaphore_mem>> -> memref<1x!tpu.dma_semaphore, #tpu.memory_space<semaphore_mem>>
    %255 = tpu.memref_squeeze %254 : memref<1x!tpu.dma_semaphore, #tpu.memory_space<semaphore_mem>> -> memref<!tpu.dma_semaphore, #tpu.memory_space<semaphore_mem>>
    tpu.enqueue_dma source(%252 : memref<1x32xf32, #tpu.memory_space<any>>) target(%253 : memref<1x32xf32, #tpu.memory_space<vmem>>) target_semaphore(%255 : memref<!tpu.dma_semaphore, #tpu.memory_space<semaphore_mem>>)
    %c0_i32_144 = arith.constant 0 : i32
    %c0_i32_145 = arith.constant 0 : i32
    %256 = tpu.memref_slice %arg1[%48, %c0_i32_145] : memref<32x32xf32, #tpu.memory_space<any>> -> memref<1x32xf32, #tpu.memory_space<any>>
    %c48_i32 = arith.constant 48 : i32
    %c0_i32_146 = arith.constant 0 : i32
    %257 = tpu.memref_slice %arg15[%c48_i32, %c0_i32_146] : memref<64x32xf32, #tpu.memory_space<vmem>> -> memref<1x32xf32, #tpu.memory_space<vmem>>
    %258 = tpu.memref_slice %arg19[%c0_i32_144] : memref<1x!tpu.dma_semaphore, #tpu.memory_space<semaphore_mem>> -> memref<1x!tpu.dma_semaphore, #tpu.memory_space<semaphore_mem>>
    %259 = tpu.memref_squeeze %258 : memref<1x!tpu.dma_semaphore, #tpu.memory_space<semaphore_mem>> -> memref<!tpu.dma_semaphore, #tpu.memory_space<semaphore_mem>>
    tpu.enqueue_dma source(%256 : memref<1x32xf32, #tpu.memory_space<any>>) target(%257 : memref<1x32xf32, #tpu.memory_space<vmem>>) target_semaphore(%259 : memref<!tpu.dma_semaphore, #tpu.memory_space<semaphore_mem>>)
    %c0_i32_147 = arith.constant 0 : i32
    %c0_i32_148 = arith.constant 0 : i32
    %260 = tpu.memref_slice %arg1[%49, %c0_i32_148] : memref<32x32xf32, #tpu.memory_space<any>> -> memref<1x32xf32, #tpu.memory_space<any>>
    %c49_i32 = arith.constant 49 : i32
    %c0_i32_149 = arith.constant 0 : i32
    %261 = tpu.memref_slice %arg15[%c49_i32, %c0_i32_149] : memref<64x32xf32, #tpu.memory_space<vmem>> -> memref<1x32xf32, #tpu.memory_space<vmem>>
    %262 = tpu.memref_slice %arg19[%c0_i32_147] : memref<1x!tpu.dma_semaphore, #tpu.memory_space<semaphore_mem>> -> memref<1x!tpu.dma_semaphore, #tpu.memory_space<semaphore_mem>>
    %263 = tpu.memref_squeeze %262 : memref<1x!tpu.dma_semaphore, #tpu.memory_space<semaphore_mem>> -> memref<!tpu.dma_semaphore, #tpu.memory_space<semaphore_mem>>
    tpu.enqueue_dma source(%260 : memref<1x32xf32, #tpu.memory_space<any>>) target(%261 : memref<1x32xf32, #tpu.memory_space<vmem>>) target_semaphore(%263 : memref<!tpu.dma_semaphore, #tpu.memory_space<semaphore_mem>>)
    %c0_i32_150 = arith.constant 0 : i32
    %c0_i32_151 = arith.constant 0 : i32
    %264 = tpu.memref_slice %arg1[%50, %c0_i32_151] : memref<32x32xf32, #tpu.memory_space<any>> -> memref<1x32xf32, #tpu.memory_space<any>>
    %c50_i32 = arith.constant 50 : i32
    %c0_i32_152 = arith.constant 0 : i32
    %265 = tpu.memref_slice %arg15[%c50_i32, %c0_i32_152] : memref<64x32xf32, #tpu.memory_space<vmem>> -> memref<1x32xf32, #tpu.memory_space<vmem>>
    %266 = tpu.memref_slice %arg19[%c0_i32_150] : memref<1x!tpu.dma_semaphore, #tpu.memory_space<semaphore_mem>> -> memref<1x!tpu.dma_semaphore, #tpu.memory_space<semaphore_mem>>
    %267 = tpu.memref_squeeze %266 : memref<1x!tpu.dma_semaphore, #tpu.memory_space<semaphore_mem>> -> memref<!tpu.dma_semaphore, #tpu.memory_space<semaphore_mem>>
    tpu.enqueue_dma source(%264 : memref<1x32xf32, #tpu.memory_space<any>>) target(%265 : memref<1x32xf32, #tpu.memory_space<vmem>>) target_semaphore(%267 : memref<!tpu.dma_semaphore, #tpu.memory_space<semaphore_mem>>)
    %c0_i32_153 = arith.constant 0 : i32
    %c0_i32_154 = arith.constant 0 : i32
    %268 = tpu.memref_slice %arg1[%51, %c0_i32_154] : memref<32x32xf32, #tpu.memory_space<any>> -> memref<1x32xf32, #tpu.memory_space<any>>
    %c51_i32 = arith.constant 51 : i32
    %c0_i32_155 = arith.constant 0 : i32
    %269 = tpu.memref_slice %arg15[%c51_i32, %c0_i32_155] : memref<64x32xf32, #tpu.memory_space<vmem>> -> memref<1x32xf32, #tpu.memory_space<vmem>>
    %270 = tpu.memref_slice %arg19[%c0_i32_153] : memref<1x!tpu.dma_semaphore, #tpu.memory_space<semaphore_mem>> -> memref<1x!tpu.dma_semaphore, #tpu.memory_space<semaphore_mem>>
    %271 = tpu.memref_squeeze %270 : memref<1x!tpu.dma_semaphore, #tpu.memory_space<semaphore_mem>> -> memref<!tpu.dma_semaphore, #tpu.memory_space<semaphore_mem>>
    tpu.enqueue_dma source(%268 : memref<1x32xf32, #tpu.memory_space<any>>) target(%269 : memref<1x32xf32, #tpu.memory_space<vmem>>) target_semaphore(%271 : memref<!tpu.dma_semaphore, #tpu.memory_space<semaphore_mem>>)
    %c0_i32_156 = arith.constant 0 : i32
    %c0_i32_157 = arith.constant 0 : i32
    %272 = tpu.memref_slice %arg1[%52, %c0_i32_157] : memref<32x32xf32, #tpu.memory_space<any>> -> memref<1x32xf32, #tpu.memory_space<any>>
    %c52_i32 = arith.constant 52 : i32
    %c0_i32_158 = arith.constant 0 : i32
    %273 = tpu.memref_slice %arg15[%c52_i32, %c0_i32_158] : memref<64x32xf32, #tpu.memory_space<vmem>> -> memref<1x32xf32, #tpu.memory_space<vmem>>
    %274 = tpu.memref_slice %arg19[%c0_i32_156] : memref<1x!tpu.dma_semaphore, #tpu.memory_space<semaphore_mem>> -> memref<1x!tpu.dma_semaphore, #tpu.memory_space<semaphore_mem>>
    %275 = tpu.memref_squeeze %274 : memref<1x!tpu.dma_semaphore, #tpu.memory_space<semaphore_mem>> -> memref<!tpu.dma_semaphore, #tpu.memory_space<semaphore_mem>>
    tpu.enqueue_dma source(%272 : memref<1x32xf32, #tpu.memory_space<any>>) target(%273 : memref<1x32xf32, #tpu.memory_space<vmem>>) target_semaphore(%275 : memref<!tpu.dma_semaphore, #tpu.memory_space<semaphore_mem>>)
    %c0_i32_159 = arith.constant 0 : i32
    %c0_i32_160 = arith.constant 0 : i32
    %276 = tpu.memref_slice %arg1[%53, %c0_i32_160] : memref<32x32xf32, #tpu.memory_space<any>> -> memref<1x32xf32, #tpu.memory_space<any>>
    %c53_i32 = arith.constant 53 : i32
    %c0_i32_161 = arith.constant 0 : i32
    %277 = tpu.memref_slice %arg15[%c53_i32, %c0_i32_161] : memref<64x32xf32, #tpu.memory_space<vmem>> -> memref<1x32xf32, #tpu.memory_space<vmem>>
    %278 = tpu.memref_slice %arg19[%c0_i32_159] : memref<1x!tpu.dma_semaphore, #tpu.memory_space<semaphore_mem>> -> memref<1x!tpu.dma_semaphore, #tpu.memory_space<semaphore_mem>>
    %279 = tpu.memref_squeeze %278 : memref<1x!tpu.dma_semaphore, #tpu.memory_space<semaphore_mem>> -> memref<!tpu.dma_semaphore, #tpu.memory_space<semaphore_mem>>
    tpu.enqueue_dma source(%276 : memref<1x32xf32, #tpu.memory_space<any>>) target(%277 : memref<1x32xf32, #tpu.memory_space<vmem>>) target_semaphore(%279 : memref<!tpu.dma_semaphore, #tpu.memory_space<semaphore_mem>>)
    %c0_i32_162 = arith.constant 0 : i32
    %c0_i32_163 = arith.constant 0 : i32
    %280 = tpu.memref_slice %arg1[%54, %c0_i32_163] : memref<32x32xf32, #tpu.memory_space<any>> -> memref<1x32xf32, #tpu.memory_space<any>>
    %c54_i32 = arith.constant 54 : i32
    %c0_i32_164 = arith.constant 0 : i32
    %281 = tpu.memref_slice %arg15[%c54_i32, %c0_i32_164] : memref<64x32xf32, #tpu.memory_space<vmem>> -> memref<1x32xf32, #tpu.memory_space<vmem>>
    %282 = tpu.memref_slice %arg19[%c0_i32_162] : memref<1x!tpu.dma_semaphore, #tpu.memory_space<semaphore_mem>> -> memref<1x!tpu.dma_semaphore, #tpu.memory_space<semaphore_mem>>
    %283 = tpu.memref_squeeze %282 : memref<1x!tpu.dma_semaphore, #tpu.memory_space<semaphore_mem>> -> memref<!tpu.dma_semaphore, #tpu.memory_space<semaphore_mem>>
    tpu.enqueue_dma source(%280 : memref<1x32xf32, #tpu.memory_space<any>>) target(%281 : memref<1x32xf32, #tpu.memory_space<vmem>>) target_semaphore(%283 : memref<!tpu.dma_semaphore, #tpu.memory_space<semaphore_mem>>)
    %c0_i32_165 = arith.constant 0 : i32
    %c0_i32_166 = arith.constant 0 : i32
    %284 = tpu.memref_slice %arg1[%55, %c0_i32_166] : memref<32x32xf32, #tpu.memory_space<any>> -> memref<1x32xf32, #tpu.memory_space<any>>
    %c55_i32 = arith.constant 55 : i32
    %c0_i32_167 = arith.constant 0 : i32
    %285 = tpu.memref_slice %arg15[%c55_i32, %c0_i32_167] : memref<64x32xf32, #tpu.memory_space<vmem>> -> memref<1x32xf32, #tpu.memory_space<vmem>>
    %286 = tpu.memref_slice %arg19[%c0_i32_165] : memref<1x!tpu.dma_semaphore, #tpu.memory_space<semaphore_mem>> -> memref<1x!tpu.dma_semaphore, #tpu.memory_space<semaphore_mem>>
    %287 = tpu.memref_squeeze %286 : memref<1x!tpu.dma_semaphore, #tpu.memory_space<semaphore_mem>> -> memref<!tpu.dma_semaphore, #tpu.memory_space<semaphore_mem>>
    tpu.enqueue_dma source(%284 : memref<1x32xf32, #tpu.memory_space<any>>) target(%285 : memref<1x32xf32, #tpu.memory_space<vmem>>) target_semaphore(%287 : memref<!tpu.dma_semaphore, #tpu.memory_space<semaphore_mem>>)
    %c0_i32_168 = arith.constant 0 : i32
    %c0_i32_169 = arith.constant 0 : i32
    %288 = tpu.memref_slice %arg1[%56, %c0_i32_169] : memref<32x32xf32, #tpu.memory_space<any>> -> memref<1x32xf32, #tpu.memory_space<any>>
    %c56_i32 = arith.constant 56 : i32
    %c0_i32_170 = arith.constant 0 : i32
    %289 = tpu.memref_slice %arg15[%c56_i32, %c0_i32_170] : memref<64x32xf32, #tpu.memory_space<vmem>> -> memref<1x32xf32, #tpu.memory_space<vmem>>
    %290 = tpu.memref_slice %arg19[%c0_i32_168] : memref<1x!tpu.dma_semaphore, #tpu.memory_space<semaphore_mem>> -> memref<1x!tpu.dma_semaphore, #tpu.memory_space<semaphore_mem>>
    %291 = tpu.memref_squeeze %290 : memref<1x!tpu.dma_semaphore, #tpu.memory_space<semaphore_mem>> -> memref<!tpu.dma_semaphore, #tpu.memory_space<semaphore_mem>>
    tpu.enqueue_dma source(%288 : memref<1x32xf32, #tpu.memory_space<any>>) target(%289 : memref<1x32xf32, #tpu.memory_space<vmem>>) target_semaphore(%291 : memref<!tpu.dma_semaphore, #tpu.memory_space<semaphore_mem>>)
    %c0_i32_171 = arith.constant 0 : i32
    %c0_i32_172 = arith.constant 0 : i32
    %292 = tpu.memref_slice %arg1[%57, %c0_i32_172] : memref<32x32xf32, #tpu.memory_space<any>> -> memref<1x32xf32, #tpu.memory_space<any>>
    %c57_i32 = arith.constant 57 : i32
    %c0_i32_173 = arith.constant 0 : i32
    %293 = tpu.memref_slice %arg15[%c57_i32, %c0_i32_173] : memref<64x32xf32, #tpu.memory_space<vmem>> -> memref<1x32xf32, #tpu.memory_space<vmem>>
    %294 = tpu.memref_slice %arg19[%c0_i32_171] : memref<1x!tpu.dma_semaphore, #tpu.memory_space<semaphore_mem>> -> memref<1x!tpu.dma_semaphore, #tpu.memory_space<semaphore_mem>>
    %295 = tpu.memref_squeeze %294 : memref<1x!tpu.dma_semaphore, #tpu.memory_space<semaphore_mem>> -> memref<!tpu.dma_semaphore, #tpu.memory_space<semaphore_mem>>
    tpu.enqueue_dma source(%292 : memref<1x32xf32, #tpu.memory_space<any>>) target(%293 : memref<1x32xf32, #tpu.memory_space<vmem>>) target_semaphore(%295 : memref<!tpu.dma_semaphore, #tpu.memory_space<semaphore_mem>>)
    %c0_i32_174 = arith.constant 0 : i32
    %c0_i32_175 = arith.constant 0 : i32
    %296 = tpu.memref_slice %arg1[%58, %c0_i32_175] : memref<32x32xf32, #tpu.memory_space<any>> -> memref<1x32xf32, #tpu.memory_space<any>>
    %c58_i32 = arith.constant 58 : i32
    %c0_i32_176 = arith.constant 0 : i32
    %297 = tpu.memref_slice %arg15[%c58_i32, %c0_i32_176] : memref<64x32xf32, #tpu.memory_space<vmem>> -> memref<1x32xf32, #tpu.memory_space<vmem>>
    %298 = tpu.memref_slice %arg19[%c0_i32_174] : memref<1x!tpu.dma_semaphore, #tpu.memory_space<semaphore_mem>> -> memref<1x!tpu.dma_semaphore, #tpu.memory_space<semaphore_mem>>
    %299 = tpu.memref_squeeze %298 : memref<1x!tpu.dma_semaphore, #tpu.memory_space<semaphore_mem>> -> memref<!tpu.dma_semaphore, #tpu.memory_space<semaphore_mem>>
    tpu.enqueue_dma source(%296 : memref<1x32xf32, #tpu.memory_space<any>>) target(%297 : memref<1x32xf32, #tpu.memory_space<vmem>>) target_semaphore(%299 : memref<!tpu.dma_semaphore, #tpu.memory_space<semaphore_mem>>)
    %c0_i32_177 = arith.constant 0 : i32
    %c0_i32_178 = arith.constant 0 : i32
    %300 = tpu.memref_slice %arg1[%59, %c0_i32_178] : memref<32x32xf32, #tpu.memory_space<any>> -> memref<1x32xf32, #tpu.memory_space<any>>
    %c59_i32 = arith.constant 59 : i32
    %c0_i32_179 = arith.constant 0 : i32
    %301 = tpu.memref_slice %arg15[%c59_i32, %c0_i32_179] : memref<64x32xf32, #tpu.memory_space<vmem>> -> memref<1x32xf32, #tpu.memory_space<vmem>>
    %302 = tpu.memref_slice %arg19[%c0_i32_177] : memref<1x!tpu.dma_semaphore, #tpu.memory_space<semaphore_mem>> -> memref<1x!tpu.dma_semaphore, #tpu.memory_space<semaphore_mem>>
    %303 = tpu.memref_squeeze %302 : memref<1x!tpu.dma_semaphore, #tpu.memory_space<semaphore_mem>> -> memref<!tpu.dma_semaphore, #tpu.memory_space<semaphore_mem>>
    tpu.enqueue_dma source(%300 : memref<1x32xf32, #tpu.memory_space<any>>) target(%301 : memref<1x32xf32, #tpu.memory_space<vmem>>) target_semaphore(%303 : memref<!tpu.dma_semaphore, #tpu.memory_space<semaphore_mem>>)
    %c0_i32_180 = arith.constant 0 : i32
    %c0_i32_181 = arith.constant 0 : i32
    %304 = tpu.memref_slice %arg1[%60, %c0_i32_181] : memref<32x32xf32, #tpu.memory_space<any>> -> memref<1x32xf32, #tpu.memory_space<any>>
    %c60_i32 = arith.constant 60 : i32
    %c0_i32_182 = arith.constant 0 : i32
    %305 = tpu.memref_slice %arg15[%c60_i32, %c0_i32_182] : memref<64x32xf32, #tpu.memory_space<vmem>> -> memref<1x32xf32, #tpu.memory_space<vmem>>
    %306 = tpu.memref_slice %arg19[%c0_i32_180] : memref<1x!tpu.dma_semaphore, #tpu.memory_space<semaphore_mem>> -> memref<1x!tpu.dma_semaphore, #tpu.memory_space<semaphore_mem>>
    %307 = tpu.memref_squeeze %306 : memref<1x!tpu.dma_semaphore, #tpu.memory_space<semaphore_mem>> -> memref<!tpu.dma_semaphore, #tpu.memory_space<semaphore_mem>>
    tpu.enqueue_dma source(%304 : memref<1x32xf32, #tpu.memory_space<any>>) target(%305 : memref<1x32xf32, #tpu.memory_space<vmem>>) target_semaphore(%307 : memref<!tpu.dma_semaphore, #tpu.memory_space<semaphore_mem>>)
    %c0_i32_183 = arith.constant 0 : i32
    %c0_i32_184 = arith.constant 0 : i32
    %308 = tpu.memref_slice %arg1[%61, %c0_i32_184] : memref<32x32xf32, #tpu.memory_space<any>> -> memref<1x32xf32, #tpu.memory_space<any>>
    %c61_i32 = arith.constant 61 : i32
    %c0_i32_185 = arith.constant 0 : i32
    %309 = tpu.memref_slice %arg15[%c61_i32, %c0_i32_185] : memref<64x32xf32, #tpu.memory_space<vmem>> -> memref<1x32xf32, #tpu.memory_space<vmem>>
    %310 = tpu.memref_slice %arg19[%c0_i32_183] : memref<1x!tpu.dma_semaphore, #tpu.memory_space<semaphore_mem>> -> memref<1x!tpu.dma_semaphore, #tpu.memory_space<semaphore_mem>>
    %311 = tpu.memref_squeeze %310 : memref<1x!tpu.dma_semaphore, #tpu.memory_space<semaphore_mem>> -> memref<!tpu.dma_semaphore, #tpu.memory_space<semaphore_mem>>
    tpu.enqueue_dma source(%308 : memref<1x32xf32, #tpu.memory_space<any>>) target(%309 : memref<1x32xf32, #tpu.memory_space<vmem>>) target_semaphore(%311 : memref<!tpu.dma_semaphore, #tpu.memory_space<semaphore_mem>>)
    %c0_i32_186 = arith.constant 0 : i32
    %c0_i32_187 = arith.constant 0 : i32
    %312 = tpu.memref_slice %arg1[%62, %c0_i32_187] : memref<32x32xf32, #tpu.memory_space<any>> -> memref<1x32xf32, #tpu.memory_space<any>>
    %c62_i32 = arith.constant 62 : i32
    %c0_i32_188 = arith.constant 0 : i32
    %313 = tpu.memref_slice %arg15[%c62_i32, %c0_i32_188] : memref<64x32xf32, #tpu.memory_space<vmem>> -> memref<1x32xf32, #tpu.memory_space<vmem>>
    %314 = tpu.memref_slice %arg19[%c0_i32_186] : memref<1x!tpu.dma_semaphore, #tpu.memory_space<semaphore_mem>> -> memref<1x!tpu.dma_semaphore, #tpu.memory_space<semaphore_mem>>
    %315 = tpu.memref_squeeze %314 : memref<1x!tpu.dma_semaphore, #tpu.memory_space<semaphore_mem>> -> memref<!tpu.dma_semaphore, #tpu.memory_space<semaphore_mem>>
    tpu.enqueue_dma source(%312 : memref<1x32xf32, #tpu.memory_space<any>>) target(%313 : memref<1x32xf32, #tpu.memory_space<vmem>>) target_semaphore(%315 : memref<!tpu.dma_semaphore, #tpu.memory_space<semaphore_mem>>)
    %c0_i32_189 = arith.constant 0 : i32
    %c0_i32_190 = arith.constant 0 : i32
    %316 = tpu.memref_slice %arg1[%63, %c0_i32_190] : memref<32x32xf32, #tpu.memory_space<any>> -> memref<1x32xf32, #tpu.memory_space<any>>
    %c63_i32 = arith.constant 63 : i32
    %c0_i32_191 = arith.constant 0 : i32
    %317 = tpu.memref_slice %arg15[%c63_i32, %c0_i32_191] : memref<64x32xf32, #tpu.memory_space<vmem>> -> memref<1x32xf32, #tpu.memory_space<vmem>>
    %318 = tpu.memref_slice %arg19[%c0_i32_189] : memref<1x!tpu.dma_semaphore, #tpu.memory_space<semaphore_mem>> -> memref<1x!tpu.dma_semaphore, #tpu.memory_space<semaphore_mem>>
    %319 = tpu.memref_squeeze %318 : memref<1x!tpu.dma_semaphore, #tpu.memory_space<semaphore_mem>> -> memref<!tpu.dma_semaphore, #tpu.memory_space<semaphore_mem>>
    tpu.enqueue_dma source(%316 : memref<1x32xf32, #tpu.memory_space<any>>) target(%317 : memref<1x32xf32, #tpu.memory_space<vmem>>) target_semaphore(%319 : memref<!tpu.dma_semaphore, #tpu.memory_space<semaphore_mem>>)
    %c0_i32_192 = arith.constant 0 : i32
    %c0_i32_193 = arith.constant 0 : i32
    %320 = tpu.memref_slice %arg1[%0, %c0_i32_193] : memref<32x32xf32, #tpu.memory_space<any>> -> memref<1x32xf32, #tpu.memory_space<any>>
    %c0_i32_194 = arith.constant 0 : i32
    %c0_i32_195 = arith.constant 0 : i32
    %321 = tpu.memref_slice %arg15[%c0_i32_194, %c0_i32_195] : memref<64x32xf32, #tpu.memory_space<vmem>> -> memref<1x32xf32, #tpu.memory_space<vmem>>
    %322 = tpu.memref_slice %arg19[%c0_i32_192] : memref<1x!tpu.dma_semaphore, #tpu.memory_space<semaphore_mem>> -> memref<1x!tpu.dma_semaphore, #tpu.memory_space<semaphore_mem>>
    %323 = tpu.memref_squeeze %322 : memref<1x!tpu.dma_semaphore, #tpu.memory_space<semaphore_mem>> -> memref<!tpu.dma_semaphore, #tpu.memory_space<semaphore_mem>>
    tpu.wait_dma2 semaphore(%323 : memref<!tpu.dma_semaphore, #tpu.memory_space<semaphore_mem>>) src(%320 : memref<1x32xf32, #tpu.memory_space<any>>) dst(%321 : memref<1x32xf32, #tpu.memory_space<vmem>>)
    %c0_i32_196 = arith.constant 0 : i32
    %c0_i32_197 = arith.constant 0 : i32
    %324 = tpu.memref_slice %arg1[%1, %c0_i32_197] : memref<32x32xf32, #tpu.memory_space<any>> -> memref<1x32xf32, #tpu.memory_space<any>>
    %c1_i32_198 = arith.constant 1 : i32
    %c0_i32_199 = arith.constant 0 : i32
    %325 = tpu.memref_slice %arg15[%c1_i32_198, %c0_i32_199] : memref<64x32xf32, #tpu.memory_space<vmem>> -> memref<1x32xf32, #tpu.memory_space<vmem>>
    %326 = tpu.memref_slice %arg19[%c0_i32_196] : memref<1x!tpu.dma_semaphore, #tpu.memory_space<semaphore_mem>> -> memref<1x!tpu.dma_semaphore, #tpu.memory_space<semaphore_mem>>
    %327 = tpu.memref_squeeze %326 : memref<1x!tpu.dma_semaphore, #tpu.memory_space<semaphore_mem>> -> memref<!tpu.dma_semaphore, #tpu.memory_space<semaphore_mem>>
    tpu.wait_dma2 semaphore(%327 : memref<!tpu.dma_semaphore, #tpu.memory_space<semaphore_mem>>) src(%324 : memref<1x32xf32, #tpu.memory_space<any>>) dst(%325 : memref<1x32xf32, #tpu.memory_space<vmem>>)
    %c0_i32_200 = arith.constant 0 : i32
    %c0_i32_201 = arith.constant 0 : i32
    %328 = tpu.memref_slice %arg1[%2, %c0_i32_201] : memref<32x32xf32, #tpu.memory_space<any>> -> memref<1x32xf32, #tpu.memory_space<any>>
    %c2_i32_202 = arith.constant 2 : i32
    %c0_i32_203 = arith.constant 0 : i32
    %329 = tpu.memref_slice %arg15[%c2_i32_202, %c0_i32_203] : memref<64x32xf32, #tpu.memory_space<vmem>> -> memref<1x32xf32, #tpu.memory_space<vmem>>
    %330 = tpu.memref_slice %arg19[%c0_i32_200] : memref<1x!tpu.dma_semaphore, #tpu.memory_space<semaphore_mem>> -> memref<1x!tpu.dma_semaphore, #tpu.memory_space<semaphore_mem>>
    %331 = tpu.memref_squeeze %330 : memref<1x!tpu.dma_semaphore, #tpu.memory_space<semaphore_mem>> -> memref<!tpu.dma_semaphore, #tpu.memory_space<semaphore_mem>>
    tpu.wait_dma2 semaphore(%331 : memref<!tpu.dma_semaphore, #tpu.memory_space<semaphore_mem>>) src(%328 : memref<1x32xf32, #tpu.memory_space<any>>) dst(%329 : memref<1x32xf32, #tpu.memory_space<vmem>>)
    %c0_i32_204 = arith.constant 0 : i32
    %c0_i32_205 = arith.constant 0 : i32
    %332 = tpu.memref_slice %arg1[%3, %c0_i32_205] : memref<32x32xf32, #tpu.memory_space<any>> -> memref<1x32xf32, #tpu.memory_space<any>>
    %c3_i32_206 = arith.constant 3 : i32
    %c0_i32_207 = arith.constant 0 : i32
    %333 = tpu.memref_slice %arg15[%c3_i32_206, %c0_i32_207] : memref<64x32xf32, #tpu.memory_space<vmem>> -> memref<1x32xf32, #tpu.memory_space<vmem>>
    %334 = tpu.memref_slice %arg19[%c0_i32_204] : memref<1x!tpu.dma_semaphore, #tpu.memory_space<semaphore_mem>> -> memref<1x!tpu.dma_semaphore, #tpu.memory_space<semaphore_mem>>
    %335 = tpu.memref_squeeze %334 : memref<1x!tpu.dma_semaphore, #tpu.memory_space<semaphore_mem>> -> memref<!tpu.dma_semaphore, #tpu.memory_space<semaphore_mem>>
    tpu.wait_dma2 semaphore(%335 : memref<!tpu.dma_semaphore, #tpu.memory_space<semaphore_mem>>) src(%332 : memref<1x32xf32, #tpu.memory_space<any>>) dst(%333 : memref<1x32xf32, #tpu.memory_space<vmem>>)
    %c0_i32_208 = arith.constant 0 : i32
    %c0_i32_209 = arith.constant 0 : i32
    %336 = tpu.memref_slice %arg1[%4, %c0_i32_209] : memref<32x32xf32, #tpu.memory_space<any>> -> memref<1x32xf32, #tpu.memory_space<any>>
    %c4_i32_210 = arith.constant 4 : i32
    %c0_i32_211 = arith.constant 0 : i32
    %337 = tpu.memref_slice %arg15[%c4_i32_210, %c0_i32_211] : memref<64x32xf32, #tpu.memory_space<vmem>> -> memref<1x32xf32, #tpu.memory_space<vmem>>
    %338 = tpu.memref_slice %arg19[%c0_i32_208] : memref<1x!tpu.dma_semaphore, #tpu.memory_space<semaphore_mem>> -> memref<1x!tpu.dma_semaphore, #tpu.memory_space<semaphore_mem>>
    %339 = tpu.memref_squeeze %338 : memref<1x!tpu.dma_semaphore, #tpu.memory_space<semaphore_mem>> -> memref<!tpu.dma_semaphore, #tpu.memory_space<semaphore_mem>>
    tpu.wait_dma2 semaphore(%339 : memref<!tpu.dma_semaphore, #tpu.memory_space<semaphore_mem>>) src(%336 : memref<1x32xf32, #tpu.memory_space<any>>) dst(%337 : memref<1x32xf32, #tpu.memory_space<vmem>>)
    %c0_i32_212 = arith.constant 0 : i32
    %c0_i32_213 = arith.constant 0 : i32
    %340 = tpu.memref_slice %arg1[%5, %c0_i32_213] : memref<32x32xf32, #tpu.memory_space<any>> -> memref<1x32xf32, #tpu.memory_space<any>>
    %c5_i32_214 = arith.constant 5 : i32
    %c0_i32_215 = arith.constant 0 : i32
    %341 = tpu.memref_slice %arg15[%c5_i32_214, %c0_i32_215] : memref<64x32xf32, #tpu.memory_space<vmem>> -> memref<1x32xf32, #tpu.memory_space<vmem>>
    %342 = tpu.memref_slice %arg19[%c0_i32_212] : memref<1x!tpu.dma_semaphore, #tpu.memory_space<semaphore_mem>> -> memref<1x!tpu.dma_semaphore, #tpu.memory_space<semaphore_mem>>
    %343 = tpu.memref_squeeze %342 : memref<1x!tpu.dma_semaphore, #tpu.memory_space<semaphore_mem>> -> memref<!tpu.dma_semaphore, #tpu.memory_space<semaphore_mem>>
    tpu.wait_dma2 semaphore(%343 : memref<!tpu.dma_semaphore, #tpu.memory_space<semaphore_mem>>) src(%340 : memref<1x32xf32, #tpu.memory_space<any>>) dst(%341 : memref<1x32xf32, #tpu.memory_space<vmem>>)
    %c0_i32_216 = arith.constant 0 : i32
    %c0_i32_217 = arith.constant 0 : i32
    %344 = tpu.memref_slice %arg1[%6, %c0_i32_217] : memref<32x32xf32, #tpu.memory_space<any>> -> memref<1x32xf32, #tpu.memory_space<any>>
    %c6_i32_218 = arith.constant 6 : i32
    %c0_i32_219 = arith.constant 0 : i32
    %345 = tpu.memref_slice %arg15[%c6_i32_218, %c0_i32_219] : memref<64x32xf32, #tpu.memory_space<vmem>> -> memref<1x32xf32, #tpu.memory_space<vmem>>
    %346 = tpu.memref_slice %arg19[%c0_i32_216] : memref<1x!tpu.dma_semaphore, #tpu.memory_space<semaphore_mem>> -> memref<1x!tpu.dma_semaphore, #tpu.memory_space<semaphore_mem>>
    %347 = tpu.memref_squeeze %346 : memref<1x!tpu.dma_semaphore, #tpu.memory_space<semaphore_mem>> -> memref<!tpu.dma_semaphore, #tpu.memory_space<semaphore_mem>>
    tpu.wait_dma2 semaphore(%347 : memref<!tpu.dma_semaphore, #tpu.memory_space<semaphore_mem>>) src(%344 : memref<1x32xf32, #tpu.memory_space<any>>) dst(%345 : memref<1x32xf32, #tpu.memory_space<vmem>>)
    %c0_i32_220 = arith.constant 0 : i32
    %c0_i32_221 = arith.constant 0 : i32
    %348 = tpu.memref_slice %arg1[%7, %c0_i32_221] : memref<32x32xf32, #tpu.memory_space<any>> -> memref<1x32xf32, #tpu.memory_space<any>>
    %c7_i32_222 = arith.constant 7 : i32
    %c0_i32_223 = arith.constant 0 : i32
    %349 = tpu.memref_slice %arg15[%c7_i32_222, %c0_i32_223] : memref<64x32xf32, #tpu.memory_space<vmem>> -> memref<1x32xf32, #tpu.memory_space<vmem>>
    %350 = tpu.memref_slice %arg19[%c0_i32_220] : memref<1x!tpu.dma_semaphore, #tpu.memory_space<semaphore_mem>> -> memref<1x!tpu.dma_semaphore, #tpu.memory_space<semaphore_mem>>
    %351 = tpu.memref_squeeze %350 : memref<1x!tpu.dma_semaphore, #tpu.memory_space<semaphore_mem>> -> memref<!tpu.dma_semaphore, #tpu.memory_space<semaphore_mem>>
    tpu.wait_dma2 semaphore(%351 : memref<!tpu.dma_semaphore, #tpu.memory_space<semaphore_mem>>) src(%348 : memref<1x32xf32, #tpu.memory_space<any>>) dst(%349 : memref<1x32xf32, #tpu.memory_space<vmem>>)
    %c0_i32_224 = arith.constant 0 : i32
    %c0_i32_225 = arith.constant 0 : i32
    %352 = tpu.memref_slice %arg1[%8, %c0_i32_225] : memref<32x32xf32, #tpu.memory_space<any>> -> memref<1x32xf32, #tpu.memory_space<any>>
    %c8_i32_226 = arith.constant 8 : i32
    %c0_i32_227 = arith.constant 0 : i32
    %353 = tpu.memref_slice %arg15[%c8_i32_226, %c0_i32_227] : memref<64x32xf32, #tpu.memory_space<vmem>> -> memref<1x32xf32, #tpu.memory_space<vmem>>
    %354 = tpu.memref_slice %arg19[%c0_i32_224] : memref<1x!tpu.dma_semaphore, #tpu.memory_space<semaphore_mem>> -> memref<1x!tpu.dma_semaphore, #tpu.memory_space<semaphore_mem>>
    %355 = tpu.memref_squeeze %354 : memref<1x!tpu.dma_semaphore, #tpu.memory_space<semaphore_mem>> -> memref<!tpu.dma_semaphore, #tpu.memory_space<semaphore_mem>>
    tpu.wait_dma2 semaphore(%355 : memref<!tpu.dma_semaphore, #tpu.memory_space<semaphore_mem>>) src(%352 : memref<1x32xf32, #tpu.memory_space<any>>) dst(%353 : memref<1x32xf32, #tpu.memory_space<vmem>>)
    %c0_i32_228 = arith.constant 0 : i32
    %c0_i32_229 = arith.constant 0 : i32
    %356 = tpu.memref_slice %arg1[%9, %c0_i32_229] : memref<32x32xf32, #tpu.memory_space<any>> -> memref<1x32xf32, #tpu.memory_space<any>>
    %c9_i32_230 = arith.constant 9 : i32
    %c0_i32_231 = arith.constant 0 : i32
    %357 = tpu.memref_slice %arg15[%c9_i32_230, %c0_i32_231] : memref<64x32xf32, #tpu.memory_space<vmem>> -> memref<1x32xf32, #tpu.memory_space<vmem>>
    %358 = tpu.memref_slice %arg19[%c0_i32_228] : memref<1x!tpu.dma_semaphore, #tpu.memory_space<semaphore_mem>> -> memref<1x!tpu.dma_semaphore, #tpu.memory_space<semaphore_mem>>
    %359 = tpu.memref_squeeze %358 : memref<1x!tpu.dma_semaphore, #tpu.memory_space<semaphore_mem>> -> memref<!tpu.dma_semaphore, #tpu.memory_space<semaphore_mem>>
    tpu.wait_dma2 semaphore(%359 : memref<!tpu.dma_semaphore, #tpu.memory_space<semaphore_mem>>) src(%356 : memref<1x32xf32, #tpu.memory_space<any>>) dst(%357 : memref<1x32xf32, #tpu.memory_space<vmem>>)
    %c0_i32_232 = arith.constant 0 : i32
    %c0_i32_233 = arith.constant 0 : i32
    %360 = tpu.memref_slice %arg1[%10, %c0_i32_233] : memref<32x32xf32, #tpu.memory_space<any>> -> memref<1x32xf32, #tpu.memory_space<any>>
    %c10_i32_234 = arith.constant 10 : i32
    %c0_i32_235 = arith.constant 0 : i32
    %361 = tpu.memref_slice %arg15[%c10_i32_234, %c0_i32_235] : memref<64x32xf32, #tpu.memory_space<vmem>> -> memref<1x32xf32, #tpu.memory_space<vmem>>
    %362 = tpu.memref_slice %arg19[%c0_i32_232] : memref<1x!tpu.dma_semaphore, #tpu.memory_space<semaphore_mem>> -> memref<1x!tpu.dma_semaphore, #tpu.memory_space<semaphore_mem>>
    %363 = tpu.memref_squeeze %362 : memref<1x!tpu.dma_semaphore, #tpu.memory_space<semaphore_mem>> -> memref<!tpu.dma_semaphore, #tpu.memory_space<semaphore_mem>>
    tpu.wait_dma2 semaphore(%363 : memref<!tpu.dma_semaphore, #tpu.memory_space<semaphore_mem>>) src(%360 : memref<1x32xf32, #tpu.memory_space<any>>) dst(%361 : memref<1x32xf32, #tpu.memory_space<vmem>>)
    %c0_i32_236 = arith.constant 0 : i32
    %c0_i32_237 = arith.constant 0 : i32
    %364 = tpu.memref_slice %arg1[%11, %c0_i32_237] : memref<32x32xf32, #tpu.memory_space<any>> -> memref<1x32xf32, #tpu.memory_space<any>>
    %c11_i32_238 = arith.constant 11 : i32
    %c0_i32_239 = arith.constant 0 : i32
    %365 = tpu.memref_slice %arg15[%c11_i32_238, %c0_i32_239] : memref<64x32xf32, #tpu.memory_space<vmem>> -> memref<1x32xf32, #tpu.memory_space<vmem>>
    %366 = tpu.memref_slice %arg19[%c0_i32_236] : memref<1x!tpu.dma_semaphore, #tpu.memory_space<semaphore_mem>> -> memref<1x!tpu.dma_semaphore, #tpu.memory_space<semaphore_mem>>
    %367 = tpu.memref_squeeze %366 : memref<1x!tpu.dma_semaphore, #tpu.memory_space<semaphore_mem>> -> memref<!tpu.dma_semaphore, #tpu.memory_space<semaphore_mem>>
    tpu.wait_dma2 semaphore(%367 : memref<!tpu.dma_semaphore, #tpu.memory_space<semaphore_mem>>) src(%364 : memref<1x32xf32, #tpu.memory_space<any>>) dst(%365 : memref<1x32xf32, #tpu.memory_space<vmem>>)
    %c0_i32_240 = arith.constant 0 : i32
    %c0_i32_241 = arith.constant 0 : i32
    %368 = tpu.memref_slice %arg1[%12, %c0_i32_241] : memref<32x32xf32, #tpu.memory_space<any>> -> memref<1x32xf32, #tpu.memory_space<any>>
    %c12_i32_242 = arith.constant 12 : i32
    %c0_i32_243 = arith.constant 0 : i32
    %369 = tpu.memref_slice %arg15[%c12_i32_242, %c0_i32_243] : memref<64x32xf32, #tpu.memory_space<vmem>> -> memref<1x32xf32, #tpu.memory_space<vmem>>
    %370 = tpu.memref_slice %arg19[%c0_i32_240] : memref<1x!tpu.dma_semaphore, #tpu.memory_space<semaphore_mem>> -> memref<1x!tpu.dma_semaphore, #tpu.memory_space<semaphore_mem>>
    %371 = tpu.memref_squeeze %370 : memref<1x!tpu.dma_semaphore, #tpu.memory_space<semaphore_mem>> -> memref<!tpu.dma_semaphore, #tpu.memory_space<semaphore_mem>>
    tpu.wait_dma2 semaphore(%371 : memref<!tpu.dma_semaphore, #tpu.memory_space<semaphore_mem>>) src(%368 : memref<1x32xf32, #tpu.memory_space<any>>) dst(%369 : memref<1x32xf32, #tpu.memory_space<vmem>>)
    %c0_i32_244 = arith.constant 0 : i32
    %c0_i32_245 = arith.constant 0 : i32
    %372 = tpu.memref_slice %arg1[%13, %c0_i32_245] : memref<32x32xf32, #tpu.memory_space<any>> -> memref<1x32xf32, #tpu.memory_space<any>>
    %c13_i32_246 = arith.constant 13 : i32
    %c0_i32_247 = arith.constant 0 : i32
    %373 = tpu.memref_slice %arg15[%c13_i32_246, %c0_i32_247] : memref<64x32xf32, #tpu.memory_space<vmem>> -> memref<1x32xf32, #tpu.memory_space<vmem>>
    %374 = tpu.memref_slice %arg19[%c0_i32_244] : memref<1x!tpu.dma_semaphore, #tpu.memory_space<semaphore_mem>> -> memref<1x!tpu.dma_semaphore, #tpu.memory_space<semaphore_mem>>
    %375 = tpu.memref_squeeze %374 : memref<1x!tpu.dma_semaphore, #tpu.memory_space<semaphore_mem>> -> memref<!tpu.dma_semaphore, #tpu.memory_space<semaphore_mem>>
    tpu.wait_dma2 semaphore(%375 : memref<!tpu.dma_semaphore, #tpu.memory_space<semaphore_mem>>) src(%372 : memref<1x32xf32, #tpu.memory_space<any>>) dst(%373 : memref<1x32xf32, #tpu.memory_space<vmem>>)
    %c0_i32_248 = arith.constant 0 : i32
    %c0_i32_249 = arith.constant 0 : i32
    %376 = tpu.memref_slice %arg1[%14, %c0_i32_249] : memref<32x32xf32, #tpu.memory_space<any>> -> memref<1x32xf32, #tpu.memory_space<any>>
    %c14_i32_250 = arith.constant 14 : i32
    %c0_i32_251 = arith.constant 0 : i32
    %377 = tpu.memref_slice %arg15[%c14_i32_250, %c0_i32_251] : memref<64x32xf32, #tpu.memory_space<vmem>> -> memref<1x32xf32, #tpu.memory_space<vmem>>
    %378 = tpu.memref_slice %arg19[%c0_i32_248] : memref<1x!tpu.dma_semaphore, #tpu.memory_space<semaphore_mem>> -> memref<1x!tpu.dma_semaphore, #tpu.memory_space<semaphore_mem>>
    %379 = tpu.memref_squeeze %378 : memref<1x!tpu.dma_semaphore, #tpu.memory_space<semaphore_mem>> -> memref<!tpu.dma_semaphore, #tpu.memory_space<semaphore_mem>>
    tpu.wait_dma2 semaphore(%379 : memref<!tpu.dma_semaphore, #tpu.memory_space<semaphore_mem>>) src(%376 : memref<1x32xf32, #tpu.memory_space<any>>) dst(%377 : memref<1x32xf32, #tpu.memory_space<vmem>>)
    %c0_i32_252 = arith.constant 0 : i32
    %c0_i32_253 = arith.constant 0 : i32
    %380 = tpu.memref_slice %arg1[%15, %c0_i32_253] : memref<32x32xf32, #tpu.memory_space<any>> -> memref<1x32xf32, #tpu.memory_space<any>>
    %c15_i32_254 = arith.constant 15 : i32
    %c0_i32_255 = arith.constant 0 : i32
    %381 = tpu.memref_slice %arg15[%c15_i32_254, %c0_i32_255] : memref<64x32xf32, #tpu.memory_space<vmem>> -> memref<1x32xf32, #tpu.memory_space<vmem>>
    %382 = tpu.memref_slice %arg19[%c0_i32_252] : memref<1x!tpu.dma_semaphore, #tpu.memory_space<semaphore_mem>> -> memref<1x!tpu.dma_semaphore, #tpu.memory_space<semaphore_mem>>
    %383 = tpu.memref_squeeze %382 : memref<1x!tpu.dma_semaphore, #tpu.memory_space<semaphore_mem>> -> memref<!tpu.dma_semaphore, #tpu.memory_space<semaphore_mem>>
    tpu.wait_dma2 semaphore(%383 : memref<!tpu.dma_semaphore, #tpu.memory_space<semaphore_mem>>) src(%380 : memref<1x32xf32, #tpu.memory_space<any>>) dst(%381 : memref<1x32xf32, #tpu.memory_space<vmem>>)
    %c0_i32_256 = arith.constant 0 : i32
    %c0_i32_257 = arith.constant 0 : i32
    %384 = tpu.memref_slice %arg1[%16, %c0_i32_257] : memref<32x32xf32, #tpu.memory_space<any>> -> memref<1x32xf32, #tpu.memory_space<any>>
    %c16_i32_258 = arith.constant 16 : i32
    %c0_i32_259 = arith.constant 0 : i32
    %385 = tpu.memref_slice %arg15[%c16_i32_258, %c0_i32_259] : memref<64x32xf32, #tpu.memory_space<vmem>> -> memref<1x32xf32, #tpu.memory_space<vmem>>
    %386 = tpu.memref_slice %arg19[%c0_i32_256] : memref<1x!tpu.dma_semaphore, #tpu.memory_space<semaphore_mem>> -> memref<1x!tpu.dma_semaphore, #tpu.memory_space<semaphore_mem>>
    %387 = tpu.memref_squeeze %386 : memref<1x!tpu.dma_semaphore, #tpu.memory_space<semaphore_mem>> -> memref<!tpu.dma_semaphore, #tpu.memory_space<semaphore_mem>>
    tpu.wait_dma2 semaphore(%387 : memref<!tpu.dma_semaphore, #tpu.memory_space<semaphore_mem>>) src(%384 : memref<1x32xf32, #tpu.memory_space<any>>) dst(%385 : memref<1x32xf32, #tpu.memory_space<vmem>>)
    %c0_i32_260 = arith.constant 0 : i32
    %c0_i32_261 = arith.constant 0 : i32
    %388 = tpu.memref_slice %arg1[%17, %c0_i32_261] : memref<32x32xf32, #tpu.memory_space<any>> -> memref<1x32xf32, #tpu.memory_space<any>>
    %c17_i32_262 = arith.constant 17 : i32
    %c0_i32_263 = arith.constant 0 : i32
    %389 = tpu.memref_slice %arg15[%c17_i32_262, %c0_i32_263] : memref<64x32xf32, #tpu.memory_space<vmem>> -> memref<1x32xf32, #tpu.memory_space<vmem>>
    %390 = tpu.memref_slice %arg19[%c0_i32_260] : memref<1x!tpu.dma_semaphore, #tpu.memory_space<semaphore_mem>> -> memref<1x!tpu.dma_semaphore, #tpu.memory_space<semaphore_mem>>
    %391 = tpu.memref_squeeze %390 : memref<1x!tpu.dma_semaphore, #tpu.memory_space<semaphore_mem>> -> memref<!tpu.dma_semaphore, #tpu.memory_space<semaphore_mem>>
    tpu.wait_dma2 semaphore(%391 : memref<!tpu.dma_semaphore, #tpu.memory_space<semaphore_mem>>) src(%388 : memref<1x32xf32, #tpu.memory_space<any>>) dst(%389 : memref<1x32xf32, #tpu.memory_space<vmem>>)
    %c0_i32_264 = arith.constant 0 : i32
    %c0_i32_265 = arith.constant 0 : i32
    %392 = tpu.memref_slice %arg1[%18, %c0_i32_265] : memref<32x32xf32, #tpu.memory_space<any>> -> memref<1x32xf32, #tpu.memory_space<any>>
    %c18_i32_266 = arith.constant 18 : i32
    %c0_i32_267 = arith.constant 0 : i32
    %393 = tpu.memref_slice %arg15[%c18_i32_266, %c0_i32_267] : memref<64x32xf32, #tpu.memory_space<vmem>> -> memref<1x32xf32, #tpu.memory_space<vmem>>
    %394 = tpu.memref_slice %arg19[%c0_i32_264] : memref<1x!tpu.dma_semaphore, #tpu.memory_space<semaphore_mem>> -> memref<1x!tpu.dma_semaphore, #tpu.memory_space<semaphore_mem>>
    %395 = tpu.memref_squeeze %394 : memref<1x!tpu.dma_semaphore, #tpu.memory_space<semaphore_mem>> -> memref<!tpu.dma_semaphore, #tpu.memory_space<semaphore_mem>>
    tpu.wait_dma2 semaphore(%395 : memref<!tpu.dma_semaphore, #tpu.memory_space<semaphore_mem>>) src(%392 : memref<1x32xf32, #tpu.memory_space<any>>) dst(%393 : memref<1x32xf32, #tpu.memory_space<vmem>>)
    %c0_i32_268 = arith.constant 0 : i32
    %c0_i32_269 = arith.constant 0 : i32
    %396 = tpu.memref_slice %arg1[%19, %c0_i32_269] : memref<32x32xf32, #tpu.memory_space<any>> -> memref<1x32xf32, #tpu.memory_space<any>>
    %c19_i32_270 = arith.constant 19 : i32
    %c0_i32_271 = arith.constant 0 : i32
    %397 = tpu.memref_slice %arg15[%c19_i32_270, %c0_i32_271] : memref<64x32xf32, #tpu.memory_space<vmem>> -> memref<1x32xf32, #tpu.memory_space<vmem>>
    %398 = tpu.memref_slice %arg19[%c0_i32_268] : memref<1x!tpu.dma_semaphore, #tpu.memory_space<semaphore_mem>> -> memref<1x!tpu.dma_semaphore, #tpu.memory_space<semaphore_mem>>
    %399 = tpu.memref_squeeze %398 : memref<1x!tpu.dma_semaphore, #tpu.memory_space<semaphore_mem>> -> memref<!tpu.dma_semaphore, #tpu.memory_space<semaphore_mem>>
    tpu.wait_dma2 semaphore(%399 : memref<!tpu.dma_semaphore, #tpu.memory_space<semaphore_mem>>) src(%396 : memref<1x32xf32, #tpu.memory_space<any>>) dst(%397 : memref<1x32xf32, #tpu.memory_space<vmem>>)
    %c0_i32_272 = arith.constant 0 : i32
    %c0_i32_273 = arith.constant 0 : i32
    %400 = tpu.memref_slice %arg1[%20, %c0_i32_273] : memref<32x32xf32, #tpu.memory_space<any>> -> memref<1x32xf32, #tpu.memory_space<any>>
    %c20_i32_274 = arith.constant 20 : i32
    %c0_i32_275 = arith.constant 0 : i32
    %401 = tpu.memref_slice %arg15[%c20_i32_274, %c0_i32_275] : memref<64x32xf32, #tpu.memory_space<vmem>> -> memref<1x32xf32, #tpu.memory_space<vmem>>
    %402 = tpu.memref_slice %arg19[%c0_i32_272] : memref<1x!tpu.dma_semaphore, #tpu.memory_space<semaphore_mem>> -> memref<1x!tpu.dma_semaphore, #tpu.memory_space<semaphore_mem>>
    %403 = tpu.memref_squeeze %402 : memref<1x!tpu.dma_semaphore, #tpu.memory_space<semaphore_mem>> -> memref<!tpu.dma_semaphore, #tpu.memory_space<semaphore_mem>>
    tpu.wait_dma2 semaphore(%403 : memref<!tpu.dma_semaphore, #tpu.memory_space<semaphore_mem>>) src(%400 : memref<1x32xf32, #tpu.memory_space<any>>) dst(%401 : memref<1x32xf32, #tpu.memory_space<vmem>>)
    %c0_i32_276 = arith.constant 0 : i32
    %c0_i32_277 = arith.constant 0 : i32
    %404 = tpu.memref_slice %arg1[%21, %c0_i32_277] : memref<32x32xf32, #tpu.memory_space<any>> -> memref<1x32xf32, #tpu.memory_space<any>>
    %c21_i32_278 = arith.constant 21 : i32
    %c0_i32_279 = arith.constant 0 : i32
    %405 = tpu.memref_slice %arg15[%c21_i32_278, %c0_i32_279] : memref<64x32xf32, #tpu.memory_space<vmem>> -> memref<1x32xf32, #tpu.memory_space<vmem>>
    %406 = tpu.memref_slice %arg19[%c0_i32_276] : memref<1x!tpu.dma_semaphore, #tpu.memory_space<semaphore_mem>> -> memref<1x!tpu.dma_semaphore, #tpu.memory_space<semaphore_mem>>
    %407 = tpu.memref_squeeze %406 : memref<1x!tpu.dma_semaphore, #tpu.memory_space<semaphore_mem>> -> memref<!tpu.dma_semaphore, #tpu.memory_space<semaphore_mem>>
    tpu.wait_dma2 semaphore(%407 : memref<!tpu.dma_semaphore, #tpu.memory_space<semaphore_mem>>) src(%404 : memref<1x32xf32, #tpu.memory_space<any>>) dst(%405 : memref<1x32xf32, #tpu.memory_space<vmem>>)
    %c0_i32_280 = arith.constant 0 : i32
    %c0_i32_281 = arith.constant 0 : i32
    %408 = tpu.memref_slice %arg1[%22, %c0_i32_281] : memref<32x32xf32, #tpu.memory_space<any>> -> memref<1x32xf32, #tpu.memory_space<any>>
    %c22_i32_282 = arith.constant 22 : i32
    %c0_i32_283 = arith.constant 0 : i32
    %409 = tpu.memref_slice %arg15[%c22_i32_282, %c0_i32_283] : memref<64x32xf32, #tpu.memory_space<vmem>> -> memref<1x32xf32, #tpu.memory_space<vmem>>
    %410 = tpu.memref_slice %arg19[%c0_i32_280] : memref<1x!tpu.dma_semaphore, #tpu.memory_space<semaphore_mem>> -> memref<1x!tpu.dma_semaphore, #tpu.memory_space<semaphore_mem>>
    %411 = tpu.memref_squeeze %410 : memref<1x!tpu.dma_semaphore, #tpu.memory_space<semaphore_mem>> -> memref<!tpu.dma_semaphore, #tpu.memory_space<semaphore_mem>>
    tpu.wait_dma2 semaphore(%411 : memref<!tpu.dma_semaphore, #tpu.memory_space<semaphore_mem>>) src(%408 : memref<1x32xf32, #tpu.memory_space<any>>) dst(%409 : memref<1x32xf32, #tpu.memory_space<vmem>>)
    %c0_i32_284 = arith.constant 0 : i32
    %c0_i32_285 = arith.constant 0 : i32
    %412 = tpu.memref_slice %arg1[%23, %c0_i32_285] : memref<32x32xf32, #tpu.memory_space<any>> -> memref<1x32xf32, #tpu.memory_space<any>>
    %c23_i32_286 = arith.constant 23 : i32
    %c0_i32_287 = arith.constant 0 : i32
    %413 = tpu.memref_slice %arg15[%c23_i32_286, %c0_i32_287] : memref<64x32xf32, #tpu.memory_space<vmem>> -> memref<1x32xf32, #tpu.memory_space<vmem>>
    %414 = tpu.memref_slice %arg19[%c0_i32_284] : memref<1x!tpu.dma_semaphore, #tpu.memory_space<semaphore_mem>> -> memref<1x!tpu.dma_semaphore, #tpu.memory_space<semaphore_mem>>
    %415 = tpu.memref_squeeze %414 : memref<1x!tpu.dma_semaphore, #tpu.memory_space<semaphore_mem>> -> memref<!tpu.dma_semaphore, #tpu.memory_space<semaphore_mem>>
    tpu.wait_dma2 semaphore(%415 : memref<!tpu.dma_semaphore, #tpu.memory_space<semaphore_mem>>) src(%412 : memref<1x32xf32, #tpu.memory_space<any>>) dst(%413 : memref<1x32xf32, #tpu.memory_space<vmem>>)
    %c0_i32_288 = arith.constant 0 : i32
    %c0_i32_289 = arith.constant 0 : i32
    %416 = tpu.memref_slice %arg1[%24, %c0_i32_289] : memref<32x32xf32, #tpu.memory_space<any>> -> memref<1x32xf32, #tpu.memory_space<any>>
    %c24_i32_290 = arith.constant 24 : i32
    %c0_i32_291 = arith.constant 0 : i32
    %417 = tpu.memref_slice %arg15[%c24_i32_290, %c0_i32_291] : memref<64x32xf32, #tpu.memory_space<vmem>> -> memref<1x32xf32, #tpu.memory_space<vmem>>
    %418 = tpu.memref_slice %arg19[%c0_i32_288] : memref<1x!tpu.dma_semaphore, #tpu.memory_space<semaphore_mem>> -> memref<1x!tpu.dma_semaphore, #tpu.memory_space<semaphore_mem>>
    %419 = tpu.memref_squeeze %418 : memref<1x!tpu.dma_semaphore, #tpu.memory_space<semaphore_mem>> -> memref<!tpu.dma_semaphore, #tpu.memory_space<semaphore_mem>>
    tpu.wait_dma2 semaphore(%419 : memref<!tpu.dma_semaphore, #tpu.memory_space<semaphore_mem>>) src(%416 : memref<1x32xf32, #tpu.memory_space<any>>) dst(%417 : memref<1x32xf32, #tpu.memory_space<vmem>>)
    %c0_i32_292 = arith.constant 0 : i32
    %c0_i32_293 = arith.constant 0 : i32
    %420 = tpu.memref_slice %arg1[%25, %c0_i32_293] : memref<32x32xf32, #tpu.memory_space<any>> -> memref<1x32xf32, #tpu.memory_space<any>>
    %c25_i32_294 = arith.constant 25 : i32
    %c0_i32_295 = arith.constant 0 : i32
    %421 = tpu.memref_slice %arg15[%c25_i32_294, %c0_i32_295] : memref<64x32xf32, #tpu.memory_space<vmem>> -> memref<1x32xf32, #tpu.memory_space<vmem>>
    %422 = tpu.memref_slice %arg19[%c0_i32_292] : memref<1x!tpu.dma_semaphore, #tpu.memory_space<semaphore_mem>> -> memref<1x!tpu.dma_semaphore, #tpu.memory_space<semaphore_mem>>
    %423 = tpu.memref_squeeze %422 : memref<1x!tpu.dma_semaphore, #tpu.memory_space<semaphore_mem>> -> memref<!tpu.dma_semaphore, #tpu.memory_space<semaphore_mem>>
    tpu.wait_dma2 semaphore(%423 : memref<!tpu.dma_semaphore, #tpu.memory_space<semaphore_mem>>) src(%420 : memref<1x32xf32, #tpu.memory_space<any>>) dst(%421 : memref<1x32xf32, #tpu.memory_space<vmem>>)
    %c0_i32_296 = arith.constant 0 : i32
    %c0_i32_297 = arith.constant 0 : i32
    %424 = tpu.memref_slice %arg1[%26, %c0_i32_297] : memref<32x32xf32, #tpu.memory_space<any>> -> memref<1x32xf32, #tpu.memory_space<any>>
    %c26_i32_298 = arith.constant 26 : i32
    %c0_i32_299 = arith.constant 0 : i32
    %425 = tpu.memref_slice %arg15[%c26_i32_298, %c0_i32_299] : memref<64x32xf32, #tpu.memory_space<vmem>> -> memref<1x32xf32, #tpu.memory_space<vmem>>
    %426 = tpu.memref_slice %arg19[%c0_i32_296] : memref<1x!tpu.dma_semaphore, #tpu.memory_space<semaphore_mem>> -> memref<1x!tpu.dma_semaphore, #tpu.memory_space<semaphore_mem>>
    %427 = tpu.memref_squeeze %426 : memref<1x!tpu.dma_semaphore, #tpu.memory_space<semaphore_mem>> -> memref<!tpu.dma_semaphore, #tpu.memory_space<semaphore_mem>>
    tpu.wait_dma2 semaphore(%427 : memref<!tpu.dma_semaphore, #tpu.memory_space<semaphore_mem>>) src(%424 : memref<1x32xf32, #tpu.memory_space<any>>) dst(%425 : memref<1x32xf32, #tpu.memory_space<vmem>>)
    %c0_i32_300 = arith.constant 0 : i32
    %c0_i32_301 = arith.constant 0 : i32
    %428 = tpu.memref_slice %arg1[%27, %c0_i32_301] : memref<32x32xf32, #tpu.memory_space<any>> -> memref<1x32xf32, #tpu.memory_space<any>>
    %c27_i32_302 = arith.constant 27 : i32
    %c0_i32_303 = arith.constant 0 : i32
    %429 = tpu.memref_slice %arg15[%c27_i32_302, %c0_i32_303] : memref<64x32xf32, #tpu.memory_space<vmem>> -> memref<1x32xf32, #tpu.memory_space<vmem>>
    %430 = tpu.memref_slice %arg19[%c0_i32_300] : memref<1x!tpu.dma_semaphore, #tpu.memory_space<semaphore_mem>> -> memref<1x!tpu.dma_semaphore, #tpu.memory_space<semaphore_mem>>
    %431 = tpu.memref_squeeze %430 : memref<1x!tpu.dma_semaphore, #tpu.memory_space<semaphore_mem>> -> memref<!tpu.dma_semaphore, #tpu.memory_space<semaphore_mem>>
    tpu.wait_dma2 semaphore(%431 : memref<!tpu.dma_semaphore, #tpu.memory_space<semaphore_mem>>) src(%428 : memref<1x32xf32, #tpu.memory_space<any>>) dst(%429 : memref<1x32xf32, #tpu.memory_space<vmem>>)
    %c0_i32_304 = arith.constant 0 : i32
    %c0_i32_305 = arith.constant 0 : i32
    %432 = tpu.memref_slice %arg1[%28, %c0_i32_305] : memref<32x32xf32, #tpu.memory_space<any>> -> memref<1x32xf32, #tpu.memory_space<any>>
    %c28_i32_306 = arith.constant 28 : i32
    %c0_i32_307 = arith.constant 0 : i32
    %433 = tpu.memref_slice %arg15[%c28_i32_306, %c0_i32_307] : memref<64x32xf32, #tpu.memory_space<vmem>> -> memref<1x32xf32, #tpu.memory_space<vmem>>
    %434 = tpu.memref_slice %arg19[%c0_i32_304] : memref<1x!tpu.dma_semaphore, #tpu.memory_space<semaphore_mem>> -> memref<1x!tpu.dma_semaphore, #tpu.memory_space<semaphore_mem>>
    %435 = tpu.memref_squeeze %434 : memref<1x!tpu.dma_semaphore, #tpu.memory_space<semaphore_mem>> -> memref<!tpu.dma_semaphore, #tpu.memory_space<semaphore_mem>>
    tpu.wait_dma2 semaphore(%435 : memref<!tpu.dma_semaphore, #tpu.memory_space<semaphore_mem>>) src(%432 : memref<1x32xf32, #tpu.memory_space<any>>) dst(%433 : memref<1x32xf32, #tpu.memory_space<vmem>>)
    %c0_i32_308 = arith.constant 0 : i32
    %c0_i32_309 = arith.constant 0 : i32
    %436 = tpu.memref_slice %arg1[%29, %c0_i32_309] : memref<32x32xf32, #tpu.memory_space<any>> -> memref<1x32xf32, #tpu.memory_space<any>>
    %c29_i32_310 = arith.constant 29 : i32
    %c0_i32_311 = arith.constant 0 : i32
    %437 = tpu.memref_slice %arg15[%c29_i32_310, %c0_i32_311] : memref<64x32xf32, #tpu.memory_space<vmem>> -> memref<1x32xf32, #tpu.memory_space<vmem>>
    %438 = tpu.memref_slice %arg19[%c0_i32_308] : memref<1x!tpu.dma_semaphore, #tpu.memory_space<semaphore_mem>> -> memref<1x!tpu.dma_semaphore, #tpu.memory_space<semaphore_mem>>
    %439 = tpu.memref_squeeze %438 : memref<1x!tpu.dma_semaphore, #tpu.memory_space<semaphore_mem>> -> memref<!tpu.dma_semaphore, #tpu.memory_space<semaphore_mem>>
    tpu.wait_dma2 semaphore(%439 : memref<!tpu.dma_semaphore, #tpu.memory_space<semaphore_mem>>) src(%436 : memref<1x32xf32, #tpu.memory_space<any>>) dst(%437 : memref<1x32xf32, #tpu.memory_space<vmem>>)
    %c0_i32_312 = arith.constant 0 : i32
    %c0_i32_313 = arith.constant 0 : i32
    %440 = tpu.memref_slice %arg1[%30, %c0_i32_313] : memref<32x32xf32, #tpu.memory_space<any>> -> memref<1x32xf32, #tpu.memory_space<any>>
    %c30_i32_314 = arith.constant 30 : i32
    %c0_i32_315 = arith.constant 0 : i32
    %441 = tpu.memref_slice %arg15[%c30_i32_314, %c0_i32_315] : memref<64x32xf32, #tpu.memory_space<vmem>> -> memref<1x32xf32, #tpu.memory_space<vmem>>
    %442 = tpu.memref_slice %arg19[%c0_i32_312] : memref<1x!tpu.dma_semaphore, #tpu.memory_space<semaphore_mem>> -> memref<1x!tpu.dma_semaphore, #tpu.memory_space<semaphore_mem>>
    %443 = tpu.memref_squeeze %442 : memref<1x!tpu.dma_semaphore, #tpu.memory_space<semaphore_mem>> -> memref<!tpu.dma_semaphore, #tpu.memory_space<semaphore_mem>>
    tpu.wait_dma2 semaphore(%443 : memref<!tpu.dma_semaphore, #tpu.memory_space<semaphore_mem>>) src(%440 : memref<1x32xf32, #tpu.memory_space<any>>) dst(%441 : memref<1x32xf32, #tpu.memory_space<vmem>>)
    %c0_i32_316 = arith.constant 0 : i32
    %c0_i32_317 = arith.constant 0 : i32
    %444 = tpu.memref_slice %arg1[%31, %c0_i32_317] : memref<32x32xf32, #tpu.memory_space<any>> -> memref<1x32xf32, #tpu.memory_space<any>>
    %c31_i32_318 = arith.constant 31 : i32
    %c0_i32_319 = arith.constant 0 : i32
    %445 = tpu.memref_slice %arg15[%c31_i32_318, %c0_i32_319] : memref<64x32xf32, #tpu.memory_space<vmem>> -> memref<1x32xf32, #tpu.memory_space<vmem>>
    %446 = tpu.memref_slice %arg19[%c0_i32_316] : memref<1x!tpu.dma_semaphore, #tpu.memory_space<semaphore_mem>> -> memref<1x!tpu.dma_semaphore, #tpu.memory_space<semaphore_mem>>
    %447 = tpu.memref_squeeze %446 : memref<1x!tpu.dma_semaphore, #tpu.memory_space<semaphore_mem>> -> memref<!tpu.dma_semaphore, #tpu.memory_space<semaphore_mem>>
    tpu.wait_dma2 semaphore(%447 : memref<!tpu.dma_semaphore, #tpu.memory_space<semaphore_mem>>) src(%444 : memref<1x32xf32, #tpu.memory_space<any>>) dst(%445 : memref<1x32xf32, #tpu.memory_space<vmem>>)
    %c0_i32_320 = arith.constant 0 : i32
    %c0_i32_321 = arith.constant 0 : i32
    %448 = tpu.memref_slice %arg1[%32, %c0_i32_321] : memref<32x32xf32, #tpu.memory_space<any>> -> memref<1x32xf32, #tpu.memory_space<any>>
    %c32_i32_322 = arith.constant 32 : i32
    %c0_i32_323 = arith.constant 0 : i32
    %449 = tpu.memref_slice %arg15[%c32_i32_322, %c0_i32_323] : memref<64x32xf32, #tpu.memory_space<vmem>> -> memref<1x32xf32, #tpu.memory_space<vmem>>
    %450 = tpu.memref_slice %arg19[%c0_i32_320] : memref<1x!tpu.dma_semaphore, #tpu.memory_space<semaphore_mem>> -> memref<1x!tpu.dma_semaphore, #tpu.memory_space<semaphore_mem>>
    %451 = tpu.memref_squeeze %450 : memref<1x!tpu.dma_semaphore, #tpu.memory_space<semaphore_mem>> -> memref<!tpu.dma_semaphore, #tpu.memory_space<semaphore_mem>>
    tpu.wait_dma2 semaphore(%451 : memref<!tpu.dma_semaphore, #tpu.memory_space<semaphore_mem>>) src(%448 : memref<1x32xf32, #tpu.memory_space<any>>) dst(%449 : memref<1x32xf32, #tpu.memory_space<vmem>>)
    %c0_i32_324 = arith.constant 0 : i32
    %c0_i32_325 = arith.constant 0 : i32
    %452 = tpu.memref_slice %arg1[%33, %c0_i32_325] : memref<32x32xf32, #tpu.memory_space<any>> -> memref<1x32xf32, #tpu.memory_space<any>>
    %c33_i32_326 = arith.constant 33 : i32
    %c0_i32_327 = arith.constant 0 : i32
    %453 = tpu.memref_slice %arg15[%c33_i32_326, %c0_i32_327] : memref<64x32xf32, #tpu.memory_space<vmem>> -> memref<1x32xf32, #tpu.memory_space<vmem>>
    %454 = tpu.memref_slice %arg19[%c0_i32_324] : memref<1x!tpu.dma_semaphore, #tpu.memory_space<semaphore_mem>> -> memref<1x!tpu.dma_semaphore, #tpu.memory_space<semaphore_mem>>
    %455 = tpu.memref_squeeze %454 : memref<1x!tpu.dma_semaphore, #tpu.memory_space<semaphore_mem>> -> memref<!tpu.dma_semaphore, #tpu.memory_space<semaphore_mem>>
    tpu.wait_dma2 semaphore(%455 : memref<!tpu.dma_semaphore, #tpu.memory_space<semaphore_mem>>) src(%452 : memref<1x32xf32, #tpu.memory_space<any>>) dst(%453 : memref<1x32xf32, #tpu.memory_space<vmem>>)
    %c0_i32_328 = arith.constant 0 : i32
    %c0_i32_329 = arith.constant 0 : i32
    %456 = tpu.memref_slice %arg1[%34, %c0_i32_329] : memref<32x32xf32, #tpu.memory_space<any>> -> memref<1x32xf32, #tpu.memory_space<any>>
    %c34_i32_330 = arith.constant 34 : i32
    %c0_i32_331 = arith.constant 0 : i32
    %457 = tpu.memref_slice %arg15[%c34_i32_330, %c0_i32_331] : memref<64x32xf32, #tpu.memory_space<vmem>> -> memref<1x32xf32, #tpu.memory_space<vmem>>
    %458 = tpu.memref_slice %arg19[%c0_i32_328] : memref<1x!tpu.dma_semaphore, #tpu.memory_space<semaphore_mem>> -> memref<1x!tpu.dma_semaphore, #tpu.memory_space<semaphore_mem>>
    %459 = tpu.memref_squeeze %458 : memref<1x!tpu.dma_semaphore, #tpu.memory_space<semaphore_mem>> -> memref<!tpu.dma_semaphore, #tpu.memory_space<semaphore_mem>>
    tpu.wait_dma2 semaphore(%459 : memref<!tpu.dma_semaphore, #tpu.memory_space<semaphore_mem>>) src(%456 : memref<1x32xf32, #tpu.memory_space<any>>) dst(%457 : memref<1x32xf32, #tpu.memory_space<vmem>>)
    %c0_i32_332 = arith.constant 0 : i32
    %c0_i32_333 = arith.constant 0 : i32
    %460 = tpu.memref_slice %arg1[%35, %c0_i32_333] : memref<32x32xf32, #tpu.memory_space<any>> -> memref<1x32xf32, #tpu.memory_space<any>>
    %c35_i32_334 = arith.constant 35 : i32
    %c0_i32_335 = arith.constant 0 : i32
    %461 = tpu.memref_slice %arg15[%c35_i32_334, %c0_i32_335] : memref<64x32xf32, #tpu.memory_space<vmem>> -> memref<1x32xf32, #tpu.memory_space<vmem>>
    %462 = tpu.memref_slice %arg19[%c0_i32_332] : memref<1x!tpu.dma_semaphore, #tpu.memory_space<semaphore_mem>> -> memref<1x!tpu.dma_semaphore, #tpu.memory_space<semaphore_mem>>
    %463 = tpu.memref_squeeze %462 : memref<1x!tpu.dma_semaphore, #tpu.memory_space<semaphore_mem>> -> memref<!tpu.dma_semaphore, #tpu.memory_space<semaphore_mem>>
    tpu.wait_dma2 semaphore(%463 : memref<!tpu.dma_semaphore, #tpu.memory_space<semaphore_mem>>) src(%460 : memref<1x32xf32, #tpu.memory_space<any>>) dst(%461 : memref<1x32xf32, #tpu.memory_space<vmem>>)
    %c0_i32_336 = arith.constant 0 : i32
    %c0_i32_337 = arith.constant 0 : i32
    %464 = tpu.memref_slice %arg1[%36, %c0_i32_337] : memref<32x32xf32, #tpu.memory_space<any>> -> memref<1x32xf32, #tpu.memory_space<any>>
    %c36_i32_338 = arith.constant 36 : i32
    %c0_i32_339 = arith.constant 0 : i32
    %465 = tpu.memref_slice %arg15[%c36_i32_338, %c0_i32_339] : memref<64x32xf32, #tpu.memory_space<vmem>> -> memref<1x32xf32, #tpu.memory_space<vmem>>
    %466 = tpu.memref_slice %arg19[%c0_i32_336] : memref<1x!tpu.dma_semaphore, #tpu.memory_space<semaphore_mem>> -> memref<1x!tpu.dma_semaphore, #tpu.memory_space<semaphore_mem>>
    %467 = tpu.memref_squeeze %466 : memref<1x!tpu.dma_semaphore, #tpu.memory_space<semaphore_mem>> -> memref<!tpu.dma_semaphore, #tpu.memory_space<semaphore_mem>>
    tpu.wait_dma2 semaphore(%467 : memref<!tpu.dma_semaphore, #tpu.memory_space<semaphore_mem>>) src(%464 : memref<1x32xf32, #tpu.memory_space<any>>) dst(%465 : memref<1x32xf32, #tpu.memory_space<vmem>>)
    %c0_i32_340 = arith.constant 0 : i32
    %c0_i32_341 = arith.constant 0 : i32
    %468 = tpu.memref_slice %arg1[%37, %c0_i32_341] : memref<32x32xf32, #tpu.memory_space<any>> -> memref<1x32xf32, #tpu.memory_space<any>>
    %c37_i32_342 = arith.constant 37 : i32
    %c0_i32_343 = arith.constant 0 : i32
    %469 = tpu.memref_slice %arg15[%c37_i32_342, %c0_i32_343] : memref<64x32xf32, #tpu.memory_space<vmem>> -> memref<1x32xf32, #tpu.memory_space<vmem>>
    %470 = tpu.memref_slice %arg19[%c0_i32_340] : memref<1x!tpu.dma_semaphore, #tpu.memory_space<semaphore_mem>> -> memref<1x!tpu.dma_semaphore, #tpu.memory_space<semaphore_mem>>
    %471 = tpu.memref_squeeze %470 : memref<1x!tpu.dma_semaphore, #tpu.memory_space<semaphore_mem>> -> memref<!tpu.dma_semaphore, #tpu.memory_space<semaphore_mem>>
    tpu.wait_dma2 semaphore(%471 : memref<!tpu.dma_semaphore, #tpu.memory_space<semaphore_mem>>) src(%468 : memref<1x32xf32, #tpu.memory_space<any>>) dst(%469 : memref<1x32xf32, #tpu.memory_space<vmem>>)
    %c0_i32_344 = arith.constant 0 : i32
    %c0_i32_345 = arith.constant 0 : i32
    %472 = tpu.memref_slice %arg1[%38, %c0_i32_345] : memref<32x32xf32, #tpu.memory_space<any>> -> memref<1x32xf32, #tpu.memory_space<any>>
    %c38_i32_346 = arith.constant 38 : i32
    %c0_i32_347 = arith.constant 0 : i32
    %473 = tpu.memref_slice %arg15[%c38_i32_346, %c0_i32_347] : memref<64x32xf32, #tpu.memory_space<vmem>> -> memref<1x32xf32, #tpu.memory_space<vmem>>
    %474 = tpu.memref_slice %arg19[%c0_i32_344] : memref<1x!tpu.dma_semaphore, #tpu.memory_space<semaphore_mem>> -> memref<1x!tpu.dma_semaphore, #tpu.memory_space<semaphore_mem>>
    %475 = tpu.memref_squeeze %474 : memref<1x!tpu.dma_semaphore, #tpu.memory_space<semaphore_mem>> -> memref<!tpu.dma_semaphore, #tpu.memory_space<semaphore_mem>>
    tpu.wait_dma2 semaphore(%475 : memref<!tpu.dma_semaphore, #tpu.memory_space<semaphore_mem>>) src(%472 : memref<1x32xf32, #tpu.memory_space<any>>) dst(%473 : memref<1x32xf32, #tpu.memory_space<vmem>>)
    %c0_i32_348 = arith.constant 0 : i32
    %c0_i32_349 = arith.constant 0 : i32
    %476 = tpu.memref_slice %arg1[%39, %c0_i32_349] : memref<32x32xf32, #tpu.memory_space<any>> -> memref<1x32xf32, #tpu.memory_space<any>>
    %c39_i32_350 = arith.constant 39 : i32
    %c0_i32_351 = arith.constant 0 : i32
    %477 = tpu.memref_slice %arg15[%c39_i32_350, %c0_i32_351] : memref<64x32xf32, #tpu.memory_space<vmem>> -> memref<1x32xf32, #tpu.memory_space<vmem>>
    %478 = tpu.memref_slice %arg19[%c0_i32_348] : memref<1x!tpu.dma_semaphore, #tpu.memory_space<semaphore_mem>> -> memref<1x!tpu.dma_semaphore, #tpu.memory_space<semaphore_mem>>
    %479 = tpu.memref_squeeze %478 : memref<1x!tpu.dma_semaphore, #tpu.memory_space<semaphore_mem>> -> memref<!tpu.dma_semaphore, #tpu.memory_space<semaphore_mem>>
    tpu.wait_dma2 semaphore(%479 : memref<!tpu.dma_semaphore, #tpu.memory_space<semaphore_mem>>) src(%476 : memref<1x32xf32, #tpu.memory_space<any>>) dst(%477 : memref<1x32xf32, #tpu.memory_space<vmem>>)
    %c0_i32_352 = arith.constant 0 : i32
    %c0_i32_353 = arith.constant 0 : i32
    %480 = tpu.memref_slice %arg1[%40, %c0_i32_353] : memref<32x32xf32, #tpu.memory_space<any>> -> memref<1x32xf32, #tpu.memory_space<any>>
    %c40_i32_354 = arith.constant 40 : i32
    %c0_i32_355 = arith.constant 0 : i32
    %481 = tpu.memref_slice %arg15[%c40_i32_354, %c0_i32_355] : memref<64x32xf32, #tpu.memory_space<vmem>> -> memref<1x32xf32, #tpu.memory_space<vmem>>
    %482 = tpu.memref_slice %arg19[%c0_i32_352] : memref<1x!tpu.dma_semaphore, #tpu.memory_space<semaphore_mem>> -> memref<1x!tpu.dma_semaphore, #tpu.memory_space<semaphore_mem>>
    %483 = tpu.memref_squeeze %482 : memref<1x!tpu.dma_semaphore, #tpu.memory_space<semaphore_mem>> -> memref<!tpu.dma_semaphore, #tpu.memory_space<semaphore_mem>>
    tpu.wait_dma2 semaphore(%483 : memref<!tpu.dma_semaphore, #tpu.memory_space<semaphore_mem>>) src(%480 : memref<1x32xf32, #tpu.memory_space<any>>) dst(%481 : memref<1x32xf32, #tpu.memory_space<vmem>>)
    %c0_i32_356 = arith.constant 0 : i32
    %c0_i32_357 = arith.constant 0 : i32
    %484 = tpu.memref_slice %arg1[%41, %c0_i32_357] : memref<32x32xf32, #tpu.memory_space<any>> -> memref<1x32xf32, #tpu.memory_space<any>>
    %c41_i32_358 = arith.constant 41 : i32
    %c0_i32_359 = arith.constant 0 : i32
    %485 = tpu.memref_slice %arg15[%c41_i32_358, %c0_i32_359] : memref<64x32xf32, #tpu.memory_space<vmem>> -> memref<1x32xf32, #tpu.memory_space<vmem>>
    %486 = tpu.memref_slice %arg19[%c0_i32_356] : memref<1x!tpu.dma_semaphore, #tpu.memory_space<semaphore_mem>> -> memref<1x!tpu.dma_semaphore, #tpu.memory_space<semaphore_mem>>
    %487 = tpu.memref_squeeze %486 : memref<1x!tpu.dma_semaphore, #tpu.memory_space<semaphore_mem>> -> memref<!tpu.dma_semaphore, #tpu.memory_space<semaphore_mem>>
    tpu.wait_dma2 semaphore(%487 : memref<!tpu.dma_semaphore, #tpu.memory_space<semaphore_mem>>) src(%484 : memref<1x32xf32, #tpu.memory_space<any>>) dst(%485 : memref<1x32xf32, #tpu.memory_space<vmem>>)
    %c0_i32_360 = arith.constant 0 : i32
    %c0_i32_361 = arith.constant 0 : i32
    %488 = tpu.memref_slice %arg1[%42, %c0_i32_361] : memref<32x32xf32, #tpu.memory_space<any>> -> memref<1x32xf32, #tpu.memory_space<any>>
    %c42_i32_362 = arith.constant 42 : i32
    %c0_i32_363 = arith.constant 0 : i32
    %489 = tpu.memref_slice %arg15[%c42_i32_362, %c0_i32_363] : memref<64x32xf32, #tpu.memory_space<vmem>> -> memref<1x32xf32, #tpu.memory_space<vmem>>
    %490 = tpu.memref_slice %arg19[%c0_i32_360] : memref<1x!tpu.dma_semaphore, #tpu.memory_space<semaphore_mem>> -> memref<1x!tpu.dma_semaphore, #tpu.memory_space<semaphore_mem>>
    %491 = tpu.memref_squeeze %490 : memref<1x!tpu.dma_semaphore, #tpu.memory_space<semaphore_mem>> -> memref<!tpu.dma_semaphore, #tpu.memory_space<semaphore_mem>>
    tpu.wait_dma2 semaphore(%491 : memref<!tpu.dma_semaphore, #tpu.memory_space<semaphore_mem>>) src(%488 : memref<1x32xf32, #tpu.memory_space<any>>) dst(%489 : memref<1x32xf32, #tpu.memory_space<vmem>>)
    %c0_i32_364 = arith.constant 0 : i32
    %c0_i32_365 = arith.constant 0 : i32
    %492 = tpu.memref_slice %arg1[%43, %c0_i32_365] : memref<32x32xf32, #tpu.memory_space<any>> -> memref<1x32xf32, #tpu.memory_space<any>>
    %c43_i32_366 = arith.constant 43 : i32
    %c0_i32_367 = arith.constant 0 : i32
    %493 = tpu.memref_slice %arg15[%c43_i32_366, %c0_i32_367] : memref<64x32xf32, #tpu.memory_space<vmem>> -> memref<1x32xf32, #tpu.memory_space<vmem>>
    %494 = tpu.memref_slice %arg19[%c0_i32_364] : memref<1x!tpu.dma_semaphore, #tpu.memory_space<semaphore_mem>> -> memref<1x!tpu.dma_semaphore, #tpu.memory_space<semaphore_mem>>
    %495 = tpu.memref_squeeze %494 : memref<1x!tpu.dma_semaphore, #tpu.memory_space<semaphore_mem>> -> memref<!tpu.dma_semaphore, #tpu.memory_space<semaphore_mem>>
    tpu.wait_dma2 semaphore(%495 : memref<!tpu.dma_semaphore, #tpu.memory_space<semaphore_mem>>) src(%492 : memref<1x32xf32, #tpu.memory_space<any>>) dst(%493 : memref<1x32xf32, #tpu.memory_space<vmem>>)
    %c0_i32_368 = arith.constant 0 : i32
    %c0_i32_369 = arith.constant 0 : i32
    %496 = tpu.memref_slice %arg1[%44, %c0_i32_369] : memref<32x32xf32, #tpu.memory_space<any>> -> memref<1x32xf32, #tpu.memory_space<any>>
    %c44_i32_370 = arith.constant 44 : i32
    %c0_i32_371 = arith.constant 0 : i32
    %497 = tpu.memref_slice %arg15[%c44_i32_370, %c0_i32_371] : memref<64x32xf32, #tpu.memory_space<vmem>> -> memref<1x32xf32, #tpu.memory_space<vmem>>
    %498 = tpu.memref_slice %arg19[%c0_i32_368] : memref<1x!tpu.dma_semaphore, #tpu.memory_space<semaphore_mem>> -> memref<1x!tpu.dma_semaphore, #tpu.memory_space<semaphore_mem>>
    %499 = tpu.memref_squeeze %498 : memref<1x!tpu.dma_semaphore, #tpu.memory_space<semaphore_mem>> -> memref<!tpu.dma_semaphore, #tpu.memory_space<semaphore_mem>>
    tpu.wait_dma2 semaphore(%499 : memref<!tpu.dma_semaphore, #tpu.memory_space<semaphore_mem>>) src(%496 : memref<1x32xf32, #tpu.memory_space<any>>) dst(%497 : memref<1x32xf32, #tpu.memory_space<vmem>>)
    %c0_i32_372 = arith.constant 0 : i32
    %c0_i32_373 = arith.constant 0 : i32
    %500 = tpu.memref_slice %arg1[%45, %c0_i32_373] : memref<32x32xf32, #tpu.memory_space<any>> -> memref<1x32xf32, #tpu.memory_space<any>>
    %c45_i32_374 = arith.constant 45 : i32
    %c0_i32_375 = arith.constant 0 : i32
    %501 = tpu.memref_slice %arg15[%c45_i32_374, %c0_i32_375] : memref<64x32xf32, #tpu.memory_space<vmem>> -> memref<1x32xf32, #tpu.memory_space<vmem>>
    %502 = tpu.memref_slice %arg19[%c0_i32_372] : memref<1x!tpu.dma_semaphore, #tpu.memory_space<semaphore_mem>> -> memref<1x!tpu.dma_semaphore, #tpu.memory_space<semaphore_mem>>
    %503 = tpu.memref_squeeze %502 : memref<1x!tpu.dma_semaphore, #tpu.memory_space<semaphore_mem>> -> memref<!tpu.dma_semaphore, #tpu.memory_space<semaphore_mem>>
    tpu.wait_dma2 semaphore(%503 : memref<!tpu.dma_semaphore, #tpu.memory_space<semaphore_mem>>) src(%500 : memref<1x32xf32, #tpu.memory_space<any>>) dst(%501 : memref<1x32xf32, #tpu.memory_space<vmem>>)
    %c0_i32_376 = arith.constant 0 : i32
    %c0_i32_377 = arith.constant 0 : i32
    %504 = tpu.memref_slice %arg1[%46, %c0_i32_377] : memref<32x32xf32, #tpu.memory_space<any>> -> memref<1x32xf32, #tpu.memory_space<any>>
    %c46_i32_378 = arith.constant 46 : i32
    %c0_i32_379 = arith.constant 0 : i32
    %505 = tpu.memref_slice %arg15[%c46_i32_378, %c0_i32_379] : memref<64x32xf32, #tpu.memory_space<vmem>> -> memref<1x32xf32, #tpu.memory_space<vmem>>
    %506 = tpu.memref_slice %arg19[%c0_i32_376] : memref<1x!tpu.dma_semaphore, #tpu.memory_space<semaphore_mem>> -> memref<1x!tpu.dma_semaphore, #tpu.memory_space<semaphore_mem>>
    %507 = tpu.memref_squeeze %506 : memref<1x!tpu.dma_semaphore, #tpu.memory_space<semaphore_mem>> -> memref<!tpu.dma_semaphore, #tpu.memory_space<semaphore_mem>>
    tpu.wait_dma2 semaphore(%507 : memref<!tpu.dma_semaphore, #tpu.memory_space<semaphore_mem>>) src(%504 : memref<1x32xf32, #tpu.memory_space<any>>) dst(%505 : memref<1x32xf32, #tpu.memory_space<vmem>>)
    %c0_i32_380 = arith.constant 0 : i32
    %c0_i32_381 = arith.constant 0 : i32
    %508 = tpu.memref_slice %arg1[%47, %c0_i32_381] : memref<32x32xf32, #tpu.memory_space<any>> -> memref<1x32xf32, #tpu.memory_space<any>>
    %c47_i32_382 = arith.constant 47 : i32
    %c0_i32_383 = arith.constant 0 : i32
    %509 = tpu.memref_slice %arg15[%c47_i32_382, %c0_i32_383] : memref<64x32xf32, #tpu.memory_space<vmem>> -> memref<1x32xf32, #tpu.memory_space<vmem>>
    %510 = tpu.memref_slice %arg19[%c0_i32_380] : memref<1x!tpu.dma_semaphore, #tpu.memory_space<semaphore_mem>> -> memref<1x!tpu.dma_semaphore, #tpu.memory_space<semaphore_mem>>
    %511 = tpu.memref_squeeze %510 : memref<1x!tpu.dma_semaphore, #tpu.memory_space<semaphore_mem>> -> memref<!tpu.dma_semaphore, #tpu.memory_space<semaphore_mem>>
    tpu.wait_dma2 semaphore(%511 : memref<!tpu.dma_semaphore, #tpu.memory_space<semaphore_mem>>) src(%508 : memref<1x32xf32, #tpu.memory_space<any>>) dst(%509 : memref<1x32xf32, #tpu.memory_space<vmem>>)
    %c0_i32_384 = arith.constant 0 : i32
    %c0_i32_385 = arith.constant 0 : i32
    %512 = tpu.memref_slice %arg1[%48, %c0_i32_385] : memref<32x32xf32, #tpu.memory_space<any>> -> memref<1x32xf32, #tpu.memory_space<any>>
    %c48_i32_386 = arith.constant 48 : i32
    %c0_i32_387 = arith.constant 0 : i32
    %513 = tpu.memref_slice %arg15[%c48_i32_386, %c0_i32_387] : memref<64x32xf32, #tpu.memory_space<vmem>> -> memref<1x32xf32, #tpu.memory_space<vmem>>
    %514 = tpu.memref_slice %arg19[%c0_i32_384] : memref<1x!tpu.dma_semaphore, #tpu.memory_space<semaphore_mem>> -> memref<1x!tpu.dma_semaphore, #tpu.memory_space<semaphore_mem>>
    %515 = tpu.memref_squeeze %514 : memref<1x!tpu.dma_semaphore, #tpu.memory_space<semaphore_mem>> -> memref<!tpu.dma_semaphore, #tpu.memory_space<semaphore_mem>>
    tpu.wait_dma2 semaphore(%515 : memref<!tpu.dma_semaphore, #tpu.memory_space<semaphore_mem>>) src(%512 : memref<1x32xf32, #tpu.memory_space<any>>) dst(%513 : memref<1x32xf32, #tpu.memory_space<vmem>>)
    %c0_i32_388 = arith.constant 0 : i32
    %c0_i32_389 = arith.constant 0 : i32
    %516 = tpu.memref_slice %arg1[%49, %c0_i32_389] : memref<32x32xf32, #tpu.memory_space<any>> -> memref<1x32xf32, #tpu.memory_space<any>>
    %c49_i32_390 = arith.constant 49 : i32
    %c0_i32_391 = arith.constant 0 : i32
    %517 = tpu.memref_slice %arg15[%c49_i32_390, %c0_i32_391] : memref<64x32xf32, #tpu.memory_space<vmem>> -> memref<1x32xf32, #tpu.memory_space<vmem>>
    %518 = tpu.memref_slice %arg19[%c0_i32_388] : memref<1x!tpu.dma_semaphore, #tpu.memory_space<semaphore_mem>> -> memref<1x!tpu.dma_semaphore, #tpu.memory_space<semaphore_mem>>
    %519 = tpu.memref_squeeze %518 : memref<1x!tpu.dma_semaphore, #tpu.memory_space<semaphore_mem>> -> memref<!tpu.dma_semaphore, #tpu.memory_space<semaphore_mem>>
    tpu.wait_dma2 semaphore(%519 : memref<!tpu.dma_semaphore, #tpu.memory_space<semaphore_mem>>) src(%516 : memref<1x32xf32, #tpu.memory_space<any>>) dst(%517 : memref<1x32xf32, #tpu.memory_space<vmem>>)
    %c0_i32_392 = arith.constant 0 : i32
    %c0_i32_393 = arith.constant 0 : i32
    %520 = tpu.memref_slice %arg1[%50, %c0_i32_393] : memref<32x32xf32, #tpu.memory_space<any>> -> memref<1x32xf32, #tpu.memory_space<any>>
    %c50_i32_394 = arith.constant 50 : i32
    %c0_i32_395 = arith.constant 0 : i32
    %521 = tpu.memref_slice %arg15[%c50_i32_394, %c0_i32_395] : memref<64x32xf32, #tpu.memory_space<vmem>> -> memref<1x32xf32, #tpu.memory_space<vmem>>
    %522 = tpu.memref_slice %arg19[%c0_i32_392] : memref<1x!tpu.dma_semaphore, #tpu.memory_space<semaphore_mem>> -> memref<1x!tpu.dma_semaphore, #tpu.memory_space<semaphore_mem>>
    %523 = tpu.memref_squeeze %522 : memref<1x!tpu.dma_semaphore, #tpu.memory_space<semaphore_mem>> -> memref<!tpu.dma_semaphore, #tpu.memory_space<semaphore_mem>>
    tpu.wait_dma2 semaphore(%523 : memref<!tpu.dma_semaphore, #tpu.memory_space<semaphore_mem>>) src(%520 : memref<1x32xf32, #tpu.memory_space<any>>) dst(%521 : memref<1x32xf32, #tpu.memory_space<vmem>>)
    %c0_i32_396 = arith.constant 0 : i32
    %c0_i32_397 = arith.constant 0 : i32
    %524 = tpu.memref_slice %arg1[%51, %c0_i32_397] : memref<32x32xf32, #tpu.memory_space<any>> -> memref<1x32xf32, #tpu.memory_space<any>>
    %c51_i32_398 = arith.constant 51 : i32
    %c0_i32_399 = arith.constant 0 : i32
    %525 = tpu.memref_slice %arg15[%c51_i32_398, %c0_i32_399] : memref<64x32xf32, #tpu.memory_space<vmem>> -> memref<1x32xf32, #tpu.memory_space<vmem>>
    %526 = tpu.memref_slice %arg19[%c0_i32_396] : memref<1x!tpu.dma_semaphore, #tpu.memory_space<semaphore_mem>> -> memref<1x!tpu.dma_semaphore, #tpu.memory_space<semaphore_mem>>
    %527 = tpu.memref_squeeze %526 : memref<1x!tpu.dma_semaphore, #tpu.memory_space<semaphore_mem>> -> memref<!tpu.dma_semaphore, #tpu.memory_space<semaphore_mem>>
    tpu.wait_dma2 semaphore(%527 : memref<!tpu.dma_semaphore, #tpu.memory_space<semaphore_mem>>) src(%524 : memref<1x32xf32, #tpu.memory_space<any>>) dst(%525 : memref<1x32xf32, #tpu.memory_space<vmem>>)
    %c0_i32_400 = arith.constant 0 : i32
    %c0_i32_401 = arith.constant 0 : i32
    %528 = tpu.memref_slice %arg1[%52, %c0_i32_401] : memref<32x32xf32, #tpu.memory_space<any>> -> memref<1x32xf32, #tpu.memory_space<any>>
    %c52_i32_402 = arith.constant 52 : i32
    %c0_i32_403 = arith.constant 0 : i32
    %529 = tpu.memref_slice %arg15[%c52_i32_402, %c0_i32_403] : memref<64x32xf32, #tpu.memory_space<vmem>> -> memref<1x32xf32, #tpu.memory_space<vmem>>
    %530 = tpu.memref_slice %arg19[%c0_i32_400] : memref<1x!tpu.dma_semaphore, #tpu.memory_space<semaphore_mem>> -> memref<1x!tpu.dma_semaphore, #tpu.memory_space<semaphore_mem>>
    %531 = tpu.memref_squeeze %530 : memref<1x!tpu.dma_semaphore, #tpu.memory_space<semaphore_mem>> -> memref<!tpu.dma_semaphore, #tpu.memory_space<semaphore_mem>>
    tpu.wait_dma2 semaphore(%531 : memref<!tpu.dma_semaphore, #tpu.memory_space<semaphore_mem>>) src(%528 : memref<1x32xf32, #tpu.memory_space<any>>) dst(%529 : memref<1x32xf32, #tpu.memory_space<vmem>>)
    %c0_i32_404 = arith.constant 0 : i32
    %c0_i32_405 = arith.constant 0 : i32
    %532 = tpu.memref_slice %arg1[%53, %c0_i32_405] : memref<32x32xf32, #tpu.memory_space<any>> -> memref<1x32xf32, #tpu.memory_space<any>>
    %c53_i32_406 = arith.constant 53 : i32
    %c0_i32_407 = arith.constant 0 : i32
    %533 = tpu.memref_slice %arg15[%c53_i32_406, %c0_i32_407] : memref<64x32xf32, #tpu.memory_space<vmem>> -> memref<1x32xf32, #tpu.memory_space<vmem>>
    %534 = tpu.memref_slice %arg19[%c0_i32_404] : memref<1x!tpu.dma_semaphore, #tpu.memory_space<semaphore_mem>> -> memref<1x!tpu.dma_semaphore, #tpu.memory_space<semaphore_mem>>
    %535 = tpu.memref_squeeze %534 : memref<1x!tpu.dma_semaphore, #tpu.memory_space<semaphore_mem>> -> memref<!tpu.dma_semaphore, #tpu.memory_space<semaphore_mem>>
    tpu.wait_dma2 semaphore(%535 : memref<!tpu.dma_semaphore, #tpu.memory_space<semaphore_mem>>) src(%532 : memref<1x32xf32, #tpu.memory_space<any>>) dst(%533 : memref<1x32xf32, #tpu.memory_space<vmem>>)
    %c0_i32_408 = arith.constant 0 : i32
    %c0_i32_409 = arith.constant 0 : i32
    %536 = tpu.memref_slice %arg1[%54, %c0_i32_409] : memref<32x32xf32, #tpu.memory_space<any>> -> memref<1x32xf32, #tpu.memory_space<any>>
    %c54_i32_410 = arith.constant 54 : i32
    %c0_i32_411 = arith.constant 0 : i32
    %537 = tpu.memref_slice %arg15[%c54_i32_410, %c0_i32_411] : memref<64x32xf32, #tpu.memory_space<vmem>> -> memref<1x32xf32, #tpu.memory_space<vmem>>
    %538 = tpu.memref_slice %arg19[%c0_i32_408] : memref<1x!tpu.dma_semaphore, #tpu.memory_space<semaphore_mem>> -> memref<1x!tpu.dma_semaphore, #tpu.memory_space<semaphore_mem>>
    %539 = tpu.memref_squeeze %538 : memref<1x!tpu.dma_semaphore, #tpu.memory_space<semaphore_mem>> -> memref<!tpu.dma_semaphore, #tpu.memory_space<semaphore_mem>>
    tpu.wait_dma2 semaphore(%539 : memref<!tpu.dma_semaphore, #tpu.memory_space<semaphore_mem>>) src(%536 : memref<1x32xf32, #tpu.memory_space<any>>) dst(%537 : memref<1x32xf32, #tpu.memory_space<vmem>>)
    %c0_i32_412 = arith.constant 0 : i32
    %c0_i32_413 = arith.constant 0 : i32
    %540 = tpu.memref_slice %arg1[%55, %c0_i32_413] : memref<32x32xf32, #tpu.memory_space<any>> -> memref<1x32xf32, #tpu.memory_space<any>>
    %c55_i32_414 = arith.constant 55 : i32
    %c0_i32_415 = arith.constant 0 : i32
    %541 = tpu.memref_slice %arg15[%c55_i32_414, %c0_i32_415] : memref<64x32xf32, #tpu.memory_space<vmem>> -> memref<1x32xf32, #tpu.memory_space<vmem>>
    %542 = tpu.memref_slice %arg19[%c0_i32_412] : memref<1x!tpu.dma_semaphore, #tpu.memory_space<semaphore_mem>> -> memref<1x!tpu.dma_semaphore, #tpu.memory_space<semaphore_mem>>
    %543 = tpu.memref_squeeze %542 : memref<1x!tpu.dma_semaphore, #tpu.memory_space<semaphore_mem>> -> memref<!tpu.dma_semaphore, #tpu.memory_space<semaphore_mem>>
    tpu.wait_dma2 semaphore(%543 : memref<!tpu.dma_semaphore, #tpu.memory_space<semaphore_mem>>) src(%540 : memref<1x32xf32, #tpu.memory_space<any>>) dst(%541 : memref<1x32xf32, #tpu.memory_space<vmem>>)
    %c0_i32_416 = arith.constant 0 : i32
    %c0_i32_417 = arith.constant 0 : i32
    %544 = tpu.memref_slice %arg1[%56, %c0_i32_417] : memref<32x32xf32, #tpu.memory_space<any>> -> memref<1x32xf32, #tpu.memory_space<any>>
    %c56_i32_418 = arith.constant 56 : i32
    %c0_i32_419 = arith.constant 0 : i32
    %545 = tpu.memref_slice %arg15[%c56_i32_418, %c0_i32_419] : memref<64x32xf32, #tpu.memory_space<vmem>> -> memref<1x32xf32, #tpu.memory_space<vmem>>
    %546 = tpu.memref_slice %arg19[%c0_i32_416] : memref<1x!tpu.dma_semaphore, #tpu.memory_space<semaphore_mem>> -> memref<1x!tpu.dma_semaphore, #tpu.memory_space<semaphore_mem>>
    %547 = tpu.memref_squeeze %546 : memref<1x!tpu.dma_semaphore, #tpu.memory_space<semaphore_mem>> -> memref<!tpu.dma_semaphore, #tpu.memory_space<semaphore_mem>>
    tpu.wait_dma2 semaphore(%547 : memref<!tpu.dma_semaphore, #tpu.memory_space<semaphore_mem>>) src(%544 : memref<1x32xf32, #tpu.memory_space<any>>) dst(%545 : memref<1x32xf32, #tpu.memory_space<vmem>>)
    %c0_i32_420 = arith.constant 0 : i32
    %c0_i32_421 = arith.constant 0 : i32
    %548 = tpu.memref_slice %arg1[%57, %c0_i32_421] : memref<32x32xf32, #tpu.memory_space<any>> -> memref<1x32xf32, #tpu.memory_space<any>>
    %c57_i32_422 = arith.constant 57 : i32
    %c0_i32_423 = arith.constant 0 : i32
    %549 = tpu.memref_slice %arg15[%c57_i32_422, %c0_i32_423] : memref<64x32xf32, #tpu.memory_space<vmem>> -> memref<1x32xf32, #tpu.memory_space<vmem>>
    %550 = tpu.memref_slice %arg19[%c0_i32_420] : memref<1x!tpu.dma_semaphore, #tpu.memory_space<semaphore_mem>> -> memref<1x!tpu.dma_semaphore, #tpu.memory_space<semaphore_mem>>
    %551 = tpu.memref_squeeze %550 : memref<1x!tpu.dma_semaphore, #tpu.memory_space<semaphore_mem>> -> memref<!tpu.dma_semaphore, #tpu.memory_space<semaphore_mem>>
    tpu.wait_dma2 semaphore(%551 : memref<!tpu.dma_semaphore, #tpu.memory_space<semaphore_mem>>) src(%548 : memref<1x32xf32, #tpu.memory_space<any>>) dst(%549 : memref<1x32xf32, #tpu.memory_space<vmem>>)
    %c0_i32_424 = arith.constant 0 : i32
    %c0_i32_425 = arith.constant 0 : i32
    %552 = tpu.memref_slice %arg1[%58, %c0_i32_425] : memref<32x32xf32, #tpu.memory_space<any>> -> memref<1x32xf32, #tpu.memory_space<any>>
    %c58_i32_426 = arith.constant 58 : i32
    %c0_i32_427 = arith.constant 0 : i32
    %553 = tpu.memref_slice %arg15[%c58_i32_426, %c0_i32_427] : memref<64x32xf32, #tpu.memory_space<vmem>> -> memref<1x32xf32, #tpu.memory_space<vmem>>
    %554 = tpu.memref_slice %arg19[%c0_i32_424] : memref<1x!tpu.dma_semaphore, #tpu.memory_space<semaphore_mem>> -> memref<1x!tpu.dma_semaphore, #tpu.memory_space<semaphore_mem>>
    %555 = tpu.memref_squeeze %554 : memref<1x!tpu.dma_semaphore, #tpu.memory_space<semaphore_mem>> -> memref<!tpu.dma_semaphore, #tpu.memory_space<semaphore_mem>>
    tpu.wait_dma2 semaphore(%555 : memref<!tpu.dma_semaphore, #tpu.memory_space<semaphore_mem>>) src(%552 : memref<1x32xf32, #tpu.memory_space<any>>) dst(%553 : memref<1x32xf32, #tpu.memory_space<vmem>>)
    %c0_i32_428 = arith.constant 0 : i32
    %c0_i32_429 = arith.constant 0 : i32
    %556 = tpu.memref_slice %arg1[%59, %c0_i32_429] : memref<32x32xf32, #tpu.memory_space<any>> -> memref<1x32xf32, #tpu.memory_space<any>>
    %c59_i32_430 = arith.constant 59 : i32
    %c0_i32_431 = arith.constant 0 : i32
    %557 = tpu.memref_slice %arg15[%c59_i32_430, %c0_i32_431] : memref<64x32xf32, #tpu.memory_space<vmem>> -> memref<1x32xf32, #tpu.memory_space<vmem>>
    %558 = tpu.memref_slice %arg19[%c0_i32_428] : memref<1x!tpu.dma_semaphore, #tpu.memory_space<semaphore_mem>> -> memref<1x!tpu.dma_semaphore, #tpu.memory_space<semaphore_mem>>
    %559 = tpu.memref_squeeze %558 : memref<1x!tpu.dma_semaphore, #tpu.memory_space<semaphore_mem>> -> memref<!tpu.dma_semaphore, #tpu.memory_space<semaphore_mem>>
    tpu.wait_dma2 semaphore(%559 : memref<!tpu.dma_semaphore, #tpu.memory_space<semaphore_mem>>) src(%556 : memref<1x32xf32, #tpu.memory_space<any>>) dst(%557 : memref<1x32xf32, #tpu.memory_space<vmem>>)
    %c0_i32_432 = arith.constant 0 : i32
    %c0_i32_433 = arith.constant 0 : i32
    %560 = tpu.memref_slice %arg1[%60, %c0_i32_433] : memref<32x32xf32, #tpu.memory_space<any>> -> memref<1x32xf32, #tpu.memory_space<any>>
    %c60_i32_434 = arith.constant 60 : i32
    %c0_i32_435 = arith.constant 0 : i32
    %561 = tpu.memref_slice %arg15[%c60_i32_434, %c0_i32_435] : memref<64x32xf32, #tpu.memory_space<vmem>> -> memref<1x32xf32, #tpu.memory_space<vmem>>
    %562 = tpu.memref_slice %arg19[%c0_i32_432] : memref<1x!tpu.dma_semaphore, #tpu.memory_space<semaphore_mem>> -> memref<1x!tpu.dma_semaphore, #tpu.memory_space<semaphore_mem>>
    %563 = tpu.memref_squeeze %562 : memref<1x!tpu.dma_semaphore, #tpu.memory_space<semaphore_mem>> -> memref<!tpu.dma_semaphore, #tpu.memory_space<semaphore_mem>>
    tpu.wait_dma2 semaphore(%563 : memref<!tpu.dma_semaphore, #tpu.memory_space<semaphore_mem>>) src(%560 : memref<1x32xf32, #tpu.memory_space<any>>) dst(%561 : memref<1x32xf32, #tpu.memory_space<vmem>>)
    %c0_i32_436 = arith.constant 0 : i32
    %c0_i32_437 = arith.constant 0 : i32
    %564 = tpu.memref_slice %arg1[%61, %c0_i32_437] : memref<32x32xf32, #tpu.memory_space<any>> -> memref<1x32xf32, #tpu.memory_space<any>>
    %c61_i32_438 = arith.constant 61 : i32
    %c0_i32_439 = arith.constant 0 : i32
    %565 = tpu.memref_slice %arg15[%c61_i32_438, %c0_i32_439] : memref<64x32xf32, #tpu.memory_space<vmem>> -> memref<1x32xf32, #tpu.memory_space<vmem>>
    %566 = tpu.memref_slice %arg19[%c0_i32_436] : memref<1x!tpu.dma_semaphore, #tpu.memory_space<semaphore_mem>> -> memref<1x!tpu.dma_semaphore, #tpu.memory_space<semaphore_mem>>
    %567 = tpu.memref_squeeze %566 : memref<1x!tpu.dma_semaphore, #tpu.memory_space<semaphore_mem>> -> memref<!tpu.dma_semaphore, #tpu.memory_space<semaphore_mem>>
    tpu.wait_dma2 semaphore(%567 : memref<!tpu.dma_semaphore, #tpu.memory_space<semaphore_mem>>) src(%564 : memref<1x32xf32, #tpu.memory_space<any>>) dst(%565 : memref<1x32xf32, #tpu.memory_space<vmem>>)
    %c0_i32_440 = arith.constant 0 : i32
    %c0_i32_441 = arith.constant 0 : i32
    %568 = tpu.memref_slice %arg1[%62, %c0_i32_441] : memref<32x32xf32, #tpu.memory_space<any>> -> memref<1x32xf32, #tpu.memory_space<any>>
    %c62_i32_442 = arith.constant 62 : i32
    %c0_i32_443 = arith.constant 0 : i32
    %569 = tpu.memref_slice %arg15[%c62_i32_442, %c0_i32_443] : memref<64x32xf32, #tpu.memory_space<vmem>> -> memref<1x32xf32, #tpu.memory_space<vmem>>
    %570 = tpu.memref_slice %arg19[%c0_i32_440] : memref<1x!tpu.dma_semaphore, #tpu.memory_space<semaphore_mem>> -> memref<1x!tpu.dma_semaphore, #tpu.memory_space<semaphore_mem>>
    %571 = tpu.memref_squeeze %570 : memref<1x!tpu.dma_semaphore, #tpu.memory_space<semaphore_mem>> -> memref<!tpu.dma_semaphore, #tpu.memory_space<semaphore_mem>>
    tpu.wait_dma2 semaphore(%571 : memref<!tpu.dma_semaphore, #tpu.memory_space<semaphore_mem>>) src(%568 : memref<1x32xf32, #tpu.memory_space<any>>) dst(%569 : memref<1x32xf32, #tpu.memory_space<vmem>>)
    %c0_i32_444 = arith.constant 0 : i32
    %c0_i32_445 = arith.constant 0 : i32
    %572 = tpu.memref_slice %arg1[%63, %c0_i32_445] : memref<32x32xf32, #tpu.memory_space<any>> -> memref<1x32xf32, #tpu.memory_space<any>>
    %c63_i32_446 = arith.constant 63 : i32
    %c0_i32_447 = arith.constant 0 : i32
    %573 = tpu.memref_slice %arg15[%c63_i32_446, %c0_i32_447] : memref<64x32xf32, #tpu.memory_space<vmem>> -> memref<1x32xf32, #tpu.memory_space<vmem>>
    %574 = tpu.memref_slice %arg19[%c0_i32_444] : memref<1x!tpu.dma_semaphore, #tpu.memory_space<semaphore_mem>> -> memref<1x!tpu.dma_semaphore, #tpu.memory_space<semaphore_mem>>
    %575 = tpu.memref_squeeze %574 : memref<1x!tpu.dma_semaphore, #tpu.memory_space<semaphore_mem>> -> memref<!tpu.dma_semaphore, #tpu.memory_space<semaphore_mem>>
    tpu.wait_dma2 semaphore(%575 : memref<!tpu.dma_semaphore, #tpu.memory_space<semaphore_mem>>) src(%572 : memref<1x32xf32, #tpu.memory_space<any>>) dst(%573 : memref<1x32xf32, #tpu.memory_space<vmem>>)
    %c0_448 = arith.constant 0 : index
    %c0_449 = arith.constant 0 : index
    %576 = vector.load %arg15[%c0_448, %c0_449] : memref<64x32xf32, #tpu.memory_space<vmem>>, vector<64x32xf32>
    %577 = vector.extract_strided_slice %576 {offsets = [56, 0], sizes = [8, 32], strides = [1, 1]} : vector<64x32xf32> to vector<8x32xf32>
    %c0_450 = arith.constant 0 : index
    %c0_451 = arith.constant 0 : index
    %578 = vector.load %arg16[%c0_450, %c0_451] : memref<64x32xf32, #tpu.memory_space<vmem>>, vector<8x32xf32>
    tpu.vector_store %arg16[%c0_450, %c0_451], %577 {strides = array<i32>} : memref<64x32xf32, #tpu.memory_space<vmem>>, vector<8x32xf32>,
    %579 = vector.extract_strided_slice %576 {offsets = [48, 0], sizes = [8, 32], strides = [1, 1]} : vector<64x32xf32> to vector<8x32xf32>
    %c8_452 = arith.constant 8 : index
    %c0_453 = arith.constant 0 : index
    %580 = vector.load %arg16[%c8_452, %c0_453] : memref<64x32xf32, #tpu.memory_space<vmem>>, vector<8x32xf32>
    tpu.vector_store %arg16[%c8_452, %c0_453], %579 {strides = array<i32>} : memref<64x32xf32, #tpu.memory_space<vmem>>, vector<8x32xf32>,
    %581 = vector.extract_strided_slice %576 {offsets = [40, 0], sizes = [8, 32], strides = [1, 1]} : vector<64x32xf32> to vector<8x32xf32>
    %c16_454 = arith.constant 16 : index
    %c0_455 = arith.constant 0 : index
    %582 = vector.load %arg16[%c16_454, %c0_455] : memref<64x32xf32, #tpu.memory_space<vmem>>, vector<8x32xf32>
    tpu.vector_store %arg16[%c16_454, %c0_455], %581 {strides = array<i32>} : memref<64x32xf32, #tpu.memory_space<vmem>>, vector<8x32xf32>,
    %583 = vector.extract_strided_slice %576 {offsets = [32, 0], sizes = [8, 32], strides = [1, 1]} : vector<64x32xf32> to vector<8x32xf32>
    %c24_456 = arith.constant 24 : index
    %c0_457 = arith.constant 0 : index
    %584 = vector.load %arg16[%c24_456, %c0_457] : memref<64x32xf32, #tpu.memory_space<vmem>>, vector<8x32xf32>
    tpu.vector_store %arg16[%c24_456, %c0_457], %583 {strides = array<i32>} : memref<64x32xf32, #tpu.memory_space<vmem>>, vector<8x32xf32>,
    %585 = vector.extract_strided_slice %576 {offsets = [24, 0], sizes = [8, 32], strides = [1, 1]} : vector<64x32xf32> to vector<8x32xf32>
    %c32_458 = arith.constant 32 : index
    %c0_459 = arith.constant 0 : index
    %586 = vector.load %arg16[%c32_458, %c0_459] : memref<64x32xf32, #tpu.memory_space<vmem>>, vector<8x32xf32>
    tpu.vector_store %arg16[%c32_458, %c0_459], %585 {strides = array<i32>} : memref<64x32xf32, #tpu.memory_space<vmem>>, vector<8x32xf32>,
    %587 = vector.extract_strided_slice %576 {offsets = [16, 0], sizes = [8, 32], strides = [1, 1]} : vector<64x32xf32> to vector<8x32xf32>
    %c40_460 = arith.constant 40 : index
    %c0_461 = arith.constant 0 : index
    %588 = vector.load %arg16[%c40_460, %c0_461] : memref<64x32xf32, #tpu.memory_space<vmem>>, vector<8x32xf32>
    tpu.vector_store %arg16[%c40_460, %c0_461], %587 {strides = array<i32>} : memref<64x32xf32, #tpu.memory_space<vmem>>, vector<8x32xf32>,
    %589 = vector.extract_strided_slice %576 {offsets = [8, 0], sizes = [8, 32], strides = [1, 1]} : vector<64x32xf32> to vector<8x32xf32>
    %c48_462 = arith.constant 48 : index
    %c0_463 = arith.constant 0 : index
    %590 = vector.load %arg16[%c48_462, %c0_463] : memref<64x32xf32, #tpu.memory_space<vmem>>, vector<8x32xf32>
    tpu.vector_store %arg16[%c48_462, %c0_463], %589 {strides = array<i32>} : memref<64x32xf32, #tpu.memory_space<vmem>>, vector<8x32xf32>,
    %591 = vector.extract_strided_slice %576 {offsets = [0, 0], sizes = [8, 32], strides = [1, 1]} : vector<64x32xf32> to vector<8x32xf32>
    %c56_464 = arith.constant 56 : index
    %c0_465 = arith.constant 0 : index
    %592 = vector.load %arg16[%c56_464, %c0_465] : memref<64x32xf32, #tpu.memory_space<vmem>>, vector<8x32xf32>
    tpu.vector_store %arg16[%c56_464, %c0_465], %591 {strides = array<i32>} : memref<64x32xf32, #tpu.memory_space<vmem>>, vector<8x32xf32>,
    %593 = tpu.iota {dimensions = array<i32: 1>} : vector<8x128xi32>
    %c64_i32 = arith.constant 64 : i32
    %594 = vector.broadcast %c64_i32 : i32 to vector<8x128xi32>
    %595 = arith.cmpi sge, %593, %594 : vector<8x128xi32>
    %c96_i32 = arith.constant 96 : i32
    %596 = vector.broadcast %c96_i32 : i32 to vector<8x128xi32>
    %597 = arith.cmpi slt, %593, %596 : vector<8x128xi32>
    %598 = arith.andi %595, %597 : vector<8x128xi1>
    %c0_466 = arith.constant 0 : index
    %c0_467 = arith.constant 0 : index
    %599 = vector.load %arg16[%c0_466, %c0_467] : memref<64x32xf32, #tpu.memory_space<vmem>>, vector<64x32xf32>
    %c0_468 = arith.constant 0 : index
    %c0_469 = arith.constant 0 : index
    %600 = vector.load %arg2[%c0_468, %c0_469] : memref<32x128xf32, #tpu.memory_space<vmem>>, vector<32x128xf32>
    %cst = arith.constant dense<0.000000e+00> : vector<64x128xf32>
    %601 = tpu.matmul %576, %600, %cst {dimension_numbers = #tpu.dot_dimension_numbers<[1], [0], [0], [1], [0, 0, 1, 1], [], []>} : vector<64x32xf32>, vector<32x128xf32>, vector<64x128xf32> -> vector<64x128xf32>
    %c0_470 = arith.constant 0 : index
    %c0_471 = arith.constant 0 : index
    %602 = vector.load %arg3[%c0_470, %c0_471] : memref<32x128xf32, #tpu.memory_space<vmem>>, vector<32x128xf32>
    %cst_472 = arith.constant dense<0.000000e+00> : vector<64x128xf32>
    %603 = tpu.matmul %599, %602, %cst_472 {dimension_numbers = #tpu.dot_dimension_numbers<[1], [0], [0], [1], [0, 0, 1, 1], [], []>} : vector<64x32xf32>, vector<32x128xf32>, vector<64x128xf32> -> vector<64x128xf32>
    %604 = arith.addf %601, %603 : vector<64x128xf32>
    %c0_473 = arith.constant 0 : index
    %c0_474 = arith.constant 0 : index
    %605 = vector.load %arg5[%c0_473, %c0_474] : memref<1x128xf32, #tpu.memory_space<vmem>>, vector<1x128xf32>
    %606 = vector.broadcast %605 : vector<1x128xf32> to vector<64x128xf32>
    %607 = arith.addf %604, %606 : vector<64x128xf32>
    %c0_475 = arith.constant 0 : index
    %c0_476 = arith.constant 0 : index
    %608 = vector.load %arg4[%c0_475, %c0_476] : memref<32x128xf32, #tpu.memory_space<vmem>>, vector<32x128xf32>
    %cst_477 = arith.constant 0.000000e+00 : f32
    %609 = vector.broadcast %cst_477 : f32 to vector<8x32xf32>
    %cst_478 = arith.constant 0.000000e+00 : f32
    %610 = vector.broadcast %cst_478 : f32 to vector<8x32xf32>
    %611 = vector.extract_strided_slice %607 {offsets = [0, 0], sizes = [8, 128], strides = [1, 1]} : vector<64x128xf32> to vector<8x128xf32>
    %cst_479 = arith.constant dense<0.000000e+00> : vector<8x128xf32>
    %612 = tpu.matmul %609, %608, %cst_479 {dimension_numbers = #tpu.dot_dimension_numbers<[1], [0], [0], [1], [0, 0, 1, 1], [], []>} : vector<8x32xf32>, vector<32x128xf32>, vector<8x128xf32> -> vector<8x128xf32>
    %613 = arith.addf %611, %612 : vector<8x128xf32>
    %614 = math.tanh %613 : vector<8x128xf32>
    %615 = arith.negf %613 : vector<8x128xf32>
    %616 = math.exp %615 : vector<8x128xf32>
    %cst_480 = arith.constant 1.000000e+00 : f32
    %617 = vector.broadcast %cst_480 : f32 to vector<8x128xf32>
    %618 = arith.addf %617, %616 : vector<8x128xf32>
    %619 = arith.divf %617, %618 : vector<8x128xf32>
    %620 = arith.select %598, %614, %619 : vector<8x128xi1>, vector<8x128xf32>
    %621 = vector.extract_strided_slice %620 {offsets = [0, 0], sizes = [8, 32], strides = [1, 1]} : vector<8x128xf32> to vector<8x32xf32>
    %622 = vector.extract_strided_slice %620 {offsets = [0, 32], sizes = [8, 32], strides = [1, 1]} : vector<8x128xf32> to vector<8x32xf32>
    %623 = vector.extract_strided_slice %620 {offsets = [0, 64], sizes = [8, 32], strides = [1, 1]} : vector<8x128xf32> to vector<8x32xf32>
    %624 = vector.extract_strided_slice %620 {offsets = [0, 96], sizes = [8, 32], strides = [1, 1]} : vector<8x128xf32> to vector<8x32xf32>
    %625 = arith.mulf %622, %610 : vector<8x32xf32>
    %626 = arith.mulf %621, %623 : vector<8x32xf32>
    %627 = arith.addf %625, %626 : vector<8x32xf32>
    %628 = math.tanh %627 : vector<8x32xf32>
    %629 = arith.mulf %624, %628 : vector<8x32xf32>
    %c0_481 = arith.constant 0 : index
    %c0_482 = arith.constant 0 : index
    %630 = vector.load %arg17[%c0_481, %c0_482] : memref<64x32xf32, #tpu.memory_space<vmem>>, vector<8x32xf32>
    tpu.vector_store %arg17[%c0_481, %c0_482], %629 {strides = array<i32>} : memref<64x32xf32, #tpu.memory_space<vmem>>, vector<8x32xf32>,
    %c56_483 = arith.constant 56 : index
    %c0_484 = arith.constant 0 : index
    %631 = vector.load %arg18[%c56_483, %c0_484] : memref<64x32xf32, #tpu.memory_space<vmem>>, vector<8x32xf32>
    tpu.vector_store %arg18[%c56_483, %c0_484], %629 {strides = array<i32>} : memref<64x32xf32, #tpu.memory_space<vmem>>, vector<8x32xf32>,
    %632 = vector.extract_strided_slice %607 {offsets = [8, 0], sizes = [8, 128], strides = [1, 1]} : vector<64x128xf32> to vector<8x128xf32>
    %cst_485 = arith.constant dense<0.000000e+00> : vector<8x128xf32>
    %633 = tpu.matmul %629, %608, %cst_485 {dimension_numbers = #tpu.dot_dimension_numbers<[1], [0], [0], [1], [0, 0, 1, 1], [], []>} : vector<8x32xf32>, vector<32x128xf32>, vector<8x128xf32> -> vector<8x128xf32>
    %634 = arith.addf %632, %633 : vector<8x128xf32>
    %635 = math.tanh %634 : vector<8x128xf32>
    %636 = arith.negf %634 : vector<8x128xf32>
    %637 = math.exp %636 : vector<8x128xf32>
    %cst_486 = arith.constant 1.000000e+00 : f32
    %638 = vector.broadcast %cst_486 : f32 to vector<8x128xf32>
    %639 = arith.addf %638, %637 : vector<8x128xf32>
    %640 = arith.divf %638, %639 : vector<8x128xf32>
    %641 = arith.select %598, %635, %640 : vector<8x128xi1>, vector<8x128xf32>
    %642 = vector.extract_strided_slice %641 {offsets = [0, 0], sizes = [8, 32], strides = [1, 1]} : vector<8x128xf32> to vector<8x32xf32>
    %643 = vector.extract_strided_slice %641 {offsets = [0, 32], sizes = [8, 32], strides = [1, 1]} : vector<8x128xf32> to vector<8x32xf32>
    %644 = vector.extract_strided_slice %641 {offsets = [0, 64], sizes = [8, 32], strides = [1, 1]} : vector<8x128xf32> to vector<8x32xf32>
    %645 = vector.extract_strided_slice %641 {offsets = [0, 96], sizes = [8, 32], strides = [1, 1]} : vector<8x128xf32> to vector<8x32xf32>
    %646 = arith.mulf %643, %627 : vector<8x32xf32>
    %647 = arith.mulf %642, %644 : vector<8x32xf32>
    %648 = arith.addf %646, %647 : vector<8x32xf32>
    %649 = math.tanh %648 : vector<8x32xf32>
    %650 = arith.mulf %645, %649 : vector<8x32xf32>
    %c8_487 = arith.constant 8 : index
    %c0_488 = arith.constant 0 : index
    %651 = vector.load %arg17[%c8_487, %c0_488] : memref<64x32xf32, #tpu.memory_space<vmem>>, vector<8x32xf32>
    tpu.vector_store %arg17[%c8_487, %c0_488], %650 {strides = array<i32>} : memref<64x32xf32, #tpu.memory_space<vmem>>, vector<8x32xf32>,
    %c48_489 = arith.constant 48 : index
    %c0_490 = arith.constant 0 : index
    %652 = vector.load %arg18[%c48_489, %c0_490] : memref<64x32xf32, #tpu.memory_space<vmem>>, vector<8x32xf32>
    tpu.vector_store %arg18[%c48_489, %c0_490], %650 {strides = array<i32>} : memref<64x32xf32, #tpu.memory_space<vmem>>, vector<8x32xf32>,
    %653 = vector.extract_strided_slice %607 {offsets = [16, 0], sizes = [8, 128], strides = [1, 1]} : vector<64x128xf32> to vector<8x128xf32>
    %cst_491 = arith.constant dense<0.000000e+00> : vector<8x128xf32>
    %654 = tpu.matmul %650, %608, %cst_491 {dimension_numbers = #tpu.dot_dimension_numbers<[1], [0], [0], [1], [0, 0, 1, 1], [], []>} : vector<8x32xf32>, vector<32x128xf32>, vector<8x128xf32> -> vector<8x128xf32>
    %655 = arith.addf %653, %654 : vector<8x128xf32>
    %656 = math.tanh %655 : vector<8x128xf32>
    %657 = arith.negf %655 : vector<8x128xf32>
    %658 = math.exp %657 : vector<8x128xf32>
    %cst_492 = arith.constant 1.000000e+00 : f32
    %659 = vector.broadcast %cst_492 : f32 to vector<8x128xf32>
    %660 = arith.addf %659, %658 : vector<8x128xf32>
    %661 = arith.divf %659, %660 : vector<8x128xf32>
    %662 = arith.select %598, %656, %661 : vector<8x128xi1>, vector<8x128xf32>
    %663 = vector.extract_strided_slice %662 {offsets = [0, 0], sizes = [8, 32], strides = [1, 1]} : vector<8x128xf32> to vector<8x32xf32>
    %664 = vector.extract_strided_slice %662 {offsets = [0, 32], sizes = [8, 32], strides = [1, 1]} : vector<8x128xf32> to vector<8x32xf32>
    %665 = vector.extract_strided_slice %662 {offsets = [0, 64], sizes = [8, 32], strides = [1, 1]} : vector<8x128xf32> to vector<8x32xf32>
    %666 = vector.extract_strided_slice %662 {offsets = [0, 96], sizes = [8, 32], strides = [1, 1]} : vector<8x128xf32> to vector<8x32xf32>
    %667 = arith.mulf %664, %648 : vector<8x32xf32>
    %668 = arith.mulf %663, %665 : vector<8x32xf32>
    %669 = arith.addf %667, %668 : vector<8x32xf32>
    %670 = math.tanh %669 : vector<8x32xf32>
    %671 = arith.mulf %666, %670 : vector<8x32xf32>
    %c16_493 = arith.constant 16 : index
    %c0_494 = arith.constant 0 : index
    %672 = vector.load %arg17[%c16_493, %c0_494] : memref<64x32xf32, #tpu.memory_space<vmem>>, vector<8x32xf32>
    tpu.vector_store %arg17[%c16_493, %c0_494], %671 {strides = array<i32>} : memref<64x32xf32, #tpu.memory_space<vmem>>, vector<8x32xf32>,
    %c40_495 = arith.constant 40 : index
    %c0_496 = arith.constant 0 : index
    %673 = vector.load %arg18[%c40_495, %c0_496] : memref<64x32xf32, #tpu.memory_space<vmem>>, vector<8x32xf32>
    tpu.vector_store %arg18[%c40_495, %c0_496], %671 {strides = array<i32>} : memref<64x32xf32, #tpu.memory_space<vmem>>, vector<8x32xf32>,
    %674 = vector.extract_strided_slice %607 {offsets = [24, 0], sizes = [8, 128], strides = [1, 1]} : vector<64x128xf32> to vector<8x128xf32>
    %cst_497 = arith.constant dense<0.000000e+00> : vector<8x128xf32>
    %675 = tpu.matmul %671, %608, %cst_497 {dimension_numbers = #tpu.dot_dimension_numbers<[1], [0], [0], [1], [0, 0, 1, 1], [], []>} : vector<8x32xf32>, vector<32x128xf32>, vector<8x128xf32> -> vector<8x128xf32>
    %676 = arith.addf %674, %675 : vector<8x128xf32>
    %677 = math.tanh %676 : vector<8x128xf32>
    %678 = arith.negf %676 : vector<8x128xf32>
    %679 = math.exp %678 : vector<8x128xf32>
    %cst_498 = arith.constant 1.000000e+00 : f32
    %680 = vector.broadcast %cst_498 : f32 to vector<8x128xf32>
    %681 = arith.addf %680, %679 : vector<8x128xf32>
    %682 = arith.divf %680, %681 : vector<8x128xf32>
    %683 = arith.select %598, %677, %682 : vector<8x128xi1>, vector<8x128xf32>
    %684 = vector.extract_strided_slice %683 {offsets = [0, 0], sizes = [8, 32], strides = [1, 1]} : vector<8x128xf32> to vector<8x32xf32>
    %685 = vector.extract_strided_slice %683 {offsets = [0, 32], sizes = [8, 32], strides = [1, 1]} : vector<8x128xf32> to vector<8x32xf32>
    %686 = vector.extract_strided_slice %683 {offsets = [0, 64], sizes = [8, 32], strides = [1, 1]} : vector<8x128xf32> to vector<8x32xf32>
    %687 = vector.extract_strided_slice %683 {offsets = [0, 96], sizes = [8, 32], strides = [1, 1]} : vector<8x128xf32> to vector<8x32xf32>
    %688 = arith.mulf %685, %669 : vector<8x32xf32>
    %689 = arith.mulf %684, %686 : vector<8x32xf32>
    %690 = arith.addf %688, %689 : vector<8x32xf32>
    %691 = math.tanh %690 : vector<8x32xf32>
    %692 = arith.mulf %687, %691 : vector<8x32xf32>
    %c24_499 = arith.constant 24 : index
    %c0_500 = arith.constant 0 : index
    %693 = vector.load %arg17[%c24_499, %c0_500] : memref<64x32xf32, #tpu.memory_space<vmem>>, vector<8x32xf32>
    tpu.vector_store %arg17[%c24_499, %c0_500], %692 {strides = array<i32>} : memref<64x32xf32, #tpu.memory_space<vmem>>, vector<8x32xf32>,
    %c32_501 = arith.constant 32 : index
    %c0_502 = arith.constant 0 : index
    %694 = vector.load %arg18[%c32_501, %c0_502] : memref<64x32xf32, #tpu.memory_space<vmem>>, vector<8x32xf32>
    tpu.vector_store %arg18[%c32_501, %c0_502], %692 {strides = array<i32>} : memref<64x32xf32, #tpu.memory_space<vmem>>, vector<8x32xf32>,
    %695 = vector.extract_strided_slice %607 {offsets = [32, 0], sizes = [8, 128], strides = [1, 1]} : vector<64x128xf32> to vector<8x128xf32>
    %cst_503 = arith.constant dense<0.000000e+00> : vector<8x128xf32>
    %696 = tpu.matmul %692, %608, %cst_503 {dimension_numbers = #tpu.dot_dimension_numbers<[1], [0], [0], [1], [0, 0, 1, 1], [], []>} : vector<8x32xf32>, vector<32x128xf32>, vector<8x128xf32> -> vector<8x128xf32>
    %697 = arith.addf %695, %696 : vector<8x128xf32>
    %698 = math.tanh %697 : vector<8x128xf32>
    %699 = arith.negf %697 : vector<8x128xf32>
    %700 = math.exp %699 : vector<8x128xf32>
    %cst_504 = arith.constant 1.000000e+00 : f32
    %701 = vector.broadcast %cst_504 : f32 to vector<8x128xf32>
    %702 = arith.addf %701, %700 : vector<8x128xf32>
    %703 = arith.divf %701, %702 : vector<8x128xf32>
    %704 = arith.select %598, %698, %703 : vector<8x128xi1>, vector<8x128xf32>
    %705 = vector.extract_strided_slice %704 {offsets = [0, 0], sizes = [8, 32], strides = [1, 1]} : vector<8x128xf32> to vector<8x32xf32>
    %706 = vector.extract_strided_slice %704 {offsets = [0, 32], sizes = [8, 32], strides = [1, 1]} : vector<8x128xf32> to vector<8x32xf32>
    %707 = vector.extract_strided_slice %704 {offsets = [0, 64], sizes = [8, 32], strides = [1, 1]} : vector<8x128xf32> to vector<8x32xf32>
    %708 = vector.extract_strided_slice %704 {offsets = [0, 96], sizes = [8, 32], strides = [1, 1]} : vector<8x128xf32> to vector<8x32xf32>
    %709 = arith.mulf %706, %690 : vector<8x32xf32>
    %710 = arith.mulf %705, %707 : vector<8x32xf32>
    %711 = arith.addf %709, %710 : vector<8x32xf32>
    %712 = math.tanh %711 : vector<8x32xf32>
    %713 = arith.mulf %708, %712 : vector<8x32xf32>
    %c32_505 = arith.constant 32 : index
    %c0_506 = arith.constant 0 : index
    %714 = vector.load %arg17[%c32_505, %c0_506] : memref<64x32xf32, #tpu.memory_space<vmem>>, vector<8x32xf32>
    tpu.vector_store %arg17[%c32_505, %c0_506], %713 {strides = array<i32>} : memref<64x32xf32, #tpu.memory_space<vmem>>, vector<8x32xf32>,
    %c24_507 = arith.constant 24 : index
    %c0_508 = arith.constant 0 : index
    %715 = vector.load %arg18[%c24_507, %c0_508] : memref<64x32xf32, #tpu.memory_space<vmem>>, vector<8x32xf32>
    tpu.vector_store %arg18[%c24_507, %c0_508], %713 {strides = array<i32>} : memref<64x32xf32, #tpu.memory_space<vmem>>, vector<8x32xf32>,
    %716 = vector.extract_strided_slice %607 {offsets = [40, 0], sizes = [8, 128], strides = [1, 1]} : vector<64x128xf32> to vector<8x128xf32>
    %cst_509 = arith.constant dense<0.000000e+00> : vector<8x128xf32>
    %717 = tpu.matmul %713, %608, %cst_509 {dimension_numbers = #tpu.dot_dimension_numbers<[1], [0], [0], [1], [0, 0, 1, 1], [], []>} : vector<8x32xf32>, vector<32x128xf32>, vector<8x128xf32> -> vector<8x128xf32>
    %718 = arith.addf %716, %717 : vector<8x128xf32>
    %719 = math.tanh %718 : vector<8x128xf32>
    %720 = arith.negf %718 : vector<8x128xf32>
    %721 = math.exp %720 : vector<8x128xf32>
    %cst_510 = arith.constant 1.000000e+00 : f32
    %722 = vector.broadcast %cst_510 : f32 to vector<8x128xf32>
    %723 = arith.addf %722, %721 : vector<8x128xf32>
    %724 = arith.divf %722, %723 : vector<8x128xf32>
    %725 = arith.select %598, %719, %724 : vector<8x128xi1>, vector<8x128xf32>
    %726 = vector.extract_strided_slice %725 {offsets = [0, 0], sizes = [8, 32], strides = [1, 1]} : vector<8x128xf32> to vector<8x32xf32>
    %727 = vector.extract_strided_slice %725 {offsets = [0, 32], sizes = [8, 32], strides = [1, 1]} : vector<8x128xf32> to vector<8x32xf32>
    %728 = vector.extract_strided_slice %725 {offsets = [0, 64], sizes = [8, 32], strides = [1, 1]} : vector<8x128xf32> to vector<8x32xf32>
    %729 = vector.extract_strided_slice %725 {offsets = [0, 96], sizes = [8, 32], strides = [1, 1]} : vector<8x128xf32> to vector<8x32xf32>
    %730 = arith.mulf %727, %711 : vector<8x32xf32>
    %731 = arith.mulf %726, %728 : vector<8x32xf32>
    %732 = arith.addf %730, %731 : vector<8x32xf32>
    %733 = math.tanh %732 : vector<8x32xf32>
    %734 = arith.mulf %729, %733 : vector<8x32xf32>
    %c40_511 = arith.constant 40 : index
    %c0_512 = arith.constant 0 : index
    %735 = vector.load %arg17[%c40_511, %c0_512] : memref<64x32xf32, #tpu.memory_space<vmem>>, vector<8x32xf32>
    tpu.vector_store %arg17[%c40_511, %c0_512], %734 {strides = array<i32>} : memref<64x32xf32, #tpu.memory_space<vmem>>, vector<8x32xf32>,
    %c16_513 = arith.constant 16 : index
    %c0_514 = arith.constant 0 : index
    %736 = vector.load %arg18[%c16_513, %c0_514] : memref<64x32xf32, #tpu.memory_space<vmem>>, vector<8x32xf32>
    tpu.vector_store %arg18[%c16_513, %c0_514], %734 {strides = array<i32>} : memref<64x32xf32, #tpu.memory_space<vmem>>, vector<8x32xf32>,
    %737 = vector.extract_strided_slice %607 {offsets = [48, 0], sizes = [8, 128], strides = [1, 1]} : vector<64x128xf32> to vector<8x128xf32>
    %cst_515 = arith.constant dense<0.000000e+00> : vector<8x128xf32>
    %738 = tpu.matmul %734, %608, %cst_515 {dimension_numbers = #tpu.dot_dimension_numbers<[1], [0], [0], [1], [0, 0, 1, 1], [], []>} : vector<8x32xf32>, vector<32x128xf32>, vector<8x128xf32> -> vector<8x128xf32>
    %739 = arith.addf %737, %738 : vector<8x128xf32>
    %740 = math.tanh %739 : vector<8x128xf32>
    %741 = arith.negf %739 : vector<8x128xf32>
    %742 = math.exp %741 : vector<8x128xf32>
    %cst_516 = arith.constant 1.000000e+00 : f32
    %743 = vector.broadcast %cst_516 : f32 to vector<8x128xf32>
    %744 = arith.addf %743, %742 : vector<8x128xf32>
    %745 = arith.divf %743, %744 : vector<8x128xf32>
    %746 = arith.select %598, %740, %745 : vector<8x128xi1>, vector<8x128xf32>
    %747 = vector.extract_strided_slice %746 {offsets = [0, 0], sizes = [8, 32], strides = [1, 1]} : vector<8x128xf32> to vector<8x32xf32>
    %748 = vector.extract_strided_slice %746 {offsets = [0, 32], sizes = [8, 32], strides = [1, 1]} : vector<8x128xf32> to vector<8x32xf32>
    %749 = vector.extract_strided_slice %746 {offsets = [0, 64], sizes = [8, 32], strides = [1, 1]} : vector<8x128xf32> to vector<8x32xf32>
    %750 = vector.extract_strided_slice %746 {offsets = [0, 96], sizes = [8, 32], strides = [1, 1]} : vector<8x128xf32> to vector<8x32xf32>
    %751 = arith.mulf %748, %732 : vector<8x32xf32>
    %752 = arith.mulf %747, %749 : vector<8x32xf32>
    %753 = arith.addf %751, %752 : vector<8x32xf32>
    %754 = math.tanh %753 : vector<8x32xf32>
    %755 = arith.mulf %750, %754 : vector<8x32xf32>
    %c48_517 = arith.constant 48 : index
    %c0_518 = arith.constant 0 : index
    %756 = vector.load %arg17[%c48_517, %c0_518] : memref<64x32xf32, #tpu.memory_space<vmem>>, vector<8x32xf32>
    tpu.vector_store %arg17[%c48_517, %c0_518], %755 {strides = array<i32>} : memref<64x32xf32, #tpu.memory_space<vmem>>, vector<8x32xf32>,
    %c8_519 = arith.constant 8 : index
    %c0_520 = arith.constant 0 : index
    %757 = vector.load %arg18[%c8_519, %c0_520] : memref<64x32xf32, #tpu.memory_space<vmem>>, vector<8x32xf32>
    tpu.vector_store %arg18[%c8_519, %c0_520], %755 {strides = array<i32>} : memref<64x32xf32, #tpu.memory_space<vmem>>, vector<8x32xf32>,
    %758 = vector.extract_strided_slice %607 {offsets = [56, 0], sizes = [8, 128], strides = [1, 1]} : vector<64x128xf32> to vector<8x128xf32>
    %cst_521 = arith.constant dense<0.000000e+00> : vector<8x128xf32>
    %759 = tpu.matmul %755, %608, %cst_521 {dimension_numbers = #tpu.dot_dimension_numbers<[1], [0], [0], [1], [0, 0, 1, 1], [], []>} : vector<8x32xf32>, vector<32x128xf32>, vector<8x128xf32> -> vector<8x128xf32>
    %760 = arith.addf %758, %759 : vector<8x128xf32>
    %761 = math.tanh %760 : vector<8x128xf32>
    %762 = arith.negf %760 : vector<8x128xf32>
    %763 = math.exp %762 : vector<8x128xf32>
    %cst_522 = arith.constant 1.000000e+00 : f32
    %764 = vector.broadcast %cst_522 : f32 to vector<8x128xf32>
    %765 = arith.addf %764, %763 : vector<8x128xf32>
    %766 = arith.divf %764, %765 : vector<8x128xf32>
    %767 = arith.select %598, %761, %766 : vector<8x128xi1>, vector<8x128xf32>
    %768 = vector.extract_strided_slice %767 {offsets = [0, 0], sizes = [8, 32], strides = [1, 1]} : vector<8x128xf32> to vector<8x32xf32>
    %769 = vector.extract_strided_slice %767 {offsets = [0, 32], sizes = [8, 32], strides = [1, 1]} : vector<8x128xf32> to vector<8x32xf32>
    %770 = vector.extract_strided_slice %767 {offsets = [0, 64], sizes = [8, 32], strides = [1, 1]} : vector<8x128xf32> to vector<8x32xf32>
    %771 = vector.extract_strided_slice %767 {offsets = [0, 96], sizes = [8, 32], strides = [1, 1]} : vector<8x128xf32> to vector<8x32xf32>
    %772 = arith.mulf %769, %753 : vector<8x32xf32>
    %773 = arith.mulf %768, %770 : vector<8x32xf32>
    %774 = arith.addf %772, %773 : vector<8x32xf32>
    %775 = math.tanh %774 : vector<8x32xf32>
    %776 = arith.mulf %771, %775 : vector<8x32xf32>
    %c56_523 = arith.constant 56 : index
    %c0_524 = arith.constant 0 : index
    %777 = vector.load %arg17[%c56_523, %c0_524] : memref<64x32xf32, #tpu.memory_space<vmem>>, vector<8x32xf32>
    tpu.vector_store %arg17[%c56_523, %c0_524], %776 {strides = array<i32>} : memref<64x32xf32, #tpu.memory_space<vmem>>, vector<8x32xf32>,
    %c0_525 = arith.constant 0 : index
    %c0_526 = arith.constant 0 : index
    %778 = vector.load %arg18[%c0_525, %c0_526] : memref<64x32xf32, #tpu.memory_space<vmem>>, vector<8x32xf32>
    tpu.vector_store %arg18[%c0_525, %c0_526], %776 {strides = array<i32>} : memref<64x32xf32, #tpu.memory_space<vmem>>, vector<8x32xf32>,
    %c0_527 = arith.constant 0 : index
    %c0_528 = arith.constant 0 : index
    %779 = vector.load %arg17[%c0_527, %c0_528] : memref<64x32xf32, #tpu.memory_space<vmem>>, vector<64x32xf32>
    %c0_529 = arith.constant 0 : index
    %c0_530 = arith.constant 0 : index
    %780 = vector.load %arg18[%c0_529, %c0_530] : memref<64x32xf32, #tpu.memory_space<vmem>>, vector<64x32xf32>
    %c0_531 = arith.constant 0 : index
    %c0_532 = arith.constant 0 : index
    %781 = vector.load %arg6[%c0_531, %c0_532] : memref<32x128xf32, #tpu.memory_space<vmem>>, vector<32x128xf32>
    %cst_533 = arith.constant dense<0.000000e+00> : vector<64x128xf32>
    %782 = tpu.matmul %779, %781, %cst_533 {dimension_numbers = #tpu.dot_dimension_numbers<[1], [0], [0], [1], [0, 0, 1, 1], [], []>} : vector<64x32xf32>, vector<32x128xf32>, vector<64x128xf32> -> vector<64x128xf32>
    %c0_534 = arith.constant 0 : index
    %c0_535 = arith.constant 0 : index
    %783 = vector.load %arg7[%c0_534, %c0_535] : memref<32x128xf32, #tpu.memory_space<vmem>>, vector<32x128xf32>
    %cst_536 = arith.constant dense<0.000000e+00> : vector<64x128xf32>
    %784 = tpu.matmul %780, %783, %cst_536 {dimension_numbers = #tpu.dot_dimension_numbers<[1], [0], [0], [1], [0, 0, 1, 1], [], []>} : vector<64x32xf32>, vector<32x128xf32>, vector<64x128xf32> -> vector<64x128xf32>
    %785 = arith.addf %782, %784 : vector<64x128xf32>
    %c0_537 = arith.constant 0 : index
    %c0_538 = arith.constant 0 : index
    %786 = vector.load %arg9[%c0_537, %c0_538] : memref<1x128xf32, #tpu.memory_space<vmem>>, vector<1x128xf32>
    %787 = vector.broadcast %786 : vector<1x128xf32> to vector<64x128xf32>
    %788 = arith.addf %785, %787 : vector<64x128xf32>
    %c0_539 = arith.constant 0 : index
    %c0_540 = arith.constant 0 : index
    %789 = vector.load %arg8[%c0_539, %c0_540] : memref<32x128xf32, #tpu.memory_space<vmem>>, vector<32x128xf32>
    %cst_541 = arith.constant 0.000000e+00 : f32
    %790 = vector.broadcast %cst_541 : f32 to vector<8x32xf32>
    %cst_542 = arith.constant 0.000000e+00 : f32
    %791 = vector.broadcast %cst_542 : f32 to vector<8x32xf32>
    %792 = vector.extract_strided_slice %788 {offsets = [0, 0], sizes = [8, 128], strides = [1, 1]} : vector<64x128xf32> to vector<8x128xf32>
    %cst_543 = arith.constant dense<0.000000e+00> : vector<8x128xf32>
    %793 = tpu.matmul %790, %789, %cst_543 {dimension_numbers = #tpu.dot_dimension_numbers<[1], [0], [0], [1], [0, 0, 1, 1], [], []>} : vector<8x32xf32>, vector<32x128xf32>, vector<8x128xf32> -> vector<8x128xf32>
    %794 = arith.addf %792, %793 : vector<8x128xf32>
    %795 = math.tanh %794 : vector<8x128xf32>
    %796 = arith.negf %794 : vector<8x128xf32>
    %797 = math.exp %796 : vector<8x128xf32>
    %cst_544 = arith.constant 1.000000e+00 : f32
    %798 = vector.broadcast %cst_544 : f32 to vector<8x128xf32>
    %799 = arith.addf %798, %797 : vector<8x128xf32>
    %800 = arith.divf %798, %799 : vector<8x128xf32>
    %801 = arith.select %598, %795, %800 : vector<8x128xi1>, vector<8x128xf32>
    %802 = vector.extract_strided_slice %801 {offsets = [0, 0], sizes = [8, 32], strides = [1, 1]} : vector<8x128xf32> to vector<8x32xf32>
    %803 = vector.extract_strided_slice %801 {offsets = [0, 32], sizes = [8, 32], strides = [1, 1]} : vector<8x128xf32> to vector<8x32xf32>
    %804 = vector.extract_strided_slice %801 {offsets = [0, 64], sizes = [8, 32], strides = [1, 1]} : vector<8x128xf32> to vector<8x32xf32>
    %805 = vector.extract_strided_slice %801 {offsets = [0, 96], sizes = [8, 32], strides = [1, 1]} : vector<8x128xf32> to vector<8x32xf32>
    %806 = arith.mulf %803, %791 : vector<8x32xf32>
    %807 = arith.mulf %802, %804 : vector<8x32xf32>
    %808 = arith.addf %806, %807 : vector<8x32xf32>
    %809 = math.tanh %808 : vector<8x32xf32>
    %810 = arith.mulf %805, %809 : vector<8x32xf32>
    %811 = vector.extract_strided_slice %788 {offsets = [8, 0], sizes = [8, 128], strides = [1, 1]} : vector<64x128xf32> to vector<8x128xf32>
    %cst_545 = arith.constant dense<0.000000e+00> : vector<8x128xf32>
    %812 = tpu.matmul %810, %789, %cst_545 {dimension_numbers = #tpu.dot_dimension_numbers<[1], [0], [0], [1], [0, 0, 1, 1], [], []>} : vector<8x32xf32>, vector<32x128xf32>, vector<8x128xf32> -> vector<8x128xf32>
    %813 = arith.addf %811, %812 : vector<8x128xf32>
    %814 = math.tanh %813 : vector<8x128xf32>
    %815 = arith.negf %813 : vector<8x128xf32>
    %816 = math.exp %815 : vector<8x128xf32>
    %cst_546 = arith.constant 1.000000e+00 : f32
    %817 = vector.broadcast %cst_546 : f32 to vector<8x128xf32>
    %818 = arith.addf %817, %816 : vector<8x128xf32>
    %819 = arith.divf %817, %818 : vector<8x128xf32>
    %820 = arith.select %598, %814, %819 : vector<8x128xi1>, vector<8x128xf32>
    %821 = vector.extract_strided_slice %820 {offsets = [0, 0], sizes = [8, 32], strides = [1, 1]} : vector<8x128xf32> to vector<8x32xf32>
    %822 = vector.extract_strided_slice %820 {offsets = [0, 32], sizes = [8, 32], strides = [1, 1]} : vector<8x128xf32> to vector<8x32xf32>
    %823 = vector.extract_strided_slice %820 {offsets = [0, 64], sizes = [8, 32], strides = [1, 1]} : vector<8x128xf32> to vector<8x32xf32>
    %824 = vector.extract_strided_slice %820 {offsets = [0, 96], sizes = [8, 32], strides = [1, 1]} : vector<8x128xf32> to vector<8x32xf32>
    %825 = arith.mulf %822, %808 : vector<8x32xf32>
    %826 = arith.mulf %821, %823 : vector<8x32xf32>
    %827 = arith.addf %825, %826 : vector<8x32xf32>
    %828 = math.tanh %827 : vector<8x32xf32>
    %829 = arith.mulf %824, %828 : vector<8x32xf32>
    %830 = vector.extract_strided_slice %788 {offsets = [16, 0], sizes = [8, 128], strides = [1, 1]} : vector<64x128xf32> to vector<8x128xf32>
    %cst_547 = arith.constant dense<0.000000e+00> : vector<8x128xf32>
    %831 = tpu.matmul %829, %789, %cst_547 {dimension_numbers = #tpu.dot_dimension_numbers<[1], [0], [0], [1], [0, 0, 1, 1], [], []>} : vector<8x32xf32>, vector<32x128xf32>, vector<8x128xf32> -> vector<8x128xf32>
    %832 = arith.addf %830, %831 : vector<8x128xf32>
    %833 = math.tanh %832 : vector<8x128xf32>
    %834 = arith.negf %832 : vector<8x128xf32>
    %835 = math.exp %834 : vector<8x128xf32>
    %cst_548 = arith.constant 1.000000e+00 : f32
    %836 = vector.broadcast %cst_548 : f32 to vector<8x128xf32>
    %837 = arith.addf %836, %835 : vector<8x128xf32>
    %838 = arith.divf %836, %837 : vector<8x128xf32>
    %839 = arith.select %598, %833, %838 : vector<8x128xi1>, vector<8x128xf32>
    %840 = vector.extract_strided_slice %839 {offsets = [0, 0], sizes = [8, 32], strides = [1, 1]} : vector<8x128xf32> to vector<8x32xf32>
    %841 = vector.extract_strided_slice %839 {offsets = [0, 32], sizes = [8, 32], strides = [1, 1]} : vector<8x128xf32> to vector<8x32xf32>
    %842 = vector.extract_strided_slice %839 {offsets = [0, 64], sizes = [8, 32], strides = [1, 1]} : vector<8x128xf32> to vector<8x32xf32>
    %843 = vector.extract_strided_slice %839 {offsets = [0, 96], sizes = [8, 32], strides = [1, 1]} : vector<8x128xf32> to vector<8x32xf32>
    %844 = arith.mulf %841, %827 : vector<8x32xf32>
    %845 = arith.mulf %840, %842 : vector<8x32xf32>
    %846 = arith.addf %844, %845 : vector<8x32xf32>
    %847 = math.tanh %846 : vector<8x32xf32>
    %848 = arith.mulf %843, %847 : vector<8x32xf32>
    %849 = vector.extract_strided_slice %788 {offsets = [24, 0], sizes = [8, 128], strides = [1, 1]} : vector<64x128xf32> to vector<8x128xf32>
    %cst_549 = arith.constant dense<0.000000e+00> : vector<8x128xf32>
    %850 = tpu.matmul %848, %789, %cst_549 {dimension_numbers = #tpu.dot_dimension_numbers<[1], [0], [0], [1], [0, 0, 1, 1], [], []>} : vector<8x32xf32>, vector<32x128xf32>, vector<8x128xf32> -> vector<8x128xf32>
    %851 = arith.addf %849, %850 : vector<8x128xf32>
    %852 = math.tanh %851 : vector<8x128xf32>
    %853 = arith.negf %851 : vector<8x128xf32>
    %854 = math.exp %853 : vector<8x128xf32>
    %cst_550 = arith.constant 1.000000e+00 : f32
    %855 = vector.broadcast %cst_550 : f32 to vector<8x128xf32>
    %856 = arith.addf %855, %854 : vector<8x128xf32>
    %857 = arith.divf %855, %856 : vector<8x128xf32>
    %858 = arith.select %598, %852, %857 : vector<8x128xi1>, vector<8x128xf32>
    %859 = vector.extract_strided_slice %858 {offsets = [0, 0], sizes = [8, 32], strides = [1, 1]} : vector<8x128xf32> to vector<8x32xf32>
    %860 = vector.extract_strided_slice %858 {offsets = [0, 32], sizes = [8, 32], strides = [1, 1]} : vector<8x128xf32> to vector<8x32xf32>
    %861 = vector.extract_strided_slice %858 {offsets = [0, 64], sizes = [8, 32], strides = [1, 1]} : vector<8x128xf32> to vector<8x32xf32>
    %862 = vector.extract_strided_slice %858 {offsets = [0, 96], sizes = [8, 32], strides = [1, 1]} : vector<8x128xf32> to vector<8x32xf32>
    %863 = arith.mulf %860, %846 : vector<8x32xf32>
    %864 = arith.mulf %859, %861 : vector<8x32xf32>
    %865 = arith.addf %863, %864 : vector<8x32xf32>
    %866 = math.tanh %865 : vector<8x32xf32>
    %867 = arith.mulf %862, %866 : vector<8x32xf32>
    %868 = vector.extract_strided_slice %788 {offsets = [32, 0], sizes = [8, 128], strides = [1, 1]} : vector<64x128xf32> to vector<8x128xf32>
    %cst_551 = arith.constant dense<0.000000e+00> : vector<8x128xf32>
    %869 = tpu.matmul %867, %789, %cst_551 {dimension_numbers = #tpu.dot_dimension_numbers<[1], [0], [0], [1], [0, 0, 1, 1], [], []>} : vector<8x32xf32>, vector<32x128xf32>, vector<8x128xf32> -> vector<8x128xf32>
    %870 = arith.addf %868, %869 : vector<8x128xf32>
    %871 = math.tanh %870 : vector<8x128xf32>
    %872 = arith.negf %870 : vector<8x128xf32>
    %873 = math.exp %872 : vector<8x128xf32>
    %cst_552 = arith.constant 1.000000e+00 : f32
    %874 = vector.broadcast %cst_552 : f32 to vector<8x128xf32>
    %875 = arith.addf %874, %873 : vector<8x128xf32>
    %876 = arith.divf %874, %875 : vector<8x128xf32>
    %877 = arith.select %598, %871, %876 : vector<8x128xi1>, vector<8x128xf32>
    %878 = vector.extract_strided_slice %877 {offsets = [0, 0], sizes = [8, 32], strides = [1, 1]} : vector<8x128xf32> to vector<8x32xf32>
    %879 = vector.extract_strided_slice %877 {offsets = [0, 32], sizes = [8, 32], strides = [1, 1]} : vector<8x128xf32> to vector<8x32xf32>
    %880 = vector.extract_strided_slice %877 {offsets = [0, 64], sizes = [8, 32], strides = [1, 1]} : vector<8x128xf32> to vector<8x32xf32>
    %881 = vector.extract_strided_slice %877 {offsets = [0, 96], sizes = [8, 32], strides = [1, 1]} : vector<8x128xf32> to vector<8x32xf32>
    %882 = arith.mulf %879, %865 : vector<8x32xf32>
    %883 = arith.mulf %878, %880 : vector<8x32xf32>
    %884 = arith.addf %882, %883 : vector<8x32xf32>
    %885 = math.tanh %884 : vector<8x32xf32>
    %886 = arith.mulf %881, %885 : vector<8x32xf32>
    %887 = vector.extract_strided_slice %788 {offsets = [40, 0], sizes = [8, 128], strides = [1, 1]} : vector<64x128xf32> to vector<8x128xf32>
    %cst_553 = arith.constant dense<0.000000e+00> : vector<8x128xf32>
    %888 = tpu.matmul %886, %789, %cst_553 {dimension_numbers = #tpu.dot_dimension_numbers<[1], [0], [0], [1], [0, 0, 1, 1], [], []>} : vector<8x32xf32>, vector<32x128xf32>, vector<8x128xf32> -> vector<8x128xf32>
    %889 = arith.addf %887, %888 : vector<8x128xf32>
    %890 = math.tanh %889 : vector<8x128xf32>
    %891 = arith.negf %889 : vector<8x128xf32>
    %892 = math.exp %891 : vector<8x128xf32>
    %cst_554 = arith.constant 1.000000e+00 : f32
    %893 = vector.broadcast %cst_554 : f32 to vector<8x128xf32>
    %894 = arith.addf %893, %892 : vector<8x128xf32>
    %895 = arith.divf %893, %894 : vector<8x128xf32>
    %896 = arith.select %598, %890, %895 : vector<8x128xi1>, vector<8x128xf32>
    %897 = vector.extract_strided_slice %896 {offsets = [0, 0], sizes = [8, 32], strides = [1, 1]} : vector<8x128xf32> to vector<8x32xf32>
    %898 = vector.extract_strided_slice %896 {offsets = [0, 32], sizes = [8, 32], strides = [1, 1]} : vector<8x128xf32> to vector<8x32xf32>
    %899 = vector.extract_strided_slice %896 {offsets = [0, 64], sizes = [8, 32], strides = [1, 1]} : vector<8x128xf32> to vector<8x32xf32>
    %900 = vector.extract_strided_slice %896 {offsets = [0, 96], sizes = [8, 32], strides = [1, 1]} : vector<8x128xf32> to vector<8x32xf32>
    %901 = arith.mulf %898, %884 : vector<8x32xf32>
    %902 = arith.mulf %897, %899 : vector<8x32xf32>
    %903 = arith.addf %901, %902 : vector<8x32xf32>
    %904 = math.tanh %903 : vector<8x32xf32>
    %905 = arith.mulf %900, %904 : vector<8x32xf32>
    %906 = vector.extract_strided_slice %788 {offsets = [48, 0], sizes = [8, 128], strides = [1, 1]} : vector<64x128xf32> to vector<8x128xf32>
    %cst_555 = arith.constant dense<0.000000e+00> : vector<8x128xf32>
    %907 = tpu.matmul %905, %789, %cst_555 {dimension_numbers = #tpu.dot_dimension_numbers<[1], [0], [0], [1], [0, 0, 1, 1], [], []>} : vector<8x32xf32>, vector<32x128xf32>, vector<8x128xf32> -> vector<8x128xf32>
    %908 = arith.addf %906, %907 : vector<8x128xf32>
    %909 = math.tanh %908 : vector<8x128xf32>
    %910 = arith.negf %908 : vector<8x128xf32>
    %911 = math.exp %910 : vector<8x128xf32>
    %cst_556 = arith.constant 1.000000e+00 : f32
    %912 = vector.broadcast %cst_556 : f32 to vector<8x128xf32>
    %913 = arith.addf %912, %911 : vector<8x128xf32>
    %914 = arith.divf %912, %913 : vector<8x128xf32>
    %915 = arith.select %598, %909, %914 : vector<8x128xi1>, vector<8x128xf32>
    %916 = vector.extract_strided_slice %915 {offsets = [0, 0], sizes = [8, 32], strides = [1, 1]} : vector<8x128xf32> to vector<8x32xf32>
    %917 = vector.extract_strided_slice %915 {offsets = [0, 32], sizes = [8, 32], strides = [1, 1]} : vector<8x128xf32> to vector<8x32xf32>
    %918 = vector.extract_strided_slice %915 {offsets = [0, 64], sizes = [8, 32], strides = [1, 1]} : vector<8x128xf32> to vector<8x32xf32>
    %919 = vector.extract_strided_slice %915 {offsets = [0, 96], sizes = [8, 32], strides = [1, 1]} : vector<8x128xf32> to vector<8x32xf32>
    %920 = arith.mulf %917, %903 : vector<8x32xf32>
    %921 = arith.mulf %916, %918 : vector<8x32xf32>
    %922 = arith.addf %920, %921 : vector<8x32xf32>
    %923 = math.tanh %922 : vector<8x32xf32>
    %924 = arith.mulf %919, %923 : vector<8x32xf32>
    %925 = vector.extract_strided_slice %788 {offsets = [56, 0], sizes = [8, 128], strides = [1, 1]} : vector<64x128xf32> to vector<8x128xf32>
    %cst_557 = arith.constant dense<0.000000e+00> : vector<8x128xf32>
    %926 = tpu.matmul %924, %789, %cst_557 {dimension_numbers = #tpu.dot_dimension_numbers<[1], [0], [0], [1], [0, 0, 1, 1], [], []>} : vector<8x32xf32>, vector<32x128xf32>, vector<8x128xf32> -> vector<8x128xf32>
    %927 = arith.addf %925, %926 : vector<8x128xf32>
    %928 = math.tanh %927 : vector<8x128xf32>
    %929 = arith.negf %927 : vector<8x128xf32>
    %930 = math.exp %929 : vector<8x128xf32>
    %cst_558 = arith.constant 1.000000e+00 : f32
    %931 = vector.broadcast %cst_558 : f32 to vector<8x128xf32>
    %932 = arith.addf %931, %930 : vector<8x128xf32>
    %933 = arith.divf %931, %932 : vector<8x128xf32>
    %934 = arith.select %598, %928, %933 : vector<8x128xi1>, vector<8x128xf32>
    %935 = vector.extract_strided_slice %934 {offsets = [0, 0], sizes = [8, 32], strides = [1, 1]} : vector<8x128xf32> to vector<8x32xf32>
    %936 = vector.extract_strided_slice %934 {offsets = [0, 32], sizes = [8, 32], strides = [1, 1]} : vector<8x128xf32> to vector<8x32xf32>
    %937 = vector.extract_strided_slice %934 {offsets = [0, 64], sizes = [8, 32], strides = [1, 1]} : vector<8x128xf32> to vector<8x32xf32>
    %938 = vector.extract_strided_slice %934 {offsets = [0, 96], sizes = [8, 32], strides = [1, 1]} : vector<8x128xf32> to vector<8x32xf32>
    %939 = arith.mulf %936, %922 : vector<8x32xf32>
    %940 = arith.mulf %935, %937 : vector<8x32xf32>
    %941 = arith.addf %939, %940 : vector<8x32xf32>
    %942 = math.tanh %941 : vector<8x32xf32>
    %943 = arith.mulf %938, %942 : vector<8x32xf32>
    %c0_559 = arith.constant 0 : index
    %c0_560 = arith.constant 0 : index
    %944 = vector.load %arg10[%c0_559, %c0_560] : memref<64x32xf32, #tpu.memory_space<vmem>>, vector<64x32xf32>
    %c0_561 = arith.constant 0 : index
    %c0_562 = arith.constant 0 : index
    %945 = vector.load %arg11[%c0_561, %c0_562] : memref<1x32xf32, #tpu.memory_space<vmem>>, vector<1x32xf32>
    %946 = vector.extract_strided_slice %944 {offsets = [0, 0], sizes = [32, 32], strides = [1, 1]} : vector<64x32xf32> to vector<32x32xf32>
    %cst_563 = arith.constant dense<0.000000e+00> : vector<8x32xf32>
    %947 = tpu.matmul %776, %946, %cst_563 {dimension_numbers = #tpu.dot_dimension_numbers<[1], [0], [0], [1], [0, 0, 1, 1], [], []>} : vector<8x32xf32>, vector<32x32xf32>, vector<8x32xf32> -> vector<8x32xf32>
    %948 = vector.broadcast %945 : vector<1x32xf32> to vector<8x32xf32>
    %949 = arith.addf %948, %947 : vector<8x32xf32>
    %950 = vector.extract_strided_slice %944 {offsets = [32, 0], sizes = [32, 32], strides = [1, 1]} : vector<64x32xf32> to vector<32x32xf32>
    %cst_564 = arith.constant dense<0.000000e+00> : vector<8x32xf32>
    %951 = tpu.matmul %943, %950, %cst_564 {dimension_numbers = #tpu.dot_dimension_numbers<[1], [0], [0], [1], [0, 0, 1, 1], [], []>} : vector<8x32xf32>, vector<32x32xf32>, vector<8x32xf32> -> vector<8x32xf32>
    %952 = arith.addf %949, %951 : vector<8x32xf32>
    %953 = math.tanh %952 : vector<8x32xf32>
    %cst_565 = arith.constant dense<0.000000e+00> : vector<8xf32>
    %954 = vector.multi_reduction <add>, %953, %cst_565 [1] : vector<8x32xf32> to vector<8xf32>
    %955 = vector.shape_cast %954 : vector<8xf32> to vector<8x1xf32>
    %cst_566 = arith.constant 3.200000e+01 : f32
    %956 = vector.broadcast %cst_566 : f32 to vector<8x1xf32>
    %957 = arith.divf %955, %956 : vector<8x1xf32>
    %958 = vector.broadcast %957 : vector<8x1xf32> to vector<8x32xf32>
    %959 = arith.subf %953, %958 : vector<8x32xf32>
    %960 = arith.mulf %959, %959 : vector<8x32xf32>
    %cst_567 = arith.constant dense<0.000000e+00> : vector<8xf32>
    %961 = vector.multi_reduction <add>, %960, %cst_567 [1] : vector<8x32xf32> to vector<8xf32>
    %962 = vector.shape_cast %961 : vector<8xf32> to vector<8x1xf32>
    %cst_568 = arith.constant 3.200000e+01 : f32
    %963 = vector.broadcast %cst_568 : f32 to vector<8x1xf32>
    %964 = arith.divf %962, %963 : vector<8x1xf32>
    %cst_569 = arith.constant 9.99999974E-6 : f32
    %965 = vector.broadcast %cst_569 : f32 to vector<8x1xf32>
    %966 = arith.addf %964, %965 : vector<8x1xf32>
    %967 = math.rsqrt %966 : vector<8x1xf32>
    %968 = vector.broadcast %967 : vector<8x1xf32> to vector<8x32xf32>
    %969 = arith.mulf %959, %968 : vector<8x32xf32>
    %c0_570 = arith.constant 0 : index
    %c0_571 = arith.constant 0 : index
    %970 = vector.load %arg12[%c0_570, %c0_571] : memref<1x32xf32, #tpu.memory_space<vmem>>, vector<1x32xf32>
    %971 = vector.broadcast %970 : vector<1x32xf32> to vector<8x32xf32>
    %972 = arith.mulf %969, %971 : vector<8x32xf32>
    %c0_572 = arith.constant 0 : index
    %c0_573 = arith.constant 0 : index
    %973 = vector.load %arg13[%c0_572, %c0_573] : memref<1x32xf32, #tpu.memory_space<vmem>>, vector<1x32xf32>
    %974 = vector.broadcast %973 : vector<1x32xf32> to vector<8x32xf32>
    %975 = arith.addf %972, %974 : vector<8x32xf32>
    %c0_574 = arith.constant 0 : index
    %c0_575 = arith.constant 0 : index
    %976 = vector.load %arg14[%c0_574, %c0_575] : memref<8x32xf32, #tpu.memory_space<vmem>>, vector<8x32xf32>
    tpu.vector_store %arg14[%c0_574, %c0_575], %975 {strides = array<i32>} : memref<8x32xf32, #tpu.memory_space<vmem>>, vector<8x32xf32>,
    return
  }
}

</mosaic_0001>

<bundles_post_ra>
// kernel: tpu_custom_call.1
= control target key start
LH: loop header
LB: loop body
LE: loop exit
PB: predicated region body
PF: predicated region fallthrough
CT: control target
= control target key end

     0   :  { %s8445_s0 = inlined_call_operand.hbm [shape: s32[64], index: 0, kind: input, shape index: {}]   ;;  %s8446_s1 = inlined_call_operand.vmem [shape: f32[32,32], index: 1, kind: input, shape index: {}]   ;;  %s8447_s2 = inlined_call_operand.vmem [shape: f32[32,128], index: 2, kind: input, shape index: {}]   ;;  %s8448_s3 = inlined_call_operand.vmem [shape: f32[32,128], index: 3, kind: input, shape index: {}]   ;;  %s8449_s4 = inlined_call_operand.hbm [shape: f32[32,128], index: 4, kind: input, shape index: {}]   ;;  %s8450_s5 = inlined_call_operand.vmem [shape: f32[1,128], index: 5, kind: input, shape index: {}]   ;;  %s8451_s6 = inlined_call_operand.hbm [shape: f32[32,128], index: 6, kind: input, shape index: {}]   ;;  %s8452_s7 = inlined_call_operand.hbm [shape: f32[32,128], index: 7, kind: input, shape index: {}]   ;;  %s8453_s8 = inlined_call_operand.hbm [shape: f32[32,128], index: 8, kind: input, shape index: {}]   ;;  %s8454_s9 = inlined_call_operand.vmem [shape: f32[1,128], index: 9, kind: input, shape index: {}]   ;;  %s8455_s10 = inlined_call_operand.vmem [shape: f32[64,32], index: 10, kind: input, shape index: {}]   ;;  %s8456_s11 = inlined_call_operand.vmem [shape: f32[1,32], index: 11, kind: input, shape index: {}]   ;;  %s8457_s12 = inlined_call_operand.vmem [shape: f32[1,32], index: 12, kind: input, shape index: {}]   ;;  %s8458_s13 = inlined_call_operand.vmem [shape: f32[1,32], index: 13, kind: input, shape index: {}]   ;;  %s8459_s14 = inlined_call_operand.hbm [shape: f32[8,32], index: 14, kind: output, shape index: {}]  }
   0x1   :  { %8464 = sst [smem:[#allocation131_spill]] %s8447_s2 }
   0x2   :  { %8465 = sst [smem:[#allocation132_spill]] %s8448_s3 }
   0x3   :  { %8466 = sst [smem:[#allocation133_spill]] %s8450_s5 }
   0x4   :  { %8467 = sst [smem:[#allocation134_spill]] %s8454_s9 }
   0x5   :  { %8468 = sst [smem:[#allocation135_spill]] %s8455_s10 }
   0x6   :  { %8469 = sst [smem:[#allocation136_spill]] %s8456_s11 }
   0x7   :  { %8470 = sst [smem:[#allocation137_spill]] %s8457_s12 }
   0x8   :  { %8471 = sst [smem:[#allocation138_spill]] %s8458_s13 }
   0x9   :  { %8472 = sst [smem:[#allocation139_spill]] %s8459_s14 }
   0xa   :  { %19 = vsyncpa [#allocation10], 0 }
   0xb   :  { %20 = vsyncpa [#allocation8], 0 }
   0xc   :  { %21 = vsyncpa [#allocation13], 0 }
   0xd   :  { %22 = vsyncpa [#allocation16], 0 }
   0xe   :  { %23 = vsyncpa [#allocation9], 0  ;;  %s7476_s29 = smov [#allocation12]   ;;  %s7477_s15 = smov [#allocation11]  }
   0xf   :  { %s55_s30 = sshll.u32 %s7476_s29, 4  ;;  %s41_s16 = sshll.u32 %s7477_s15, 4  ;;  %s56_s30 = int_to_ptr.vmem [resolvable:$true] %s55_s30  ;;  %s42_s16 = int_to_ptr.vmem [resolvable:$true] %s41_s16 }
  0x10   :  { %s7344_s19 = scalar_lea.hbm %s8451_s6, 512 }
  0x11   :  { %p7345_p0 = scmp.ne.s32.totalorder %s8451_s6, %s7344_s19  ;;  %p7348_p1 = scmp.lt.u32.totalorder %s7344_s19, %s8451_s6 }
  0x13   :  { %p7350_p2 = pnand %p7348_p1, %p7345_p0 }
  0x15   :  { %7353 = shalt.err (!%p7350_p2)
}
  0x16   :  { %s7354_s24 = scalar_lea.vmem %s56_s30, 512  ;;  %p7359_p4 = scmp.lt.s32.totalorder %s56_s30, %s56_s30 }
  0x17   :  { %p7355_p3 = scmp.ne.s32.totalorder %s56_s30, %s7354_s24  ;;  %p7360_p5 = scmp.lt.s32.totalorder %s7354_s24, %s7354_s24 }
  0x19   :  { %p7361_p6 = por %p7360_p5, %p7359_p4 }
  0x1b   :  { %p7362_p7 = pnand %p7361_p6, %p7355_p3 }
  0x1d   :  { %7365 = shalt.err (!%p7362_p7)
}
  0x1e   :  { %s7478_s25 = smov 128   ;;  %s7479_s26 = smov 8  }
  0x1f   :  { %61 = dma.hbm_to_vmem [thread:$0]  %s8451_s6, 512, %s56_s30, [#allocation13], %s7478_s25, %s7478_s25, %s7479_s26  }
  0x20   :  { %s7366_s17 = scalar_lea.hbm %s8445_s0, 16 }
  0x21   :  { %p7367_p8 = scmp.ne.s32.totalorder %s8445_s0, %s7366_s17  ;;  %p7370_p9 = scmp.lt.u32.totalorder %s7366_s17, %s8445_s0 }
  0x23   :  { %p7372_p10 = pnand %p7370_p9, %p7367_p8 }
  0x25   :  { %7375 = shalt.err (!%p7372_p10)
}
  0x26   :  { %s7480_s22 = smov [#allocation7]   ;;  %s7376_s27 = scalar_lea.hbm %s8449_s4, 512 }
  0x27   :  { %31 = dma.hbm_to_smem %s8445_s0, 16, %s7480_s22, [#allocation10]  }
  0x28   :  { %p7377_p11 = scmp.ne.s32.totalorder %s8449_s4, %s7376_s27  ;;  %p7380_p12 = scmp.lt.u32.totalorder %s7376_s27, %s8449_s4 }
  0x2a   :  { %p7382_p13 = pnand %p7380_p12, %p7377_p11 }
  0x2c   :  { %7385 = shalt.err (!%p7382_p13)
}
  0x2d   :  { %s7386_s17 = scalar_lea.vmem %s42_s16, 512  ;;  %p7391_p1 = scmp.lt.s32.totalorder %s42_s16, %s42_s16 }
  0x2e   :  { %p7387_p0 = scmp.ne.s32.totalorder %s42_s16, %s7386_s17  ;;  %p7392_p2 = scmp.lt.s32.totalorder %s7386_s17, %s7386_s17 }
  0x30   :  { %p7393_p3 = por %p7392_p2, %p7391_p1 }
  0x32   :  { %p7394_p4 = pnand %p7393_p3, %p7387_p0 }
  0x34   :  { %7397 = shalt.err (!%p7394_p4)
}
  0x35   :  { %47 = dma.hbm_to_vmem [thread:$0]  %s8449_s4, 512, %s42_s16, [#allocation8], %s7478_s25, %s7478_s25, %s7479_s26  }
  0x36   :  { %s7481_s20 = smov [#allocation14]   ;;  %s7482_s22 = smov [#allocation15]  }
  0x37   :  { %s67_s21 = sshll.u32 %s7481_s20, 4  ;;  %s79_s23 = sshll.u32 %s7482_s22, 4  ;;  %s68_s21 = int_to_ptr.vmem [resolvable:$true] %s67_s21  ;;  %s80_s23 = int_to_ptr.vmem [resolvable:$true] %s79_s23 }
  0x38   :  { %s7398_s30 = scalar_lea.hbm %s8452_s7, 512 }
  0x39   :  { %p7399_p5 = scmp.ne.s32.totalorder %s8452_s7, %s7398_s30  ;;  %p7402_p6 = scmp.lt.u32.totalorder %s7398_s30, %s8452_s7 }
  0x3b   :  { %p7404_p7 = pnand %p7402_p6, %p7399_p5 }
  0x3d   :  { %7407 = shalt.err (!%p7404_p7)
}
  0x3e   :  { %s7408_s4 = scalar_lea.vmem %s68_s21, 512  ;;  %p7413_p9 = scmp.lt.s32.totalorder %s68_s21, %s68_s21 }
  0x3f   :  { %p7409_p8 = scmp.ne.s32.totalorder %s68_s21, %s7408_s4  ;;  %p7414_p10 = scmp.lt.s32.totalorder %s7408_s4, %s7408_s4 }
  0x41   :  { %p7415_p11 = por %p7414_p10, %p7413_p9 }
  0x43   :  { %p7416_p12 = pnand %p7415_p11, %p7409_p8 }
  0x45   :  { %7419 = shalt.err (!%p7416_p12)
}
  0x46   :  { %73 = dma.hbm_to_vmem [thread:$0]  %s8452_s7, 512, %s68_s21, [#allocation13], %s7478_s25, %s7478_s25, %s7479_s26  }
  0x47   :  { %s7420_s19 = scalar_lea.hbm %s8453_s8, 512 }
  0x48   :  { %p7421_p13 = scmp.ne.s32.totalorder %s8453_s8, %s7420_s19  ;;  %p7424_p0 = scmp.lt.u32.totalorder %s7420_s19, %s8453_s8 }
  0x4a   :  { %p7426_p1 = pnand %p7424_p0, %p7421_p13 }
  0x4c   :  { %7429 = shalt.err (!%p7426_p1)
}
  0x4d   :  { %s7430_s30 = scalar_lea.vmem %s80_s23, 512  ;;  %p7435_p3 = scmp.lt.s32.totalorder %s80_s23, %s80_s23 }
  0x4e   :  { %p7431_p2 = scmp.ne.s32.totalorder %s80_s23, %s7430_s30  ;;  %p7436_p4 = scmp.lt.s32.totalorder %s7430_s30, %s7430_s30 }
  0x50   :  { %p7437_p5 = por %p7436_p4, %p7435_p3 }
  0x52   :  { %p7438_p6 = pnand %p7437_p5, %p7431_p2 }
  0x54   :  { %7441 = shalt.err (!%p7438_p6)
}
  0x55   :  { %85 = dma.hbm_to_vmem [thread:$0]  %s8453_s8, 512, %s80_s23, [#allocation16], %s7478_s25, %s7478_s25, %s7479_s26  }
  0x56   :  { %7464 = dma.done.wait [#allocation10], 16  }
  0x57   :  { %7465 = vsyncadd [#allocation10], 4294967280 }
  0x58   :  { %7466 = dma.done.wait [#allocation8], 512  }
  0x59   :  { %7467 = vsyncadd [#allocation8], 4294966784 }
  0x5a   :  { %7468 = dma.done.wait [#allocation13], 1024  }
  0x5b   :  { %7469 = vsyncadd [#allocation13], 4294966272 }
  0x5c   :  { %7470 = dma.done.wait [#allocation16], 512  }
  0x5d   :  { %7471 = vsyncadd [#allocation16], 4294966784 }
  0x5e   :  { %111 = sfence }
  0x5f   :  { %s7636_s27 = sld [smem:[#allocation7]]  ;;  %s7638_s28 = sld [smem:[#allocation7 + $0x1]] }
  0x60   :  { %s7640_s29 = sld [smem:[#allocation7 + $0x2]]  ;;  %s7642_s15 = sld [smem:[#allocation7 + $0x3]] }
  0x61   :  { %s7644_s4 = sld [smem:[#allocation7 + $0x4]]  ;;  %s7646_s8 = sld [smem:[#allocation7 + $0x5]] }
  0x62   :  { %s7648_s25 = sld [smem:[#allocation7 + $0x6]]  ;;  %s7650_s26 = sld [smem:[#allocation7 + $0x7]] }
  0x63   :  { %s7652_s23 = sld [smem:[#allocation7 + $0x8]]  ;;  %s7654_s16 = sld [smem:[#allocation7 + $0x9]] }
  0x64   :  { %s7656_s18 = sld [smem:[#allocation7 + $0xa]]  ;;  %s7658_s17 = sld [smem:[#allocation7 + $0xb]] }
  0x65   :  { %s7660_s0 = sld [smem:[#allocation7 + $0xc]]  ;;  %s7662_s19 = sld [smem:[#allocation7 + $0xd]] }
  0x66   :  { %s7664_s20 = sld [smem:[#allocation7 + $0xe]]  ;;  %s7666_s22 = sld [smem:[#allocation7 + $0xf]] }
  0x67   :  { %s7668_s24 = sld [smem:[#allocation7 + $0x10]]  ;;  %s7670_s6 = sld [smem:[#allocation7 + $0x11]] }
  0x68   :  { %s7672_s30 = sld [smem:[#allocation7 + $0x12]]  ;;  %s7674_s7 = sld [smem:[#allocation7 + $0x13]] }
  0x69   :  { %s7676_s21 = sld [smem:[#allocation7 + $0x14]]  ;;  %s7678_s14 = sld [smem:[#allocation7 + $0x15]] }
  0x6a   :  { %s7680_s13 = sld [smem:[#allocation7 + $0x16]]  ;;  %s7682_s12 = sld [smem:[#allocation7 + $0x17]] }
  0x6b   :  { %s7684_s11 = sld [smem:[#allocation7 + $0x18]]  ;;  %s7686_s10 = sld [smem:[#allocation7 + $0x19]] }
  0x6c   :  { %s7688_s9 = sld [smem:[#allocation7 + $0x1a]]  ;;  %s7690_s5 = sld [smem:[#allocation7 + $0x1b]] }
  0x6d   :  { %s7692_s2 = sld [smem:[#allocation7 + $0x1c]]  ;;  %s7694_s3 = sld [smem:[#allocation7 + $0x1d]] }
  0x6e   :  { %8473 = sst [smem:[#allocation88_spill]] %s7674_s7  ;;  %s7696_s7 = sld [smem:[#allocation7 + $0x1e]] }
  0x6f   :  { %8474 = sst [smem:[#allocation89_spill]] %s7676_s21  ;;  %s7698_s21 = sld [smem:[#allocation7 + $0x1f]] }
  0x70   :  { %8475 = sst [smem:[#allocation90_spill]] %s7678_s14  ;;  %s7700_s14 = sld [smem:[#allocation7 + $0x20]] }
  0x71   :  { %8476 = sst [smem:[#allocation91_spill]] %s7680_s13  ;;  %s7702_s13 = sld [smem:[#allocation7 + $0x21]] }
  0x72   :  { %8477 = sst [smem:[#allocation92_spill]] %s7682_s12  ;;  %s7704_s12 = sld [smem:[#allocation7 + $0x22]] }
  0x73   :  { %8478 = sst [smem:[#allocation93_spill]] %s7684_s11  ;;  %s7706_s11 = sld [smem:[#allocation7 + $0x23]] }
  0x74   :  { %8479 = sst [smem:[#allocation94_spill]] %s7686_s10  ;;  %s7708_s10 = sld [smem:[#allocation7 + $0x24]] }
  0x75   :  { %8480 = sst [smem:[#allocation95_spill]] %s7688_s9  ;;  %s7710_s9 = sld [smem:[#allocation7 + $0x25]] }
  0x76   :  { %8481 = sst [smem:[#allocation96_spill]] %s7690_s5  ;;  %s7712_s5 = sld [smem:[#allocation7 + $0x26]] }
  0x77   :  { %8482 = sst [smem:[#allocation97_spill]] %s7692_s2  ;;  %s7714_s2 = sld [smem:[#allocation7 + $0x27]] }
  0x78   :  { %8483 = sst [smem:[#allocation98_spill]] %s7694_s3  ;;  %s7716_s3 = sld [smem:[#allocation7 + $0x28]] }
  0x79   :  { %8484 = sst [smem:[#allocation99_spill]] %s7696_s7  ;;  %s7718_s7 = sld [smem:[#allocation7 + $0x29]] }
  0x7a   :  { %8485 = sst [smem:[#allocation100_spill]] %s7698_s21  ;;  %s7720_s21 = sld [smem:[#allocation7 + $0x2a]] }
  0x7b   :  { %8486 = sst [smem:[#allocation101_spill]] %s7700_s14  ;;  %s7722_s14 = sld [smem:[#allocation7 + $0x2b]] }
  0x7c   :  { %8487 = sst [smem:[#allocation102_spill]] %s7702_s13  ;;  %s7724_s13 = sld [smem:[#allocation7 + $0x2c]] }
  0x7d   :  { %8488 = sst [smem:[#allocation103_spill]] %s7704_s12  ;;  %s7726_s12 = sld [smem:[#allocation7 + $0x2d]] }
  0x7e   :  { %8489 = sst [smem:[#allocation104_spill]] %s7706_s11  ;;  %s7728_s11 = sld [smem:[#allocation7 + $0x2e]] }
  0x7f   :  { %8490 = sst [smem:[#allocation105_spill]] %s7708_s10  ;;  %s7730_s10 = sld [smem:[#allocation7 + $0x2f]] }
  0x80   :  { %8491 = sst [smem:[#allocation106_spill]] %s7710_s9  ;;  %s7732_s9 = sld [smem:[#allocation7 + $0x30]] }
  0x81   :  { %8492 = sst [smem:[#allocation107_spill]] %s7712_s5 }
  0x82   :  { %8493 = sst [smem:[#allocation108_spill]] %s7714_s2  ;;  %s7734_s2 = sld [smem:[#allocation7 + $0x31]] }
  0x83   :  { %8494 = sst [smem:[#allocation109_spill]] %s7716_s3  ;;  %s7736_s3 = sld [smem:[#allocation7 + $0x32]] }
  0x84   :  { %8495 = sst [smem:[#allocation110_spill]] %s7718_s7  ;;  %s7738_s7 = sld [smem:[#allocation7 + $0x33]] }
  0x85   :  { %8496 = sst [smem:[#allocation111_spill]] %s7720_s21  ;;  %s7740_s21 = sld [smem:[#allocation7 + $0x34]] }
  0x86   :  { %8497 = sst [smem:[#allocation112_spill]] %s7722_s14  ;;  %s7742_s14 = sld [smem:[#allocation7 + $0x35]] }
  0x87   :  { %8498 = sst [smem:[#allocation113_spill]] %s7724_s13  ;;  %s7744_s13 = sld [smem:[#allocation7 + $0x36]] }
  0x88   :  { %8499 = sst [smem:[#allocation114_spill]] %s7726_s12  ;;  %s7746_s12 = sld [smem:[#allocation7 + $0x37]] }
  0x89   :  { %8500 = sst [smem:[#allocation115_spill]] %s7728_s11  ;;  %s7748_s11 = sld [smem:[#allocation7 + $0x38]] }
  0x8a   :  { %8501 = sst [smem:[#allocation116_spill]] %s7730_s10  ;;  %s7750_s10 = sld [smem:[#allocation7 + $0x39]] }
  0x8b   :  { %8502 = sst [smem:[#allocation117_spill]] %s7732_s9  ;;  %s7752_s9 = sld [smem:[#allocation7 + $0x3a]] }
  0x8c   :  { %8503 = sst [smem:[#allocation118_spill]] %s7734_s2  ;;  %s7754_s5 = sld [smem:[#allocation7 + $0x3b]] }
  0x8d   :  { %8504 = sst [smem:[#allocation119_spill]] %s7736_s3  ;;  %s7756_s2 = sld [smem:[#allocation7 + $0x3c]] }
  0x8e   :  { %8505 = sst [smem:[#allocation120_spill]] %s7738_s7  ;;  %s7758_s3 = sld [smem:[#allocation7 + $0x3d]] }
  0x8f   :  { %8506 = sst [smem:[#allocation121_spill]] %s7740_s21  ;;  %s7760_s7 = sld [smem:[#allocation7 + $0x3e]] }
  0x90   :  { %8507 = sst [smem:[#allocation122_spill]] %s7742_s14  ;;  %s7762_s21 = sld [smem:[#allocation7 + $0x3f]] }
  0x91   :  { %8508 = sst [smem:[#allocation123_spill]] %s7744_s13 }
  0x92   :  { %8509 = sst [smem:[#allocation124_spill]] %s7746_s12  ;;  %s176_s12 = scalar_lea.vmem %s8446_s1, %s7636_s27 }
  0x93   :  { %8510 = sst [smem:[#allocation125_spill]] %s7750_s10  ;;  %v194_v0 = vld [vmem:[%s176_s12] sm:$0x1] }
  0x94   :  { %8511 = sst [smem:[#allocation126_spill]] %s7752_s9  ;;  %195 = vst [vmem:[#allocation2] sm:$0x1] %v194_v0 }
  0x95   :  { %8512 = sst [smem:[#allocation127_spill]] %s7754_s5 }
  0x96   :  { %8513 = sst [smem:[#allocation128_spill]] %s7758_s3 }
  0x97   :  { %8514 = sst [smem:[#allocation129_spill]] %s7760_s7 }
  0x98   :  { %8515 = sst [smem:[#allocation130_spill]] %s7762_s21 }
  0x99   :  { %220 = vsyncadd [#allocation6], 16  ;;  %s221_s5 = scalar_lea.vmem %s8446_s1, %s7638_s28 }
  0x9a   :  { %v240_v1 = vld [vmem:[%s221_s5] sm:$0x1] }
  0x9b   :  { %241 = vst [vmem:[#allocation2 + $0x1] sm:$0x1] %v240_v1 }
  0x9c   :  { %266 = vsyncadd [#allocation6], 16  ;;  %s267_s21 = scalar_lea.vmem %s8446_s1, %s7640_s29 }
  0x9d   :  { %v286_v2 = vld [vmem:[%s267_s21] sm:$0x1] }
  0x9e   :  { %287 = vst [vmem:[#allocation2 + $0x2] sm:$0x1] %v286_v2 }
  0x9f   :  { %312 = vsyncadd [#allocation6], 16  ;;  %s313_s14 = scalar_lea.vmem %s8446_s1, %s7642_s15 }
  0xa0   :  { %v332_v3 = vld [vmem:[%s313_s14] sm:$0x1] }
  0xa1   :  { %333 = vst [vmem:[#allocation2 + $0x3] sm:$0x1] %v332_v3 }
  0xa2   :  { %358 = vsyncadd [#allocation6], 16  ;;  %s359_s10 = scalar_lea.vmem %s8446_s1, %s7644_s4 }
  0xa3   :  { %v378_v4 = vld [vmem:[%s359_s10] sm:$0x1] }
  0xa4   :  { %379 = vst [vmem:[#allocation2 + $0x4] sm:$0x1] %v378_v4 }
  0xa5   :  { %404 = vsyncadd [#allocation6], 16  ;;  %s405_s28 = scalar_lea.vmem %s8446_s1, %s7646_s8 }
  0xa6   :  { %v424_v5 = vld [vmem:[%s405_s28] sm:$0x1] }
  0xa7   :  { %425 = vst [vmem:[#allocation2 + $0x5] sm:$0x1] %v424_v5 }
  0xa8   :  { %450 = vsyncadd [#allocation6], 16  ;;  %s451_s7 = scalar_lea.vmem %s8446_s1, %s7648_s25 }
  0xa9   :  { %v470_v6 = vld [vmem:[%s451_s7] sm:$0x1] }
  0xaa   :  { %471 = vst [vmem:[#allocation2 + $0x6] sm:$0x1] %v470_v6 }
  0xab   :  { %496 = vsyncadd [#allocation6], 16  ;;  %s497_s12 = scalar_lea.vmem %s8446_s1, %s7650_s26 }
  0xac   :  { %v516_v7 = vld [vmem:[%s497_s12] sm:$0x1] }
  0xad   :  { %517 = vst [vmem:[#allocation2 + $0x7] sm:$0x1] %v516_v7 }
  0xae   :  { %542 = vsyncadd [#allocation6], 16  ;;  %s543_s14 = scalar_lea.vmem %s8446_s1, %s7652_s23 }
  0xaf   :  { %v562_v8 = vld [vmem:[%s543_s14] sm:$0x1] }
  0xb0   :  { %563 = vst [vmem:[#allocation2 + $0x8] sm:$0x1] %v562_v8 }
  0xb1   :  { %588 = vsyncadd [#allocation6], 16  ;;  %s589_s9 = scalar_lea.vmem %s8446_s1, %s7654_s16 }
  0xb2   :  { %v608_v9 = vld [vmem:[%s589_s9] sm:$0x1] }
  0xb3   :  { %609 = vst [vmem:[#allocation2 + $0x9] sm:$0x1] %v608_v9 }
  0xb4   :  { %634 = vsyncadd [#allocation6], 16  ;;  %s635_s3 = scalar_lea.vmem %s8446_s1, %s7656_s18 }
  0xb5   :  { %v654_v10 = vld [vmem:[%s635_s3] sm:$0x1] }
  0xb6   :  { %655 = vst [vmem:[#allocation2 + $0xa] sm:$0x1] %v654_v10 }
  0xb7   :  { %680 = vsyncadd [#allocation6], 16  ;;  %s681_s28 = scalar_lea.vmem %s8446_s1, %s7658_s17 }
  0xb8   :  { %v700_v11 = vld [vmem:[%s681_s28] sm:$0x1] }
  0xb9   :  { %701 = vst [vmem:[#allocation2 + $0xb] sm:$0x1] %v700_v11 }
  0xba   :  { %726 = vsyncadd [#allocation6], 16  ;;  %s727_s15 = scalar_lea.vmem %s8446_s1, %s7660_s0 }
  0xbb   :  { %v746_v12 = vld [vmem:[%s727_s15] sm:$0x1] }
  0xbc   :  { %747 = vst [vmem:[#allocation2 + $0xc] sm:$0x1] %v746_v12 }
  0xbd   :  { %772 = vsyncadd [#allocation6], 16  ;;  %s773_s4 = scalar_lea.vmem %s8446_s1, %s7662_s19 }
  0xbe   :  { %v792_v13 = vld [vmem:[%s773_s4] sm:$0x1] }
  0xbf   :  { %793 = vst [vmem:[#allocation2 + $0xd] sm:$0x1] %v792_v13 }
  0xc0   :  { %818 = vsyncadd [#allocation6], 16  ;;  %s819_s12 = scalar_lea.vmem %s8446_s1, %s7664_s20 }
  0xc1   :  { %v838_v14 = vld [vmem:[%s819_s12] sm:$0x1] }
  0xc2   :  { %839 = vst [vmem:[#allocation2 + $0xe] sm:$0x1] %v838_v14 }
  0xc3   :  { %864 = vsyncadd [#allocation6], 16  ;;  %s865_s13 = scalar_lea.vmem %s8446_s1, %s7666_s22 }
  0xc4   :  { %v884_v15 = vld [vmem:[%s865_s13] sm:$0x1] }
  0xc5   :  { %885 = vst [vmem:[#allocation2 + $0xf] sm:$0x1] %v884_v15 }
  0xc6   :  { %910 = vsyncadd [#allocation6], 16  ;;  %s911_s25 = scalar_lea.vmem %s8446_s1, %s7668_s24 }
  0xc7   :  { %v930_v16 = vld [vmem:[%s911_s25] sm:$0x1] }
  0xc8   :  { %931 = vst [vmem:[#allocation2 + $0x10] sm:$0x1] %v930_v16 }
  0xc9   :  { %956 = vsyncadd [#allocation6], 16  ;;  %s957_s9 = scalar_lea.vmem %s8446_s1, %s7670_s6 }
  0xca   :  { %v976_v17 = vld [vmem:[%s957_s9] sm:$0x1] }
  0xcb   :  { %977 = vst [vmem:[#allocation2 + $0x11] sm:$0x1] %v976_v17 }
  0xcc   :  { %1002 = vsyncadd [#allocation6], 16  ;;  %s1003_s10 = scalar_lea.vmem %s8446_s1, %s7672_s30 }
  0xcd   :  { %v1022_v18 = vld [vmem:[%s1003_s10] sm:$0x1] }
  0xce   :  { %1023 = vst [vmem:[#allocation2 + $0x12] sm:$0x1] %v1022_v18 }
  0xcf   :  { %1048 = vsyncadd [#allocation6], 16  ;;  %s8516_s24 = sld [smem:[#allocation88_spill]] }
  0xd5   :  { %s1049_s27 = scalar_lea.vmem %s8446_s1, %s8516_s24 }
  0xd6   :  { %v1068_v19 = vld [vmem:[%s1049_s27] sm:$0x1] }
  0xd7   :  { %1069 = vst [vmem:[#allocation2 + $0x13] sm:$0x1] %v1068_v19 }
  0xd8   :  { %1094 = vsyncadd [#allocation6], 16  ;;  %s8517_s6 = sld [smem:[#allocation89_spill]] }
  0xde   :  { %s1095_s29 = scalar_lea.vmem %s8446_s1, %s8517_s6 }
  0xdf   :  { %v1114_v20 = vld [vmem:[%s1095_s29] sm:$0x1] }
  0xe0   :  { %1115 = vst [vmem:[#allocation2 + $0x14] sm:$0x1] %v1114_v20 }
  0xe1   :  { %1140 = vsyncadd [#allocation6], 16  ;;  %s8518_s30 = sld [smem:[#allocation90_spill]] }
  0xe7   :  { %s1141_s7 = scalar_lea.vmem %s8446_s1, %s8518_s30 }
  0xe8   :  { %v1160_v21 = vld [vmem:[%s1141_s7] sm:$0x1] }
  0xe9   :  { %1161 = vst [vmem:[#allocation2 + $0x15] sm:$0x1] %v1160_v21 }
  0xea   :  { %1186 = vsyncadd [#allocation6], 16  ;;  %s8519_s4 = sld [smem:[#allocation91_spill]] }
  0xf0   :  { %s1187_s12 = scalar_lea.vmem %s8446_s1, %s8519_s4 }
  0xf1   :  { %v1206_v22 = vld [vmem:[%s1187_s12] sm:$0x1] }
  0xf2   :  { %1207 = vst [vmem:[#allocation2 + $0x16] sm:$0x1] %v1206_v22 }
  0xf3   :  { %1232 = vsyncadd [#allocation6], 16  ;;  %s8520_s0 = sld [smem:[#allocation92_spill]] }
  0xf9   :  { %s1233_s19 = scalar_lea.vmem %s8446_s1, %s8520_s0 }
  0xfa   :  { %v1252_v23 = vld [vmem:[%s1233_s19] sm:$0x1] }
  0xfb   :  { %1253 = vst [vmem:[#allocation2 + $0x17] sm:$0x1] %v1252_v23 }
  0xfc   :  { %1278 = vsyncadd [#allocation6], 16  ;;  %s8521_s14 = sld [smem:[#allocation93_spill]] }
 0x102   :  { %s1279_s5 = scalar_lea.vmem %s8446_s1, %s8521_s14 }
 0x103   :  { %v1298_v24 = vld [vmem:[%s1279_s5] sm:$0x1] }
 0x104   :  { %1299 = vst [vmem:[#allocation2 + $0x18] sm:$0x1] %v1298_v24 }
 0x105   :  { %1324 = vsyncadd [#allocation6], 16  ;;  %s8522_s9 = sld [smem:[#allocation94_spill]] }
 0x10b   :  { %s1325_s10 = scalar_lea.vmem %s8446_s1, %s8522_s9 }
 0x10c   :  { %v1344_v25 = vld [vmem:[%s1325_s10] sm:$0x1] }
 0x10d   :  { %1345 = vst [vmem:[#allocation2 + $0x19] sm:$0x1] %v1344_v25 }
 0x10e   :  { %1370 = vsyncadd [#allocation6], 16  ;;  %s8523_s24 = sld [smem:[#allocation95_spill]] }
 0x114   :  { %s1371_s27 = scalar_lea.vmem %s8446_s1, %s8523_s24 }
 0x115   :  { %v1390_v26 = vld [vmem:[%s1371_s27] sm:$0x1] }
 0x116   :  { %1391 = vst [vmem:[#allocation2 + $0x1a] sm:$0x1] %v1390_v26 }
 0x117   :  { %1416 = vsyncadd [#allocation6], 16  ;;  %s8524_s6 = sld [smem:[#allocation96_spill]] }
 0x11d   :  { %s1417_s29 = scalar_lea.vmem %s8446_s1, %s8524_s6 }
 0x11e   :  { %v1436_v27 = vld [vmem:[%s1417_s29] sm:$0x1] }
 0x11f   :  { %1437 = vst [vmem:[#allocation2 + $0x1b] sm:$0x1] %v1436_v27 }
 0x120   :  { %1462 = vsyncadd [#allocation6], 16  ;;  %s8525_s30 = sld [smem:[#allocation97_spill]] }
 0x126   :  { %s1463_s7 = scalar_lea.vmem %s8446_s1, %s8525_s30 }
 0x127   :  { %v1482_v28 = vld [vmem:[%s1463_s7] sm:$0x1] }
 0x128   :  { %1483 = vst [vmem:[#allocation2 + $0x1c] sm:$0x1] %v1482_v28 }
 0x129   :  { %1508 = vsyncadd [#allocation6], 16  ;;  %s8526_s4 = sld [smem:[#allocation98_spill]] }
 0x12f   :  { %s1509_s12 = scalar_lea.vmem %s8446_s1, %s8526_s4 }
 0x130   :  { %v1528_v29 = vld [vmem:[%s1509_s12] sm:$0x1] }
 0x131   :  { %1529 = vst [vmem:[#allocation2 + $0x1d] sm:$0x1] %v1528_v29 }
 0x132   :  { %1554 = vsyncadd [#allocation6], 16  ;;  %s8527_s0 = sld [smem:[#allocation99_spill]] }
 0x138   :  { %s1555_s19 = scalar_lea.vmem %s8446_s1, %s8527_s0 }
 0x139   :  { %v1574_v30 = vld [vmem:[%s1555_s19] sm:$0x1] }
 0x13a   :  { %1575 = vst [vmem:[#allocation2 + $0x1e] sm:$0x1] %v1574_v30 }
 0x13b   :  { %1600 = vsyncadd [#allocation6], 16  ;;  %s8528_s14 = sld [smem:[#allocation100_spill]] }
 0x141   :  { %s1601_s5 = scalar_lea.vmem %s8446_s1, %s8528_s14 }
 0x142   :  { %v1620_v31 = vld [vmem:[%s1601_s5] sm:$0x1] }
 0x143   :  { %1621 = vst [vmem:[#allocation2 + $0x1f] sm:$0x1] %v1620_v31 }
 0x144   :  { %1646 = vsyncadd [#allocation6], 16  ;;  %s8529_s9 = sld [smem:[#allocation101_spill]] }
 0x14a   :  { %s1647_s10 = scalar_lea.vmem %s8446_s1, %s8529_s9 }
 0x14b   :  { %v1666_v32 = vld [vmem:[%s1647_s10] sm:$0x1] }
 0x14c   :  { %1667 = vst [vmem:[#allocation2 + $0x20] sm:$0x1] %v1666_v32 }
 0x14d   :  { %1692 = vsyncadd [#allocation6], 16  ;;  %s8530_s24 = sld [smem:[#allocation102_spill]] }
 0x153   :  { %s1693_s27 = scalar_lea.vmem %s8446_s1, %s8530_s24 }
 0x154   :  { %v1712_v33 = vld [vmem:[%s1693_s27] sm:$0x1] }
 0x155   :  { %1713 = vst [vmem:[#allocation2 + $0x21] sm:$0x1] %v1712_v33 }
 0x156   :  { %1738 = vsyncadd [#allocation6], 16  ;;  %s8531_s6 = sld [smem:[#allocation103_spill]] }
 0x15c   :  { %s1739_s29 = scalar_lea.vmem %s8446_s1, %s8531_s6 }
 0x15d   :  { %v1758_v34 = vld [vmem:[%s1739_s29] sm:$0x1] }
 0x15e   :  { %1759 = vst [vmem:[#allocation2 + $0x22] sm:$0x1] %v1758_v34 }
 0x15f   :  { %1784 = vsyncadd [#allocation6], 16  ;;  %s8532_s30 = sld [smem:[#allocation104_spill]] }
 0x165   :  { %s1785_s7 = scalar_lea.vmem %s8446_s1, %s8532_s30 }
 0x166   :  { %v1804_v35 = vld [vmem:[%s1785_s7] sm:$0x1] }
 0x167   :  { %1805 = vst [vmem:[#allocation2 + $0x23] sm:$0x1] %v1804_v35 }
 0x168   :  { %1830 = vsyncadd [#allocation6], 16  ;;  %s8533_s4 = sld [smem:[#allocation105_spill]] }
 0x16e   :  { %s1831_s12 = scalar_lea.vmem %s8446_s1, %s8533_s4 }
 0x16f   :  { %v1850_v36 = vld [vmem:[%s1831_s12] sm:$0x1] }
 0x170   :  { %1851 = vst [vmem:[#allocation2 + $0x24] sm:$0x1] %v1850_v36 }
 0x171   :  { %1876 = vsyncadd [#allocation6], 16  ;;  %s8534_s0 = sld [smem:[#allocation106_spill]] }
 0x177   :  { %s1877_s19 = scalar_lea.vmem %s8446_s1, %s8534_s0 }
 0x178   :  { %v1896_v37 = vld [vmem:[%s1877_s19] sm:$0x1] }
 0x179   :  { %1897 = vst [vmem:[#allocation2 + $0x25] sm:$0x1] %v1896_v37 }
 0x17a   :  { %1922 = vsyncadd [#allocation6], 16  ;;  %s8535_s14 = sld [smem:[#allocation107_spill]] }
 0x180   :  { %s1923_s5 = scalar_lea.vmem %s8446_s1, %s8535_s14 }
 0x181   :  { %v1942_v38 = vld [vmem:[%s1923_s5] sm:$0x1] }
 0x182   :  { %1943 = vst [vmem:[#allocation2 + $0x26] sm:$0x1] %v1942_v38 }
 0x183   :  { %1968 = vsyncadd [#allocation6], 16  ;;  %s8536_s9 = sld [smem:[#allocation108_spill]] }
 0x189   :  { %s1969_s10 = scalar_lea.vmem %s8446_s1, %s8536_s9 }
 0x18a   :  { %v1988_v39 = vld [vmem:[%s1969_s10] sm:$0x1] }
 0x18b   :  { %1989 = vst [vmem:[#allocation2 + $0x27] sm:$0x1] %v1988_v39 }
 0x18c   :  { %2014 = vsyncadd [#allocation6], 16  ;;  %s8537_s24 = sld [smem:[#allocation109_spill]] }
 0x192   :  { %s2015_s27 = scalar_lea.vmem %s8446_s1, %s8537_s24 }
 0x193   :  { %v2034_v40 = vld [vmem:[%s2015_s27] sm:$0x1] }
 0x194   :  { %2035 = vst [vmem:[#allocation2 + $0x28] sm:$0x1] %v2034_v40 }
 0x195   :  { %2060 = vsyncadd [#allocation6], 16  ;;  %s8538_s6 = sld [smem:[#allocation110_spill]] }
 0x19b   :  { %s2061_s29 = scalar_lea.vmem %s8446_s1, %s8538_s6 }
 0x19c   :  { %v2080_v41 = vld [vmem:[%s2061_s29] sm:$0x1] }
 0x19d   :  { %2081 = vst [vmem:[#allocation2 + $0x29] sm:$0x1] %v2080_v41 }
 0x19e   :  { %2106 = vsyncadd [#allocation6], 16  ;;  %s8539_s30 = sld [smem:[#allocation111_spill]] }
 0x1a4   :  { %s2107_s7 = scalar_lea.vmem %s8446_s1, %s8539_s30 }
 0x1a5   :  { %v2126_v42 = vld [vmem:[%s2107_s7] sm:$0x1] }
 0x1a6   :  { %2127 = vst [vmem:[#allocation2 + $0x2a] sm:$0x1] %v2126_v42 }
 0x1a7   :  { %2152 = vsyncadd [#allocation6], 16  ;;  %s8540_s4 = sld [smem:[#allocation112_spill]] }
 0x1ad   :  { %s2153_s12 = scalar_lea.vmem %s8446_s1, %s8540_s4 }
 0x1ae   :  { %v2172_v43 = vld [vmem:[%s2153_s12] sm:$0x1] }
 0x1af   :  { %2173 = vst [vmem:[#allocation2 + $0x2b] sm:$0x1] %v2172_v43 }
 0x1b0   :  { %2198 = vsyncadd [#allocation6], 16  ;;  %s8541_s0 = sld [smem:[#allocation113_spill]] }
 0x1b6   :  { %s2199_s19 = scalar_lea.vmem %s8446_s1, %s8541_s0 }
 0x1b7   :  { %v2218_v44 = vld [vmem:[%s2199_s19] sm:$0x1] }
 0x1b8   :  { %2219 = vst [vmem:[#allocation2 + $0x2c] sm:$0x1] %v2218_v44 }
 0x1b9   :  { %2244 = vsyncadd [#allocation6], 16  ;;  %s8542_s14 = sld [smem:[#allocation114_spill]] }
 0x1bf   :  { %s2245_s5 = scalar_lea.vmem %s8446_s1, %s8542_s14 }
 0x1c0   :  { %v2264_v45 = vld [vmem:[%s2245_s5] sm:$0x1] }
 0x1c1   :  { %2265 = vst [vmem:[#allocation2 + $0x2d] sm:$0x1] %v2264_v45 }
 0x1c2   :  { %2290 = vsyncadd [#allocation6], 16  ;;  %s8543_s9 = sld [smem:[#allocation115_spill]] }
 0x1c8   :  { %s2291_s10 = scalar_lea.vmem %s8446_s1, %s8543_s9 }
 0x1c9   :  { %v2310_v46 = vld [vmem:[%s2291_s10] sm:$0x1] }
 0x1ca   :  { %2311 = vst [vmem:[#allocation2 + $0x2e] sm:$0x1] %v2310_v46 }
 0x1cb   :  { %2336 = vsyncadd [#allocation6], 16  ;;  %s8544_s24 = sld [smem:[#allocation116_spill]] }
 0x1d1   :  { %s2337_s27 = scalar_lea.vmem %s8446_s1, %s8544_s24 }
 0x1d2   :  { %v2356_v47 = vld [vmem:[%s2337_s27] sm:$0x1] }
 0x1d3   :  { %2357 = vst [vmem:[#allocation2 + $0x2f] sm:$0x1] %v2356_v47 }
 0x1d4   :  { %2382 = vsyncadd [#allocation6], 16  ;;  %s8545_s6 = sld [smem:[#allocation117_spill]] }
 0x1da   :  { %s2383_s29 = scalar_lea.vmem %s8446_s1, %s8545_s6 }
 0x1db   :  { %v2402_v48 = vld [vmem:[%s2383_s29] sm:$0x1] }
 0x1dc   :  { %2403 = vst [vmem:[#allocation2 + $0x30] sm:$0x1] %v2402_v48 }
 0x1dd   :  { %2428 = vsyncadd [#allocation6], 16  ;;  %s8546_s30 = sld [smem:[#allocation118_spill]] }
 0x1e3   :  { %s2429_s7 = scalar_lea.vmem %s8446_s1, %s8546_s30 }
 0x1e4   :  { %v2448_v49 = vld [vmem:[%s2429_s7] sm:$0x1] }
 0x1e5   :  { %2449 = vst [vmem:[#allocation2 + $0x31] sm:$0x1] %v2448_v49 }
 0x1e6   :  { %2474 = vsyncadd [#allocation6], 16  ;;  %s8547_s4 = sld [smem:[#allocation119_spill]] }
 0x1ec   :  { %s2475_s12 = scalar_lea.vmem %s8446_s1, %s8547_s4 }
 0x1ed   :  { %v2494_v50 = vld [vmem:[%s2475_s12] sm:$0x1] }
 0x1ee   :  { %2495 = vst [vmem:[#allocation2 + $0x32] sm:$0x1] %v2494_v50 }
 0x1ef   :  { %2520 = vsyncadd [#allocation6], 16  ;;  %s8548_s0 = sld [smem:[#allocation120_spill]] }
 0x1f5   :  { %s2521_s19 = scalar_lea.vmem %s8446_s1, %s8548_s0 }
 0x1f6   :  { %v2540_v51 = vld [vmem:[%s2521_s19] sm:$0x1] }
 0x1f7   :  { %2541 = vst [vmem:[#allocation2 + $0x33] sm:$0x1] %v2540_v51 }
 0x1f8   :  { %2566 = vsyncadd [#allocation6], 16  ;;  %s8549_s14 = sld [smem:[#allocation121_spill]] }
 0x1fe   :  { %s2567_s5 = scalar_lea.vmem %s8446_s1, %s8549_s14 }
 0x1ff   :  { %v2586_v52 = vld [vmem:[%s2567_s5] sm:$0x1] }
 0x200   :  { %2587 = vst [vmem:[#allocation2 + $0x34] sm:$0x1] %v2586_v52 }
 0x201   :  { %2612 = vsyncadd [#allocation6], 16  ;;  %s8550_s9 = sld [smem:[#allocation122_spill]] }
 0x207   :  { %s2613_s10 = scalar_lea.vmem %s8446_s1, %s8550_s9 }
 0x208   :  { %v2632_v53 = vld [vmem:[%s2613_s10] sm:$0x1] }
 0x209   :  { %2633 = vst [vmem:[#allocation2 + $0x35] sm:$0x1] %v2632_v53 }
 0x20a   :  { %2658 = vsyncadd [#allocation6], 16  ;;  %s8551_s24 = sld [smem:[#allocation123_spill]] }
 0x210   :  { %s2659_s27 = scalar_lea.vmem %s8446_s1, %s8551_s24 }
 0x211   :  { %v2678_v54 = vld [vmem:[%s2659_s27] sm:$0x1] }
 0x212   :  { %2679 = vst [vmem:[#allocation2 + $0x36] sm:$0x1] %v2678_v54 }
 0x213   :  { %2704 = vsyncadd [#allocation6], 16  ;;  %s8552_s6 = sld [smem:[#allocation124_spill]] }
 0x219   :  { %s2705_s29 = scalar_lea.vmem %s8446_s1, %s8552_s6 }
 0x21a   :  { %v2724_v55 = vld [vmem:[%s2705_s29] sm:$0x1] }
 0x21b   :  { %2725 = vst [vmem:[#allocation2 + $0x37] sm:$0x1] %v2724_v55 }
 0x21c   :  { %2750 = vsyncadd [#allocation6], 16  ;;  %s2751_s18 = scalar_lea.vmem %s8446_s1, %s7748_s11 }
 0x21d   :  { %v2770_v56 = vld [vmem:[%s2751_s18] sm:$0x1] }
 0x21e   :  { %2771 = vst [vmem:[#allocation2 + $0x38] sm:$0x1] %v2770_v56 }
 0x21f   :  { %2796 = vsyncadd [#allocation6], 16  ;;  %s8553_s7 = sld [smem:[#allocation125_spill]] }
 0x225   :  { %s2797_s21 = scalar_lea.vmem %s8446_s1, %s8553_s7 }
 0x226   :  { %v2816_v57 = vld [vmem:[%s2797_s21] sm:$0x1] }
 0x227   :  { %2817 = vst [vmem:[#allocation2 + $0x39] sm:$0x1] %v2816_v57 }
 0x228   :  { %2842 = vsyncadd [#allocation6], 16  ;;  %s8554_s12 = sld [smem:[#allocation126_spill]] }
 0x22e   :  { %s2843_s13 = scalar_lea.vmem %s8446_s1, %s8554_s12 }
 0x22f   :  { %v2862_v58 = vld [vmem:[%s2843_s13] sm:$0x1] }
 0x230   :  { %2863 = vst [vmem:[#allocation2 + $0x3a] sm:$0x1] %v2862_v58 }
 0x231   :  { %2888 = vsyncadd [#allocation6], 16  ;;  %s8555_s11 = sld [smem:[#allocation127_spill]] }
 0x237   :  { %s2889_s25 = scalar_lea.vmem %s8446_s1, %s8555_s11 }
 0x238   :  { %v2908_v59 = vld [vmem:[%s2889_s25] sm:$0x1] }
 0x239   :  { %2909 = vst [vmem:[#allocation2 + $0x3b] sm:$0x1] %v2908_v59 }
 0x23a   :  { %2934 = vsyncadd [#allocation6], 16  ;;  %s2935_s9 = scalar_lea.vmem %s8446_s1, %s7756_s2 }
 0x23b   :  { %v2954_v60 = vld [vmem:[%s2935_s9] sm:$0x1] }
 0x23c   :  { %2955 = vst [vmem:[#allocation2 + $0x3c] sm:$0x1] %v2954_v60 }
 0x23d   :  { %2980 = vsyncadd [#allocation6], 16  ;;  %s8556_s22 = sld [smem:[#allocation128_spill]] }
 0x243   :  { %s2981_s24 = scalar_lea.vmem %s8446_s1, %s8556_s22 }
 0x244   :  { %v3000_v61 = vld [vmem:[%s2981_s24] sm:$0x1] }
 0x245   :  { %3001 = vst [vmem:[#allocation2 + $0x3d] sm:$0x1] %v3000_v61 }
 0x246   :  { %3026 = vsyncadd [#allocation6], 16  ;;  %s8557_s3 = sld [smem:[#allocation129_spill]] }
 0x24c   :  { %s3027_s6 = scalar_lea.vmem %s8446_s1, %s8557_s3 }
 0x24d   :  { %v3046_v62 = vld [vmem:[%s3027_s6] sm:$0x1] }
 0x24e   :  { %3047 = vst [vmem:[#allocation2 + $0x3e] sm:$0x1] %v3046_v62 }
 0x24f   :  { %3072 = vsyncadd [#allocation6], 16  ;;  %s8558_s2 = sld [smem:[#allocation130_spill]] }
 0x255   :  { %s3073_s29 = scalar_lea.vmem %s8446_s1, %s8558_s2 }
 0x256   :  { %v3092_v63 = vld [vmem:[%s3073_s29] sm:$0x1] }
 0x257   :  { %3093 = vst [vmem:[#allocation2 + $0x3f] sm:$0x1] %v3092_v63 }
 0x258   :  { %3118 = vsyncadd [#allocation6], 16 }
 0x259   :  { %7472 = dma.done.wait [#allocation6], 1024 }
 0x25a   :  { %7473 = vsyncadd [#allocation6], 4294966272  ;;  %vm3256_vm0 = vcmask 261120   ;;  %s8559_s18 = sld [smem:[#allocation132_spill]]  ;;  %v8034_v6 = vld [vmem:[#allocation2 + $0x30] sm:$0xff]  ;;  %s8560_s13 = sld [smem:[#allocation131_spill]] }
 0x25b   :  { %3258 = vst.msk [vmem:[#allocation3 + $0x8] sm:$0xff] %vm3256_vm0, %v8034_v6  ;;  %v8046_v10 = vld [vmem:[#allocation2 + $0x18] sm:$0xff]  ;;  %v8050_v11 = vld [vmem:[#allocation2 + $0x28] sm:$0xff]  ;;  %v3250_v12 = vld [vmem:[#allocation2 + $0x10] sm:$0xff]  ;;  %v7483_v23 = vmov 0.0|0.0   ;;  %vm7484_vm1 = vmmov 0  }
 0x25c   :  { %3261 = vst.msk [vmem:[#allocation3 + $0x20] sm:$0xff] %vm3256_vm0, %v8046_v10  ;;  %v8052_v13 = vld [vmem:[#allocation2 + $0x20] sm:$0xff]  ;;  %3259 = vst.msk [vmem:[#allocation3 + $0x10] sm:$0xff] %vm3256_vm0, %v8050_v11  ;;  %v3249_v15 = vld [vmem:[#allocation2 + $0x8] sm:$0xff]  ;;  %v7485_v35 = vmov 0.0   ;;  %s8561_s26 = sld [smem:[#allocation133_spill]] }
 0x25d   :  { %3262 = vst.msk [vmem:[#allocation3 + $0x28] sm:$0xff] %vm3256_vm0, %v3250_v12  ;;  %3260 = vst.msk [vmem:[#allocation3 + $0x18] sm:$0xff] %vm3256_vm0, %v8052_v13  ;;  %v3248_v16 = vld [vmem:[#allocation2] sm:$0xff]  ;;  %v3560_v20 = vld [vmem:[#allocation11 + $0x8] sm:$0xff]  ;;  %s7486_s10 = smov 64   ;;  %s7487_s24 = smov 32  }
 0x25e   :  { %v8032_v5 = vld [vmem:[#allocation2 + $0x38] sm:$0xff]  ;;  %3263 = vst.msk [vmem:[#allocation3 + $0x30] sm:$0xff] %vm3256_vm0, %v3249_v15  ;;  %3264 = vst.msk [vmem:[#allocation3 + $0x38] sm:$0xff] %vm3256_vm0, %v3248_v16  ;;  %v3559_v19 = vld [vmem:[#allocation11] sm:$0xff]  ;;  %s8564_s27 = sld [smem:[#allocation134_spill]]  ;;  %s8565_s28 = sld [smem:[#allocation135_spill]] }
 0x25f   :  { %3257 = vst.msk [vmem:[#allocation3] sm:$0xff] %vm3256_vm0, %v8032_v5  ;;  %v8069_v26 = vpack.c.bf16 %v3560_v20, %v3559_v19  ;;  %v3561_v27 = vld [vmem:[#allocation11 + $0x10] sm:$0xff]  ;;  %v3562_v30 = vld [vmem:[#allocation11 + $0x18] sm:$0xff]  ;;  %s8566_s14 = sld [smem:[#allocation136_spill]]  ;;  %s8567_s5 = sld [smem:[#allocation137_spill]] }
 0x260   :  { %v3282_v0 = vld [vmem:[%s8559_s18] sm:$0xff]  ;;  %v3283_v1 = vld [vmem:[%s8559_s18 + $0x8] sm:$0xff]  ;;  %v3284_v2 = vld [vmem:[%s8559_s18 + $0x10] sm:$0xff]  ;;  %v8077_v34 = vpack.c.bf16 %v3562_v30, %v3561_v27 }
 0x261   :  { %v7036_v3 = vpack.c.bf16 %v3283_v1, %v3282_v0  ;;  %v3285_v4 = vld [vmem:[%s8559_s18 + $0x18] sm:$0xff]  ;;  %v3278_v8 = vld [vmem:[%s8560_s13] sm:$0xff]  ;;  %v3279_v9 = vld [vmem:[%s8560_s13 + $0x8] sm:$0xff] }
 0x262   :  { %v7040_v7 = vpack.c.bf16 %v3285_v4, %v3284_v2  ;;  %v7044_v14 = vpack.c.bf16 %v3279_v9, %v3278_v8  ;;  %v3280_v17 = vld [vmem:[%s8560_s13 + $0x10] sm:$0xff]  ;;  %v3281_v18 = vld [vmem:[%s8560_s13 + $0x18] sm:$0xff]  ;;  %v3271_v22 = vld [vmem:[#allocation3 + $0x8] sm:$0xff]  ;;  %v3265_v2 = vlaneseq }
 0x263   :  { %7037 = vmatprep.subr.bf16.mxu0 %v7036_v3  ;;  %7176 = vmatprep.subr.bf16.mxu1 %v7036_v3  ;;  %v7048_v24 = vpack.c.bf16 %v3281_v18, %v3280_v17  ;;  %v3274_v25 = vld [vmem:[#allocation3 + $0x20] sm:$0xff]  ;;  %v3272_v28 = vld [vmem:[#allocation3 + $0x10] sm:$0xff] }
 0x264   :  { %7039 = vmatpush3.bf16.msra.mxu0 %v7036_v3  ;;  %7178 = vmatpush3.bf16.msra.mxu1 %v7036_v3  ;;  %v3275_v29 = vld [vmem:[#allocation3 + $0x28] sm:$0xff]  ;;  %v3273_v31 = vld [vmem:[#allocation3 + $0x18] sm:$0xff]  ;;  %v6566_v39 = vld [vmem:[%s8561_s26] ss:$0 sm:$0xff]  ;;  %v3266_v4 = vand.u32 127, %v3265_v2  ;;  %s8568_s26 = sld [smem:[#allocation138_spill]] }
 0x265   :  { %7041 = vmatprep.subr.bf16.mxu0 %v7040_v7  ;;  %7177 = vmatprep.subr.bf16.mxu1 %v7040_v7  ;;  %v3276_v32 = vld [vmem:[#allocation3 + $0x30] sm:$0xff]  ;;  %v3277_v33 = vld [vmem:[#allocation3 + $0x38] sm:$0xff] }
 0x266   :  { %v3270_v21 = vld [vmem:[#allocation3] sm:$0xff]  ;;  %6772 = vmatprep.mubr.msk.f32.mxu1 %vm3256_vm0, %v3274_v25  ;;  %vm3267_vm2 = vcmp.ge.s32.totalorder %v3266_v4, 64  ;;  %vm3268_vm3 = vcmp.lt.s32.totalorder %v3266_v4, 96 }
 0x267   :  { %6766 = vmatprep.mubr.msk.f32.mxu0 %vm3256_vm0, %v3270_v21  ;;  %vm8128_vm4 = vmand %vm3267_vm2, %vm3268_vm3 }
 0x268   :  { %7043 = vmatpush3.bf16.msra.mxu0 %v7040_v7  ;;  %7179 = vmatpush3.bf16.msra.mxu1 %v7040_v7 }
 0x269   :  { %7045 = vmatprep.subr.bf16.mxu0 %v7044_v14  ;;  %7052 = vmatprep.subr.bf16.mxu1 %v7483_v23 }
 0x26b   :  { %6767 = vmatmul.mubr.msk.f32.vlgmr.msra.gmra.mrb[0].mxu0 %vm3256_vm0, %v3271_v22  ;;  %6773 = vmatmul.mubr.msk.f32.vlgmr.msra.gmra.mrb[0].mxu1 %vm3256_vm0, %v3275_v29 }
 0x26c   :  { %7047 = vmatpush3.bf16.msra.mxu0 %v7044_v14  ;;  %6769 = vmatprep.mubr.msk.f32.mxu0 %vm3256_vm0, %v3272_v28 }
 0x26d   :  { %7049 = vmatprep.subr.bf16.mxu0 %v7048_v24  ;;  %7054 = vmatpush3.bf16.msra.mxu1 %v8069_v26 }
 0x26e   :  { %6775 = vmatprep.mubr.msk.f32.mxu1 %vm3256_vm0, %v3276_v32  ;;  %7055 = vmatprep.subr.bf16.mxu1 %v7483_v23 }
 0x26f   :  { %6770 = vmatmul.mubr.msk.f32.gmra.mrb[2].mxu0 %vm3256_vm0, %v3273_v31  ;;  %6776 = vmatmul.mubr.msk.f32.gmra.mrb[2].mxu1 %vm3256_vm0, %v3277_v33 }
 0x270   :  { %7051 = vmatpush3.bf16.msra.mxu0 %v7048_v24  ;;  %6786 = vmatprep.mubr.msk.f32.mxu0 %vm3256_vm0, %v3248_v16 }
 0x271   :  { %7076 = vmatprep.subr.bf16.mxu0 %v7483_v23  ;;  %7057 = vmatpush3.bf16.msra.mxu1 %v8077_v34 }
 0x272   :  { %6806 = vmatprep.mubr.msk.f32.mxu1 %vm7484_vm1, %v7485_v35  ;;  %7058 = vmatprep.subr.bf16.mxu1 %v7483_v23 }
 0x273   :  { %6787 = vmatmul.mubr.msk.f32.vlgmr.msra.gmra.mrb[0].mxu0 %vm3256_vm0, %v3249_v15 }
 0x274   :  { %6789 = vmatprep.mubr.msk.f32.mxu0 %vm3256_vm0, %v3250_v12  ;;  %7078 = vmatpush3.bf16.msra.mxu0 %v8069_v26 }
 0x275   :  { %6807 = vmatmul.mubr.f32.vlgmr.msra.gmra.mrb[4].mxu1 %v7485_v35  ;;  %7079 = vmatprep.subr.bf16.mxu0 %v7483_v23 }
 0x276   :  { %7060 = vmatpush3.bf16.msra.mxu1 %v8069_v26  ;;  %6817 = vmatprep.mubr.msk.f32.mxu1 %vm7484_vm1, %v7485_v35 }
 0x277   :  { %6790 = vmatmul.mubr.msk.f32.gmra.mrb[2].mxu0 %vm3256_vm0, %v8046_v10  ;;  %7061 = vmatprep.subr.bf16.mxu1 %v7483_v23 }
 0x278   :  { %6792 = vmatprep.mubr.msk.f32.mxu0 %vm3256_vm0, %v8052_v13  ;;  %7081 = vmatpush3.bf16.msra.mxu0 %v8077_v34 }
 0x279   :  { %7088 = vmatprep.subr.bf16.mxu0 %v7483_v23 }
 0x27a   :  { %7063 = vmatpush3.bf16.msra.mxu1 %v8077_v34 }
 0x27b   :  { %6793 = vmatmul.mubr.msk.f32.gmra.mrb[4].mxu0 %vm3256_vm0, %v8050_v11  ;;  %7064 = vmatprep.subr.bf16.mxu1 %v7483_v23 }
 0x27c   :  { %6795 = vmatprep.mubr.msk.f32.mxu0 %vm3256_vm0, %v8034_v6 }
 0x27f   :  { %6796 = vmatmul.mubr.msk.f32.gmra.mrb[6].mxu0 %vm3256_vm0, %v8032_v5  ;;  %v5506_v5 = vld [vmem:[%s8565_s28 + $0x30] sm:$0xff] }
 0x280   :  { %6850 = vmatprep.mubr.msk.f32.mxu0 %vm7484_vm1, %v7485_v35 }
 0x33e   :  { %v6774_v36 = vpop.f32.mrb[0].mxu1 }
 0x33f   :  { %v3396_v37 = vpop.f32.mrb[1].mxu1 }
 0x342   :  { %v6777_v38 = vpop.f32.mrb[2].mxu1 }
 0x343   :  { %v3406_v40 = vpop.f32.mrb[3].mxu1 }
 0x346   :  { %v6788_v41 = vpop.f32.mrb[0].mxu0 }
 0x347   :  { %v3552_v42 = vadd.f32 %v6788_v41, %v6566_v39  ;;  %v3505_v43 = vpop.f32.mrb[1].mxu0 }
 0x348   :  { %v3551_v44 = vadd.f32 %v6566_v39, %v3505_v43  ;;  %v3632_v45 = vpop.f32.mrb[4].mxu1 }
 0x349   :  { %v6808_v46 = vpop.f32.mrb[5].mxu1 }
 0x34a   :  { %v3636_v47 = vadd.f32 %v3632_v45, %v3551_v44  ;;  %v6791_v48 = vpop.f32.mrb[2].mxu0 }
 0x34b   :  { %v8116_v49 = vadd.f32 %v6791_v48, %v6566_v39  ;;  %v3515_v50 = vpop.f32.mrb[3].mxu0 }
 0x34c   :  { %v6567_v51 = vmul.f32 -1.442695, %v3636_v47  ;;  %v8118_v52 = vadd.f32 %v6566_v39, %v3515_v50 }
 0x34e   :  { %7212 = vpow2.f32 %v6567_v51  ;;  %v6794_v53 = vpop.f32.mrb[4].mxu0 }
 0x34f   :  { %v3531_v54 = vadd.f32 %v6794_v53, %v6774_v36  ;;  %v3525_v55 = vpop.f32.mrb[5].mxu0  ;;  %7214 = vtanh.f32 %v3636_v47 }
 0x350   :  { %v3526_v56 = vadd.f32 %v3525_v55, %v3396_v37 }
 0x351   :  { %v8120_v57 = vadd.f32 %v6566_v39, %v3531_v54 }
 0x352   :  { %v6797_v58 = vpop.f32.mrb[6].mxu0  ;;  %v8122_v59 = vadd.f32 %v6566_v39, %v3526_v56 }
 0x353   :  { %v3541_v60 = vadd.f32 %v6797_v58, %v6777_v38  ;;  %v3535_v61 = vpop.f32.mrb[7].mxu0 }
 0x354   :  { %v3536_v62 = vadd.f32 %v3535_v61, %v3406_v40 }
 0x355   :  { %v8124_v63 = vadd.f32 %v6566_v39, %v3541_v60 }
 0x356   :  { %v8126_v0 = vadd.f32 %v6566_v39, %v3536_v62 }
 0x358   :  { %v7213_v1 = vpop.eup %7212 }
 0x359   :  { %v3641_v3 = vadd.f32 1.0, %v7213_v1  ;;  %v7215_v6 = vpop.eup %7214 }
 0x35b   :  { %7216 = vrcp.f32 %v3641_v3 }
 0x365   :  { %v7217_v7 = vpop.eup %7216 }
 0x366   :  { %v3644_v8 = vsel %vm8128_vm4, %v7215_v6, %v7217_v7 }
 0x367   :  { %3647 = vrot.lane.b32.xlu0 %v3644_v8, %s7486_s10  ;;  %v3645_v11 = vmul.f32 0.0, %v3644_v8 }
 0x3d9   :  { %v3648_v9 = vpop.permute.xlu0 %3647 }
 0x3da   :  { %v3650_v10 = vmul.f32 %v3648_v9, %v3644_v8 }
 0x3dc   :  { %3652 = vrot.lane.b32.xlu0 %v3650_v10, %s7487_s24 }
 0x44e   :  { %v3653_v12 = vpop.permute.xlu0 %3652 }
 0x44f   :  { %v3655_v13 = vadd.f32 %v3653_v12, %v3645_v11 }
 0x451   :  { %7218 = vtanh.f32 %v3655_v13 }
 0x45b   :  { %v7219_v14 = vpop.eup %7218 }
 0x45c   :  { %3658 = vrot.lane.b32.xlu1 %v7219_v14, %s7486_s10 }
 0x4ce   :  { %v3659_v15 = vpop.permute.xlu1 %3658 }
 0x4cf   :  { %v3661_v16 = vmul.f32 %v3659_v15, %v3644_v8 }
 0x4d1   :  { %3663 = vrot.lane.b32.xlu1 %v3661_v16, %s7487_s24 }
 0x543   :  { %v3664_v17 = vpop.permute.xlu1 %3663 }
 0x544   :  { %3666 = vst.msk [vmem:[#allocation4] sm:$0xff] %vm3256_vm0, %v3664_v17  ;;  %3667 = vst.msk [vmem:[#allocation5 + $0x38] sm:$0xff] %vm3256_vm0, %v3664_v17  ;;  %6818 = vmatmul.mubr.msk.f32.vlgmr.msra.gmra.mrb[6].mxu1 %vm3256_vm0, %v3664_v17 }
 0x545   :  { %7066 = vmatpush3.bf16.msra.mxu1 %v8069_v26  ;;  %6828 = vmatprep.mubr.msk.f32.mxu1 %vm7484_vm1, %v7485_v35 }
 0x546   :  { %7067 = vmatprep.subr.bf16.mxu1 %v7483_v23 }
 0x549   :  { %7069 = vmatpush3.bf16.msra.mxu1 %v8077_v34 }
 0x54a   :  { %7070 = vmatprep.subr.bf16.mxu1 %v7483_v23 }
 0x617   :  { %v3736_v18 = vpop.f32.mrb[6].mxu1 }
 0x618   :  { %v3740_v19 = vadd.f32 %v3736_v18, %v3552_v42  ;;  %v6819_v20 = vpop.f32.mrb[7].mxu1 }
 0x61a   :  { %v6569_v21 = vmul.f32 -1.442695, %v3740_v19 }
 0x61c   :  { %7220 = vpow2.f32 %v6569_v21 }
 0x61d   :  { %7222 = vtanh.f32 %v3740_v19 }
 0x626   :  { %v7221_v22 = vpop.eup %7220 }
 0x627   :  { %v3745_v24 = vadd.f32 1.0, %v7221_v22  ;;  %v7223_v25 = vpop.eup %7222 }
 0x629   :  { %7224 = vrcp.f32 %v3745_v24 }
 0x633   :  { %v7225_v27 = vpop.eup %7224 }
 0x634   :  { %v3748_v28 = vsel %vm8128_vm4, %v7223_v25, %v7225_v27 }
 0x635   :  { %3751 = vrot.lane.b32.xlu0 %v3748_v28, %s7486_s10  ;;  %v3749_v31 = vmul.f32 %v3748_v28, %v3655_v13 }
 0x6a7   :  { %v3752_v29 = vpop.permute.xlu0 %3751 }
 0x6a8   :  { %v3754_v30 = vmul.f32 %v3752_v29, %v3748_v28 }
 0x6aa   :  { %3756 = vrot.lane.b32.xlu1 %v3754_v30, %s7487_s24 }
 0x71c   :  { %v3757_v32 = vpop.permute.xlu1 %3756 }
 0x71d   :  { %v3759_v33 = vadd.f32 %v3757_v32, %v3749_v31 }
 0x71f   :  { %7226 = vtanh.f32 %v3759_v33 }
 0x729   :  { %v7227_v36 = vpop.eup %7226 }
 0x72a   :  { %3762 = vrot.lane.b32.xlu0 %v7227_v36, %s7486_s10 }
 0x79c   :  { %v3763_v37 = vpop.permute.xlu0 %3762 }
 0x79d   :  { %v3765_v38 = vmul.f32 %v3763_v37, %v3748_v28 }
 0x79f   :  { %3767 = vrot.lane.b32.xlu1 %v3765_v38, %s7487_s24 }
 0x811   :  { %v3768_v39 = vpop.permute.xlu1 %3767 }
 0x812   :  { %3770 = vst.msk [vmem:[#allocation4 + $0x8] sm:$0xff] %vm3256_vm0, %v3768_v39  ;;  %3771 = vst.msk [vmem:[#allocation5 + $0x30] sm:$0xff] %vm3256_vm0, %v3768_v39  ;;  %6829 = vmatmul.mubr.msk.f32.vlgmr.msra.gmra.mrb[8].mxu1 %vm3256_vm0, %v3768_v39 }
 0x813   :  { %7072 = vmatpush3.bf16.msra.mxu1 %v8069_v26  ;;  %6839 = vmatprep.mubr.msk.f32.mxu1 %vm7484_vm1, %v7485_v35 }
 0x814   :  { %7073 = vmatprep.subr.bf16.mxu1 %v7483_v23 }
 0x817   :  { %7075 = vmatpush3.bf16.msra.mxu1 %v8077_v34 }
 0x818   :  { %7082 = vmatprep.subr.bf16.mxu1 %v7483_v23 }
 0x8e5   :  { %v3840_v40 = vpop.f32.mrb[8].mxu1 }
 0x8e6   :  { %v3844_v41 = vadd.f32 %v3840_v40, %v8118_v52  ;;  %v6830_v42 = vpop.f32.mrb[9].mxu1 }
 0x8e8   :  { %v6571_v43 = vmul.f32 -1.442695, %v3844_v41 }
 0x8ea   :  { %7228 = vpow2.f32 %v6571_v43 }
 0x8eb   :  { %7230 = vtanh.f32 %v3844_v41 }
 0x8f4   :  { %v7229_v44 = vpop.eup %7228 }
 0x8f5   :  { %v3849_v45 = vadd.f32 1.0, %v7229_v44  ;;  %v7231_v46 = vpop.eup %7230 }
 0x8f7   :  { %7232 = vrcp.f32 %v3849_v45 }
 0x901   :  { %v7233_v47 = vpop.eup %7232 }
 0x902   :  { %v3852_v48 = vsel %vm8128_vm4, %v7231_v46, %v7233_v47 }
 0x903   :  { %3855 = vrot.lane.b32.xlu0 %v3852_v48, %s7486_s10  ;;  %v3853_v53 = vmul.f32 %v3852_v48, %v3759_v33 }
 0x975   :  { %v3856_v50 = vpop.permute.xlu0 %3855 }
 0x976   :  { %v3858_v51 = vmul.f32 %v3856_v50, %v3852_v48 }
 0x978   :  { %3860 = vrot.lane.b32.xlu1 %v3858_v51, %s7487_s24 }
 0x9ea   :  { %v3861_v52 = vpop.permute.xlu1 %3860 }
 0x9eb   :  { %v3863_v54 = vadd.f32 %v3861_v52, %v3853_v53 }
 0x9ed   :  { %7234 = vtanh.f32 %v3863_v54 }
 0x9f7   :  { %v7235_v55 = vpop.eup %7234 }
 0x9f8   :  { %3866 = vrot.lane.b32.xlu0 %v7235_v55, %s7486_s10 }
 0xa6a   :  { %v3867_v56 = vpop.permute.xlu0 %3866 }
 0xa6b   :  { %v3869_v58 = vmul.f32 %v3867_v56, %v3852_v48 }
 0xa6d   :  { %3871 = vrot.lane.b32.xlu1 %v3869_v58, %s7487_s24 }
 0xadf   :  { %v3872_v60 = vpop.permute.xlu1 %3871 }
 0xae0   :  { %3874 = vst.msk [vmem:[#allocation4 + $0x10] sm:$0xff] %vm3256_vm0, %v3872_v60  ;;  %3875 = vst.msk [vmem:[#allocation5 + $0x28] sm:$0xff] %vm3256_vm0, %v3872_v60  ;;  %6840 = vmatmul.mubr.msk.f32.vlgmr.msra.gmra.mrb[10].mxu1 %vm3256_vm0, %v3872_v60 }
 0xae1   :  { %7084 = vmatpush3.bf16.msra.mxu1 %v8069_v26  ;;  %6861 = vmatprep.mubr.msk.f32.mxu1 %vm7484_vm1, %v7485_v35 }
 0xae2   :  { %7085 = vmatprep.subr.bf16.mxu1 %v7483_v23 }
 0xae5   :  { %7087 = vmatpush3.bf16.msra.mxu1 %v8077_v34 }
 0xae6   :  { %7094 = vmatprep.subr.bf16.mxu1 %v7483_v23 }
 0xbb3   :  { %v3944_v61 = vpop.f32.mrb[10].mxu1 }
 0xbb4   :  { %v3948_v62 = vadd.f32 %v3944_v61, %v8116_v49  ;;  %v6841_v1 = vpop.f32.mrb[11].mxu1 }
 0xbb6   :  { %v6573_v2 = vmul.f32 -1.442695, %v3948_v62 }
 0xbb8   :  { %7236 = vpow2.f32 %v6573_v2 }
 0xbb9   :  { %7238 = vtanh.f32 %v3948_v62 }
 0xbc2   :  { %v7237_v3 = vpop.eup %7236 }
 0xbc3   :  { %v3953_v4 = vadd.f32 1.0, %v7237_v3  ;;  %v7239_v6 = vpop.eup %7238 }
 0xbc5   :  { %7240 = vrcp.f32 %v3953_v4 }
 0xbcf   :  { %v7241_v7 = vpop.eup %7240 }
 0xbd0   :  { %v3956_v8 = vsel %vm8128_vm4, %v7239_v6, %v7241_v7 }
 0xbd1   :  { %3959 = vrot.lane.b32.xlu0 %v3956_v8, %s7486_s10  ;;  %v3957_v11 = vmul.f32 %v3956_v8, %v3863_v54 }
 0xc43   :  { %v3960_v9 = vpop.permute.xlu0 %3959 }
 0xc44   :  { %v3962_v10 = vmul.f32 %v3960_v9, %v3956_v8 }
 0xc46   :  { %3964 = vrot.lane.b32.xlu1 %v3962_v10, %s7487_s24 }
 0xcb8   :  { %v3965_v49 = vpop.permute.xlu1 %3964 }
 0xcb9   :  { %v3967_v12 = vadd.f32 %v3965_v49, %v3957_v11 }
 0xcbb   :  { %7242 = vtanh.f32 %v3967_v12 }
 0xcc5   :  { %v7243_v13 = vpop.eup %7242 }
 0xcc6   :  { %3970 = vrot.lane.b32.xlu0 %v7243_v13, %s7486_s10 }
 0xd38   :  { %v3971_v14 = vpop.permute.xlu0 %3970 }
 0xd39   :  { %v3973_v15 = vmul.f32 %v3971_v14, %v3956_v8 }
 0xd3b   :  { %3975 = vrot.lane.b32.xlu1 %v3973_v15, %s7487_s24 }
 0xdad   :  { %v3976_v16 = vpop.permute.xlu1 %3975 }
 0xdae   :  { %3978 = vst.msk [vmem:[#allocation4 + $0x18] sm:$0xff] %vm3256_vm0, %v3976_v16  ;;  %3979 = vst.msk [vmem:[#allocation5 + $0x20] sm:$0xff] %vm3256_vm0, %v3976_v16  ;;  %6851 = vmatmul.mubr.msk.f32.vlgmr.msra.gmra.mrb[8].mxu0 %vm3256_vm0, %v3976_v16 }
 0xdaf   :  { %7090 = vmatpush3.bf16.msra.mxu0 %v8069_v26  ;;  %6872 = vmatprep.mubr.msk.f32.mxu0 %vm7484_vm1, %v7485_v35 }
 0xdb0   :  { %7091 = vmatprep.subr.bf16.mxu0 %v7483_v23 }
 0xdb3   :  { %7093 = vmatpush3.bf16.msra.mxu0 %v8077_v34 }
 0xe81   :  { %v4048_v17 = vpop.f32.mrb[8].mxu0 }
 0xe82   :  { %v4052_v18 = vadd.f32 %v4048_v17, %v8122_v59  ;;  %v6852_v19 = vpop.f32.mrb[9].mxu0 }
 0xe84   :  { %v6575_v20 = vmul.f32 -1.442695, %v4052_v18 }
 0xe86   :  { %7244 = vpow2.f32 %v6575_v20 }
 0xe87   :  { %7246 = vtanh.f32 %v4052_v18 }
 0xe90   :  { %v7245_v21 = vpop.eup %7244 }
 0xe91   :  { %v4057_v22 = vadd.f32 1.0, %v7245_v21  ;;  %v7247_v24 = vpop.eup %7246 }
 0xe93   :  { %7248 = vrcp.f32 %v4057_v22 }
 0xe9d   :  { %v7249_v25 = vpop.eup %7248 }
 0xe9e   :  { %v4060_v27 = vsel %vm8128_vm4, %v7247_v24, %v7249_v25 }
 0xe9f   :  { %4063 = vrot.lane.b32.xlu0 %v4060_v27, %s7486_s10  ;;  %v4061_v30 = vmul.f32 %v4060_v27, %v3967_v12 }
 0xf11   :  { %v4064_v28 = vpop.permute.xlu0 %4063 }
 0xf12   :  { %v4066_v29 = vmul.f32 %v4064_v28, %v4060_v27  ;;  %v4417_v28 = vld [vmem:[#allocation14 + $0x8] sm:$0xff] }
 0xf14   :  { %4068 = vrot.lane.b32.xlu1 %v4066_v29, %s7487_s24 }
 0xf86   :  { %v4069_v59 = vpop.permute.xlu1 %4068 }
 0xf87   :  { %v4071_v31 = vadd.f32 %v4069_v59, %v4061_v30  ;;  %v4418_v30 = vld [vmem:[#allocation14 + $0x10] sm:$0xff]  ;;  %v4419_v59 = vld [vmem:[#allocation14 + $0x18] sm:$0xff] }
 0xf89   :  { %7250 = vtanh.f32 %v4071_v31 }
 0xf93   :  { %v7251_v32 = vpop.eup %7250 }
 0xf94   :  { %4074 = vrot.lane.b32.xlu0 %v7251_v32, %s7486_s10  ;;  %v4412_v32 = vld [vmem:[#allocation12] sm:$0xff] }
0x1006   :  { %v4075_v33 = vpop.permute.xlu0 %4074 }
0x1007   :  { %v4077_v36 = vmul.f32 %v4075_v33, %v4060_v27  ;;  %v4416_v27 = vld [vmem:[#allocation14] sm:$0xff]  ;;  %v4413_v33 = vld [vmem:[#allocation12 + $0x8] sm:$0xff] }
0x1008   :  { %v7100_v29 = vpack.c.bf16 %v4417_v28, %v4416_v27 }
0x1009   :  { %4079 = vrot.lane.b32.xlu1 %v4077_v36, %s7487_s24 }
0x100a   :  { %7101 = vmatprep.subr.bf16.mxu0 %v7100_v29 }
0x107b   :  { %v4080_v37 = vpop.permute.xlu1 %4079 }
0x107c   :  { %4082 = vst.msk [vmem:[#allocation4 + $0x20] sm:$0xff] %vm3256_vm0, %v4080_v37  ;;  %4083 = vst.msk [vmem:[#allocation5 + $0x18] sm:$0xff] %vm3256_vm0, %v4080_v37  ;;  %6862 = vmatmul.mubr.msk.f32.vlgmr.msra.gmra.mrb[12].mxu1 %vm3256_vm0, %v4080_v37  ;;  %v7108_v37 = vpack.c.bf16 %v4413_v33, %v4412_v32 }
0x107d   :  { %7096 = vmatpush3.bf16.msra.mxu1 %v8069_v26  ;;  %6883 = vmatprep.mubr.msk.f32.mxu1 %vm7484_vm1, %v7485_v35 }
0x107e   :  { %7097 = vmatprep.subr.bf16.mxu1 %v7483_v23 }
0x1081   :  { %7099 = vmatpush3.bf16.msra.mxu1 %v8077_v34 }
0x1082   :  { %7116 = vmatprep.subr.bf16.mxu1 %v7483_v23 }
0x114f   :  { %v4152_v38 = vpop.f32.mrb[12].mxu1 }
0x1150   :  { %v4156_v39 = vadd.f32 %v4152_v38, %v8120_v57  ;;  %v6863_v40 = vpop.f32.mrb[13].mxu1 }
0x1151   :  { %v4694_v40 = vld [vmem:[#allocation15 + $0x8] sm:$0xff] }
0x1152   :  { %v6577_v41 = vmul.f32 -1.442695, %v4156_v39 }
0x1154   :  { %7252 = vpow2.f32 %v6577_v41 }
0x1155   :  { %7254 = vtanh.f32 %v4156_v39  ;;  %v4693_v39 = vld [vmem:[#allocation15] sm:$0xff] }
0x1156   :  { %v8238_v41 = vpack.c.bf16 %v4694_v40, %v4693_v39 }
0x115e   :  { %v7253_v42 = vpop.eup %7252 }
0x115f   :  { %v4161_v43 = vadd.f32 1.0, %v7253_v42  ;;  %v7255_v26 = vpop.eup %7254  ;;  %v4695_v42 = vld [vmem:[#allocation15 + $0x10] sm:$0xff] }
0x1161   :  { %7256 = vrcp.f32 %v4161_v43  ;;  %v4696_v43 = vld [vmem:[#allocation15 + $0x18] sm:$0xff] }
0x116b   :  { %v7257_v44 = vpop.eup %7256 }
0x116c   :  { %v4164_v45 = vsel %vm8128_vm4, %v7255_v26, %v7257_v44  ;;  %v8242_v26 = vpack.c.bf16 %v4696_v43, %v4695_v42 }
0x116d   :  { %4167 = vrot.lane.b32.xlu0 %v4164_v45, %s7486_s10  ;;  %v4165_v47 = vmul.f32 %v4164_v45, %v4071_v31  ;;  %v7104_v31 = vpack.c.bf16 %v4419_v59, %v4418_v30 }
0x11df   :  { %v4168_v34 = vpop.permute.xlu0 %4167 }
0x11e0   :  { %v4170_v46 = vmul.f32 %v4168_v34, %v4164_v45  ;;  %v4415_v34 = vld [vmem:[#allocation12 + $0x18] sm:$0xff] }
0x11e2   :  { %4172 = vrot.lane.b32.xlu1 %v4170_v46, %s7487_s24 }
0x1254   :  { %v4173_v57 = vpop.permute.xlu1 %4172 }
0x1255   :  { %v4175_v48 = vadd.f32 %v4173_v57, %v4165_v47 }
0x1257   :  { %7258 = vtanh.f32 %v4175_v48 }
0x1261   :  { %v7259_v50 = vpop.eup %7258 }
0x1262   :  { %4178 = vrot.lane.b32.xlu0 %v7259_v50, %s7486_s10  ;;  %v4407_v50 = vld [vmem:[#allocation5 + $0x18] sm:$0xff] }
0x12d4   :  { %v4179_v51 = vpop.permute.xlu0 %4178 }
0x12d5   :  { %v4181_v53 = vmul.f32 %v4179_v51, %v4164_v45  ;;  %v4414_v45 = vld [vmem:[#allocation12 + $0x10] sm:$0xff]  ;;  %v4408_v51 = vld [vmem:[#allocation5 + $0x20] sm:$0xff] }
0x12d6   :  { %v7112_v47 = vpack.c.bf16 %v4415_v34, %v4414_v45 }
0x12d7   :  { %4183 = vrot.lane.b32.xlu1 %v4181_v53, %s7487_s24  ;;  %v4409_v53 = vld [vmem:[#allocation5 + $0x28] sm:$0xff] }
0x1349   :  { %v4184_v52 = vpop.permute.xlu1 %4183 }
0x134a   :  { %4186 = vst.msk [vmem:[#allocation4 + $0x28] sm:$0xff] %vm3256_vm0, %v4184_v52  ;;  %4187 = vst.msk [vmem:[#allocation5 + $0x10] sm:$0xff] %vm3256_vm0, %v4184_v52  ;;  %6873 = vmatmul.mubr.msk.f32.vlgmr.msra.gmra.mrb[10].mxu0 %vm3256_vm0, %v4184_v52  ;;  %v4410_v52 = vld [vmem:[#allocation5 + $0x30] sm:$0xff] }
0x134b   :  { %7103 = vmatpush3.bf16.msra.mxu0 %v7100_v29 }
0x134c   :  { %7105 = vmatprep.subr.bf16.mxu0 %v7104_v31 }
0x134f   :  { %7107 = vmatpush3.bf16.msra.mxu0 %v7104_v31 }
0x1350   :  { %7109 = vmatprep.subr.bf16.mxu0 %v7108_v37 }
0x141d   :  { %v4256_v54 = vpop.f32.mrb[10].mxu0 }
0x141e   :  { %v4260_v55 = vadd.f32 %v4256_v54, %v8126_v0  ;;  %v6874_v56 = vpop.f32.mrb[11].mxu0  ;;  %v4411_v54 = vld [vmem:[#allocation5 + $0x38] sm:$0xff] }
0x141f   :  { %v4397_v56 = vld [vmem:[#allocation4 + $0x8] sm:$0xff] }
0x1420   :  { %v6579_v58 = vmul.f32 -1.442695, %v4260_v55 }
0x1422   :  { %7260 = vpow2.f32 %v6579_v58  ;;  %v4398_v58 = vld [vmem:[#allocation4 + $0x10] sm:$0xff] }
0x1423   :  { %7262 = vtanh.f32 %v4260_v55  ;;  %v4396_v55 = vld [vmem:[#allocation4] sm:$0xff] }
0x142c   :  { %v7261_v60 = vpop.eup %7260 }
0x142d   :  { %v4265_v61 = vadd.f32 1.0, %v7261_v60  ;;  %v7263_v62 = vpop.eup %7262  ;;  %v4399_v60 = vld [vmem:[#allocation4 + $0x18] sm:$0xff] }
0x142f   :  { %7264 = vrcp.f32 %v4265_v61  ;;  %v4400_v61 = vld [vmem:[#allocation4 + $0x20] sm:$0xff] }
0x1439   :  { %v7265_v1 = vpop.eup %7264 }
0x143a   :  { %v4268_v2 = vsel %vm8128_vm4, %v7263_v62, %v7265_v1  ;;  %v4401_v62 = vld [vmem:[#allocation4 + $0x28] sm:$0xff] }
0x143b   :  { %4271 = vrot.lane.b32.xlu0 %v4268_v2, %s7486_s10  ;;  %v4269_v6 = vmul.f32 %v4268_v2, %v4175_v48  ;;  %v4406_v48 = vld [vmem:[#allocation5 + $0x10] sm:$0xff] }
0x14ad   :  { %v4272_v3 = vpop.permute.xlu0 %4271 }
0x14ae   :  { %v4274_v4 = vmul.f32 %v4272_v3, %v4268_v2 }
0x14b0   :  { %4276 = vrot.lane.b32.xlu1 %v4274_v4, %s7487_s24 }
0x1522   :  { %v4277_v0 = vpop.permute.xlu1 %4276 }
0x1523   :  { %v4279_v7 = vadd.f32 %v4277_v0, %v4269_v6  ;;  %v6598_v6 = vld [vmem:[%s8564_s27] ss:$0 sm:$0xff] }
0x1525   :  { %7266 = vtanh.f32 %v4279_v7 }
0x152f   :  { %v7267_v8 = vpop.eup %7266 }
0x1530   :  { %4282 = vrot.lane.b32.xlu0 %v7267_v8, %s7486_s10 }
0x15a2   :  { %v4283_v9 = vpop.permute.xlu0 %4282 }
0x15a3   :  { %v4285_v10 = vmul.f32 %v4283_v9, %v4268_v2 }
0x15a5   :  { %4287 = vrot.lane.b32.xlu1 %v4285_v10, %s7487_s24 }
0x1617   :  { %v4288_v11 = vpop.permute.xlu1 %4287 }
0x1618   :  { %4290 = vst.msk [vmem:[#allocation4 + $0x30] sm:$0xff] %vm3256_vm0, %v4288_v11  ;;  %4291 = vst.msk [vmem:[#allocation5 + $0x8] sm:$0xff] %vm3256_vm0, %v4288_v11  ;;  %6884 = vmatmul.mubr.msk.f32.vlgmr.msra.gmra.mrb[14].mxu1 %vm3256_vm0, %v4288_v11 }
0x1619   :  { %6934 = vmatprep.mubr.msk.f32.mxu1 %vm7484_vm1, %v7485_v35  ;;  %7118 = vmatpush3.bf16.msra.mxu1 %v8238_v41 }
0x161a   :  { %7119 = vmatprep.subr.bf16.mxu1 %v7483_v23 }
0x161d   :  { %7121 = vmatpush3.bf16.msra.mxu1 %v8242_v26 }
0x161e   :  { %7122 = vmatprep.subr.bf16.mxu1 %v7483_v23 }
0x161f   :  { %v4405_v57 = vld [vmem:[#allocation5 + $0x8] sm:$0xff]  ;;  %v4402_v1 = vld [vmem:[#allocation4 + $0x30] sm:$0xff] }
0x1620   :  { %6935 = vmatmul.mubr.f32.vlgmr.msra.gmra.mrb[16].mxu1 %v7485_v35 }
0x1621   :  { %7124 = vmatpush3.bf16.msra.mxu1 %v8238_v41  ;;  %6945 = vmatprep.mubr.msk.f32.mxu1 %vm7484_vm1, %v7485_v35 }
0x1622   :  { %7125 = vmatprep.subr.bf16.mxu1 %v7483_v23 }
0x1625   :  { %7127 = vmatpush3.bf16.msra.mxu1 %v8242_v26 }
0x1626   :  { %7128 = vmatprep.subr.bf16.mxu1 %v7483_v23 }
0x16eb   :  { %v4360_v49 = vpop.f32.mrb[14].mxu1 }
0x16ec   :  { %v4364_v12 = vadd.f32 %v4360_v49, %v8124_v63  ;;  %v6885_v13 = vpop.f32.mrb[15].mxu1 }
0x16ee   :  { %v6581_v14 = vmul.f32 -1.442695, %v4364_v12 }
0x16f0   :  { %7268 = vpow2.f32 %v6581_v14 }
0x16f1   :  { %7270 = vtanh.f32 %v4364_v12 }
0x16f3   :  { %v4763_v3 = vpop.f32.mrb[16].mxu1 }
0x16f4   :  { %v6936_v4 = vpop.f32.mrb[17].mxu1 }
0x16fa   :  { %v7269_v15 = vpop.eup %7268 }
0x16fb   :  { %v4369_v16 = vadd.f32 1.0, %v7269_v15  ;;  %v7271_v17 = vpop.eup %7270 }
0x16fd   :  { %7272 = vrcp.f32 %v4369_v16 }
0x1707   :  { %v7273_v18 = vpop.eup %7272 }
0x1708   :  { %v4372_v19 = vsel %vm8128_vm4, %v7271_v17, %v7273_v18 }
0x1709   :  { %4375 = vrot.lane.b32.xlu0 %v4372_v19, %s7486_s10  ;;  %v4373_v22 = vmul.f32 %v4372_v19, %v4279_v7 }
0x177b   :  { %v4376_v20 = vpop.permute.xlu0 %4375 }
0x177c   :  { %v4378_v21 = vmul.f32 %v4376_v20, %v4372_v19 }
0x177e   :  { %4380 = vrot.lane.b32.xlu1 %v4378_v21, %s7487_s24 }
0x17f0   :  { %v4381_v63 = vpop.permute.xlu1 %4380 }
0x17f1   :  { %v4383_v24 = vadd.f32 %v4381_v63, %v4373_v22 }
0x17f3   :  { %7274 = vtanh.f32 %v4383_v24 }
0x17fd   :  { %v7275_v25 = vpop.eup %7274 }
0x17fe   :  { %4386 = vrot.lane.b32.xlu0 %v7275_v25, %s7486_s10 }
0x1870   :  { %v4387_v36 = vpop.permute.xlu0 %4386 }
0x1871   :  { %v4389_v38 = vmul.f32 %v4387_v36, %v4372_v19 }
0x1873   :  { %4391 = vrot.lane.b32.xlu1 %v4389_v38, %s7487_s24 }
0x18e5   :  { %v8253_v44 = vpop.permute.xlu1 %4391 }
0x18e6   :  { %4394 = vst.msk [vmem:[#allocation4 + $0x38] sm:$0xff] %vm3256_vm0, %v8253_v44  ;;  %4395 = vst.msk [vmem:[#allocation5] sm:$0xff] %vm3256_vm0, %v8253_v44 }
0x18ed   :  { %v4404_v46 = vld [vmem:[#allocation5] sm:$0xff]  ;;  %v4403_v2 = vld [vmem:[#allocation4 + $0x38] sm:$0xff] }
0x18ee   :  { %6894 = vmatprep.mubr.msk.f32.mxu0 %vm3256_vm0, %v4404_v46 }
0x18ef   :  { %6895 = vmatmul.mubr.msk.f32.vlgmr.msra.gmra.mrb[12].mxu0 %vm3256_vm0, %v4405_v57 }
0x18f0   :  { %6897 = vmatprep.mubr.msk.f32.mxu0 %vm3256_vm0, %v4406_v48  ;;  %7111 = vmatpush3.bf16.msra.mxu0 %v7108_v37 }
0x18f1   :  { %7113 = vmatprep.subr.bf16.mxu0 %v7112_v47 }
0x18f3   :  { %6898 = vmatmul.mubr.msk.f32.gmra.mrb[14].mxu0 %vm3256_vm0, %v4407_v50 }
0x18f4   :  { %6900 = vmatprep.mubr.msk.f32.mxu0 %vm3256_vm0, %v4408_v51  ;;  %7115 = vmatpush3.bf16.msra.mxu0 %v7112_v47 }
0x18f5   :  { %7140 = vmatprep.subr.bf16.mxu0 %v7483_v23 }
0x18f7   :  { %6901 = vmatmul.mubr.msk.f32.gmra.mrb[16].mxu0 %vm3256_vm0, %v4409_v53 }
0x18f8   :  { %6903 = vmatprep.mubr.msk.f32.mxu0 %vm3256_vm0, %v4410_v52 }
0x18fb   :  { %6904 = vmatmul.mubr.msk.f32.gmra.mrb[18].mxu0 %vm3256_vm0, %v4411_v54 }
0x18fc   :  { %6914 = vmatprep.mubr.msk.f32.mxu0 %vm3256_vm0, %v4396_v55 }
0x18ff   :  { %6915 = vmatmul.mubr.msk.f32.vlgmr.msra.gmra.mrb[12].mxu0 %vm3256_vm0, %v4397_v56 }
0x1900   :  { %6917 = vmatprep.mubr.msk.f32.mxu0 %vm3256_vm0, %v4398_v58  ;;  %7142 = vmatpush3.bf16.msra.mxu0 %v8238_v41 }
0x1901   :  { %7143 = vmatprep.subr.bf16.mxu0 %v7483_v23 }
0x1903   :  { %6918 = vmatmul.mubr.msk.f32.gmra.mrb[14].mxu0 %vm3256_vm0, %v4399_v60 }
0x1904   :  { %6920 = vmatprep.mubr.msk.f32.mxu0 %vm3256_vm0, %v4400_v61  ;;  %7145 = vmatpush3.bf16.msra.mxu0 %v8242_v26 }
0x1905   :  { %7152 = vmatprep.subr.bf16.mxu0 %v7483_v23 }
0x1907   :  { %6921 = vmatmul.mubr.msk.f32.gmra.mrb[16].mxu0 %vm3256_vm0, %v4401_v62 }
0x1908   :  { %6923 = vmatprep.mubr.msk.f32.mxu0 %vm3256_vm0, %v4402_v1 }
0x190b   :  { %6924 = vmatmul.mubr.msk.f32.gmra.mrb[18].mxu0 %vm3256_vm0, %v4403_v2 }
0x190c   :  { %6978 = vmatprep.mubr.msk.f32.mxu0 %vm7484_vm1, %v7485_v35 }
0x19d2   :  { %v6916_v0 = vpop.f32.mrb[12].mxu0 }
0x19d3   :  { %v4686_v7 = vadd.f32 %v6916_v0, %v6598_v6  ;;  %v4639_v8 = vpop.f32.mrb[13].mxu0 }
0x19d4   :  { %v4685_v9 = vadd.f32 %v6598_v6, %v4639_v8 }
0x19d6   :  { %v4767_v10 = vadd.f32 %v4763_v3, %v4685_v9  ;;  %v6919_v11 = vpop.f32.mrb[14].mxu0 }
0x19d7   :  { %v8285_v49 = vadd.f32 %v6919_v11, %v6598_v6  ;;  %v4649_v12 = vpop.f32.mrb[15].mxu0 }
0x19d8   :  { %v6599_v13 = vmul.f32 -1.442695, %v4767_v10  ;;  %v8287_v14 = vadd.f32 %v6598_v6, %v4649_v12 }
0x19da   :  { %7276 = vpow2.f32 %v6599_v13  ;;  %v6922_v15 = vpop.f32.mrb[16].mxu0 }
0x19db   :  { %v8289_v16 = vadd.f32 %v6922_v15, %v6598_v6  ;;  %v4659_v17 = vpop.f32.mrb[17].mxu0  ;;  %7278 = vtanh.f32 %v4767_v10 }
0x19dc   :  { %v8291_v18 = vadd.f32 %v6598_v6, %v4659_v17 }
0x19de   :  { %v6925_v19 = vpop.f32.mrb[18].mxu0 }
0x19df   :  { %v8293_v20 = vadd.f32 %v6925_v19, %v6598_v6  ;;  %v4669_v21 = vpop.f32.mrb[19].mxu0 }
0x19e0   :  { %v8295_v22 = vadd.f32 %v6598_v6, %v4669_v21 }
0x19e4   :  { %v7277_v63 = vpop.eup %7276 }
0x19e5   :  { %v4772_v24 = vadd.f32 1.0, %v7277_v63  ;;  %v7279_v25 = vpop.eup %7278 }
0x19e7   :  { %7280 = vrcp.f32 %v4772_v24 }
0x19f1   :  { %v7281_v27 = vpop.eup %7280 }
0x19f2   :  { %v4775_v28 = vsel %vm8128_vm4, %v7279_v25, %v7281_v27 }
0x19f3   :  { %4778 = vrot.lane.b32.xlu0 %v4775_v28, %s7486_s10  ;;  %v4776_v59 = vmul.f32 0.0, %v4775_v28 }
0x1a65   :  { %v4779_v29 = vpop.permute.xlu0 %4778 }
0x1a66   :  { %v4781_v30 = vmul.f32 %v4779_v29, %v4775_v28 }
0x1a68   :  { %4783 = vrot.lane.b32.xlu1 %v4781_v30, %s7487_s24 }
0x1ada   :  { %v4784_v31 = vpop.permute.xlu1 %4783 }
0x1adb   :  { %v4786_v32 = vadd.f32 %v4784_v31, %v4776_v59 }
0x1add   :  { %7282 = vtanh.f32 %v4786_v32 }
0x1ae7   :  { %v7283_v33 = vpop.eup %7282 }
0x1ae8   :  { %4789 = vrot.lane.b32.xlu0 %v7283_v33, %s7486_s10 }
0x1b5a   :  { %v4790_v36 = vpop.permute.xlu0 %4789 }
0x1b5b   :  { %v4792_v37 = vmul.f32 %v4790_v36, %v4775_v28 }
0x1b5d   :  { %4794 = vrot.lane.b32.xlu1 %v4792_v37, %s7487_s24 }
0x1bcf   :  { %v4795_v38 = vpop.permute.xlu1 %4794 }
0x1bd0   :  { %6946 = vmatmul.mubr.msk.f32.vlgmr.msra.gmra.mrb[18].mxu1 %vm3256_vm0, %v4795_v38 }
0x1bd1   :  { %7130 = vmatpush3.bf16.msra.mxu1 %v8238_v41  ;;  %6956 = vmatprep.mubr.msk.f32.mxu1 %vm7484_vm1, %v7485_v35 }
0x1bd2   :  { %7131 = vmatprep.subr.bf16.mxu1 %v7483_v23 }
0x1bd5   :  { %7133 = vmatpush3.bf16.msra.mxu1 %v8242_v26 }
0x1bd6   :  { %7134 = vmatprep.subr.bf16.mxu1 %v7483_v23 }
0x1ca3   :  { %v4864_v39 = vpop.f32.mrb[18].mxu1 }
0x1ca4   :  { %v4868_v40 = vadd.f32 %v4864_v39, %v4686_v7  ;;  %v6947_v42 = vpop.f32.mrb[19].mxu1 }
0x1ca6   :  { %v6601_v43 = vmul.f32 -1.442695, %v4868_v40 }
0x1ca8   :  { %7284 = vpow2.f32 %v6601_v43 }
0x1ca9   :  { %7286 = vtanh.f32 %v4868_v40 }
0x1cb2   :  { %v7285_v45 = vpop.eup %7284 }
0x1cb3   :  { %v4873_v34 = vadd.f32 1.0, %v7285_v45  ;;  %v7287_v46 = vpop.eup %7286 }
0x1cb5   :  { %7288 = vrcp.f32 %v4873_v34 }
0x1cbf   :  { %v7289_v47 = vpop.eup %7288 }
0x1cc0   :  { %v4876_v57 = vsel %vm8128_vm4, %v7287_v46, %v7289_v47 }
0x1cc1   :  { %4879 = vrot.lane.b32.xlu0 %v4876_v57, %s7486_s10  ;;  %v4877_v51 = vmul.f32 %v4876_v57, %v4786_v32 }
0x1d33   :  { %v4880_v48 = vpop.permute.xlu0 %4879 }
0x1d34   :  { %v4882_v50 = vmul.f32 %v4880_v48, %v4876_v57 }
0x1d36   :  { %4884 = vrot.lane.b32.xlu1 %v4882_v50, %s7487_s24 }
0x1da8   :  { %v4885_v53 = vpop.permute.xlu1 %4884 }
0x1da9   :  { %v4887_v52 = vadd.f32 %v4885_v53, %v4877_v51 }
0x1dab   :  { %7290 = vtanh.f32 %v4887_v52 }
0x1db5   :  { %v7291_v54 = vpop.eup %7290 }
0x1db6   :  { %4890 = vrot.lane.b32.xlu0 %v7291_v54, %s7486_s10 }
0x1e28   :  { %v4891_v55 = vpop.permute.xlu0 %4890 }
0x1e29   :  { %v4893_v56 = vmul.f32 %v4891_v55, %v4876_v57 }
0x1e2b   :  { %4895 = vrot.lane.b32.xlu1 %v4893_v56, %s7487_s24 }
0x1e9d   :  { %v4896_v58 = vpop.permute.xlu1 %4895 }
0x1e9e   :  { %6957 = vmatmul.mubr.msk.f32.vlgmr.msra.gmra.mrb[20].mxu1 %vm3256_vm0, %v4896_v58 }
0x1e9f   :  { %7136 = vmatpush3.bf16.msra.mxu1 %v8238_v41  ;;  %6967 = vmatprep.mubr.msk.f32.mxu1 %vm7484_vm1, %v7485_v35 }
0x1ea0   :  { %7137 = vmatprep.subr.bf16.mxu1 %v7483_v23 }
0x1ea3   :  { %7139 = vmatpush3.bf16.msra.mxu1 %v8242_v26 }
0x1ea4   :  { %7146 = vmatprep.subr.bf16.mxu1 %v7483_v23 }
0x1f71   :  { %v4965_v60 = vpop.f32.mrb[20].mxu1 }
0x1f72   :  { %v4969_v61 = vadd.f32 %v4965_v60, %v8287_v14  ;;  %v6958_v62 = vpop.f32.mrb[21].mxu1 }
0x1f74   :  { %v6603_v1 = vmul.f32 -1.442695, %v4969_v61 }
0x1f76   :  { %7292 = vpow2.f32 %v6603_v1 }
0x1f77   :  { %7294 = vtanh.f32 %v4969_v61 }
0x1f80   :  { %v7293_v2 = vpop.eup %7292 }
0x1f81   :  { %v4974_v3 = vadd.f32 1.0, %v7293_v2  ;;  %v7295_v4 = vpop.eup %7294 }
0x1f83   :  { %7296 = vrcp.f32 %v4974_v3 }
0x1f8d   :  { %v7297_v6 = vpop.eup %7296 }
0x1f8e   :  { %v4977_v0 = vsel %vm8128_vm4, %v7295_v4, %v7297_v6 }
0x1f8f   :  { %4980 = vrot.lane.b32.xlu0 %v4977_v0, %s7486_s10  ;;  %v4978_v9 = vmul.f32 %v4977_v0, %v4887_v52 }
0x2001   :  { %v4981_v7 = vpop.permute.xlu0 %4980 }
0x2002   :  { %v4983_v8 = vmul.f32 %v4981_v7, %v4977_v0 }
0x2004   :  { %4985 = vrot.lane.b32.xlu1 %v4983_v8, %s7487_s24 }
0x2076   :  { %v4986_v10 = vpop.permute.xlu1 %4985 }
0x2077   :  { %v4988_v11 = vadd.f32 %v4986_v10, %v4978_v9 }
0x2079   :  { %7298 = vtanh.f32 %v4988_v11 }
0x2083   :  { %v7299_v12 = vpop.eup %7298 }
0x2084   :  { %4991 = vrot.lane.b32.xlu0 %v7299_v12, %s7486_s10  ;;  %v5501_v12 = vld [vmem:[%s8565_s28 + $0x8] sm:$0xff] }
0x20f6   :  { %v4992_v13 = vpop.permute.xlu0 %4991 }
0x20f7   :  { %v4994_v14 = vmul.f32 %v4992_v13, %v4977_v0 }
0x20f9   :  { %4996 = vrot.lane.b32.xlu1 %v4994_v14, %s7487_s24  ;;  %v5502_v14 = vld [vmem:[%s8565_s28 + $0x10] sm:$0xff] }
0x216b   :  { %v4997_v15 = vpop.permute.xlu1 %4996 }
0x216c   :  { %6968 = vmatmul.mubr.msk.f32.vlgmr.msra.gmra.mrb[22].mxu1 %vm3256_vm0, %v4997_v15  ;;  %v5503_v15 = vld [vmem:[%s8565_s28 + $0x18] sm:$0xff] }
0x216d   :  { %7148 = vmatpush3.bf16.msra.mxu1 %v8238_v41  ;;  %6989 = vmatprep.mubr.msk.f32.mxu1 %vm7484_vm1, %v7485_v35 }
0x216e   :  { %7149 = vmatprep.subr.bf16.mxu1 %v7483_v23 }
0x2171   :  { %7151 = vmatpush3.bf16.msra.mxu1 %v8242_v26 }
0x2172   :  { %7158 = vmatprep.subr.bf16.mxu1 %v7483_v23 }
0x223f   :  { %v5066_v17 = vpop.f32.mrb[22].mxu1 }
0x2240   :  { %v5070_v19 = vadd.f32 %v5066_v17, %v8285_v49  ;;  %v6969_v21 = vpop.f32.mrb[23].mxu1 }
0x2242   :  { %v6605_v63 = vmul.f32 -1.442695, %v5070_v19 }
0x2244   :  { %7300 = vpow2.f32 %v6605_v63 }
0x2245   :  { %7302 = vtanh.f32 %v5070_v19  ;;  %v7168_v19 = vpack.c.bf16 %v5503_v15, %v5502_v14 }
0x224e   :  { %v7301_v24 = vpop.eup %7300 }
0x224f   :  { %v5075_v25 = vadd.f32 1.0, %v7301_v24  ;;  %v7303_v27 = vpop.eup %7302 }
0x2251   :  { %7304 = vrcp.f32 %v5075_v25 }
0x225b   :  { %v7305_v28 = vpop.eup %7304 }
0x225c   :  { %v5078_v29 = vsel %vm8128_vm4, %v7303_v27, %v7305_v28 }
0x225d   :  { %5081 = vrot.lane.b32.xlu0 %v5078_v29, %s7486_s10  ;;  %v5079_v31 = vmul.f32 %v5078_v29, %v4988_v11  ;;  %v5500_v11 = vld [vmem:[%s8565_s28] sm:$0xff] }
0x225e   :  { %v7165_v13 = vpack.c.bf16 %v5501_v12, %v5500_v11  ;;  %v6617_v11 = vld [vmem:[%s8567_s5] ss:$0 sm:$0xff] }
0x22cf   :  { %v5082_v30 = vpop.permute.xlu0 %5081 }
0x22d0   :  { %v5084_v59 = vmul.f32 %v5082_v30, %v5078_v29 }
0x22d2   :  { %5086 = vrot.lane.b32.xlu1 %v5084_v59, %s7487_s24 }
0x2344   :  { %v5087_v49 = vpop.permute.xlu1 %5086 }
0x2345   :  { %v5089_v32 = vadd.f32 %v5087_v49, %v5079_v31 }
0x2347   :  { %7306 = vtanh.f32 %v5089_v32 }
0x2351   :  { %v7307_v33 = vpop.eup %7306 }
0x2352   :  { %5092 = vrot.lane.b32.xlu0 %v7307_v33, %s7486_s10 }
0x23c4   :  { %v5093_v36 = vpop.permute.xlu0 %5092 }
0x23c5   :  { %v5095_v37 = vmul.f32 %v5093_v36, %v5078_v29 }
0x23c7   :  { %5097 = vrot.lane.b32.xlu1 %v5095_v37, %s7487_s24 }
0x2439   :  { %v5098_v38 = vpop.permute.xlu1 %5097 }
0x243a   :  { %6979 = vmatmul.mubr.msk.f32.vlgmr.msra.gmra.mrb[20].mxu0 %vm3256_vm0, %v5098_v38 }
0x243b   :  { %7154 = vmatpush3.bf16.msra.mxu0 %v8238_v41  ;;  %7000 = vmatprep.mubr.msk.f32.mxu0 %vm7484_vm1, %v7485_v35 }
0x243c   :  { %7155 = vmatprep.subr.bf16.mxu0 %v7483_v23 }
0x243f   :  { %7157 = vmatpush3.bf16.msra.mxu0 %v8242_v26 }
0x2440   :  { %7164 = vmatprep.subr.bf16.mxu0 %v7483_v23 }
0x250d   :  { %v5167_v39 = vpop.f32.mrb[20].mxu0 }
0x250e   :  { %v5171_v40 = vadd.f32 %v5167_v39, %v8291_v18  ;;  %v6980_v42 = vpop.f32.mrb[21].mxu0 }
0x2510   :  { %v6607_v43 = vmul.f32 -1.442695, %v5171_v40 }
0x2512   :  { %7308 = vpow2.f32 %v6607_v43 }
0x2513   :  { %7310 = vtanh.f32 %v5171_v40 }
0x251c   :  { %v7309_v45 = vpop.eup %7308 }
0x251d   :  { %v5176_v34 = vadd.f32 1.0, %v7309_v45  ;;  %v7311_v46 = vpop.eup %7310 }
0x251f   :  { %7312 = vrcp.f32 %v5176_v34 }
0x2529   :  { %v7313_v47 = vpop.eup %7312 }
0x252a   :  { %v5179_v57 = vsel %vm8128_vm4, %v7311_v46, %v7313_v47 }
0x252b   :  { %5182 = vrot.lane.b32.xlu0 %v5179_v57, %s7486_s10  ;;  %v5180_v51 = vmul.f32 %v5179_v57, %v5089_v32 }
0x259d   :  { %v5183_v48 = vpop.permute.xlu0 %5182 }
0x259e   :  { %v5185_v50 = vmul.f32 %v5183_v48, %v5179_v57 }
0x25a0   :  { %5187 = vrot.lane.b32.xlu1 %v5185_v50, %s7487_s24 }
0x2612   :  { %v5188_v18 = vpop.permute.xlu1 %5187 }
0x2613   :  { %v5190_v53 = vadd.f32 %v5188_v18, %v5180_v51  ;;  %v5504_v18 = vld [vmem:[%s8565_s28 + $0x20] sm:$0xff] }
0x2615   :  { %7314 = vtanh.f32 %v5190_v53 }
0x261f   :  { %v7315_v52 = vpop.eup %7314 }
0x2620   :  { %5193 = vrot.lane.b32.xlu0 %v7315_v52, %s7486_s10 }
0x2692   :  { %v5194_v54 = vpop.permute.xlu0 %5193 }
0x2693   :  { %v5196_v55 = vmul.f32 %v5194_v54, %v5179_v57  ;;  %v5507_v54 = vld [vmem:[%s8565_s28 + $0x38] sm:$0xff] }
0x2695   :  { %5198 = vrot.lane.b32.xlu1 %v5196_v55, %s7487_s24  ;;  %v7174_v55 = vpack.c.bf16 %v5507_v54, %v5506_v5 }
0x2707   :  { %v5199_v56 = vpop.permute.xlu1 %5198 }
0x2708   :  { %6990 = vmatmul.mubr.msk.f32.vlgmr.msra.gmra.mrb[24].mxu1 %vm3256_vm0, %v5199_v56 }
0x2709   :  { %7160 = vmatpush3.bf16.msra.mxu1 %v8238_v41  ;;  %7011 = vmatprep.mubr.msk.f32.mxu1 %vm7484_vm1, %v7485_v35 }
0x270a   :  { %7161 = vmatprep.subr.bf16.mxu1 %v7483_v23 }
0x270d   :  { %7163 = vmatpush3.bf16.msra.mxu1 %v8242_v26 }
0x27db   :  { %v5268_v58 = vpop.f32.mrb[24].mxu1 }
0x27dc   :  { %v5272_v60 = vadd.f32 %v5268_v58, %v8289_v16  ;;  %v6991_v61 = vpop.f32.mrb[25].mxu1 }
0x27de   :  { %v6609_v62 = vmul.f32 -1.442695, %v5272_v60 }
0x27e0   :  { %7316 = vpow2.f32 %v6609_v62  ;;  %v6615_v62 = vld [vmem:[%s8566_s14] ss:$0 sm:$0xff] }
0x27e1   :  { %7318 = vtanh.f32 %v5272_v60 }
0x27ea   :  { %v7317_v1 = vpop.eup %7316 }
0x27eb   :  { %v5277_v2 = vadd.f32 1.0, %v7317_v1  ;;  %v7319_v3 = vpop.eup %7318 }
0x27ed   :  { %7320 = vrcp.f32 %v5277_v2 }
0x27f7   :  { %v7321_v4 = vpop.eup %7320 }
0x27f8   :  { %v5280_v41 = vsel %vm8128_vm4, %v7319_v3, %v7321_v4 }
0x27f9   :  { %5283 = vrot.lane.b32.xlu0 %v5280_v41, %s7486_s10  ;;  %v5281_v26 = vmul.f32 %v5280_v41, %v5190_v53  ;;  %v5505_v53 = vld [vmem:[%s8565_s28 + $0x28] sm:$0xff] }
0x27fa   :  { %v7171_v52 = vpack.c.bf16 %v5505_v53, %v5504_v18 }
0x286b   :  { %v5284_v6 = vpop.permute.xlu0 %5283 }
0x286c   :  { %v5286_v0 = vmul.f32 %v5284_v6, %v5280_v41 }
0x286e   :  { %5288 = vrot.lane.b32.xlu1 %v5286_v0, %s7487_s24 }
0x28e0   :  { %v5289_v16 = vpop.permute.xlu1 %5288 }
0x28e1   :  { %v5291_v7 = vadd.f32 %v5289_v16, %v5281_v26 }
0x28e3   :  { %7322 = vtanh.f32 %v5291_v7 }
0x28ed   :  { %v7323_v8 = vpop.eup %7322 }
0x28ee   :  { %5294 = vrot.lane.b32.xlu0 %v7323_v8, %s7486_s10 }
0x2960   :  { %v5295_v9 = vpop.permute.xlu0 %5294 }
0x2961   :  { %v5297_v10 = vmul.f32 %v5295_v9, %v5280_v41 }
0x2963   :  { %5299 = vrot.lane.b32.xlu1 %v5297_v10, %s7487_s24 }
0x29d5   :  { %v5300_v17 = vpop.permute.xlu1 %5299 }
0x29d6   :  { %7001 = vmatmul.mubr.msk.f32.vlgmr.msra.gmra.mrb[22].mxu0 %vm3256_vm0, %v5300_v17 }
0x29d7   :  { %7166 = vmatpush3.bf16.msra.mxu0 %v7165_v13  ;;  %7022 = vmatprep.mubr.msk.f32.mxu0 %vm7484_vm1, %v7485_v35  ;;  %v6618_v13 = vld [vmem:[%s8568_s26] ss:$0 sm:$0xff] }
0x29d8   :  { %7167 = vmatprep.subr.bf16.mxu0 %v7483_v23 }
0x29db   :  { %7169 = vmatpush3.bf16.msra.mxu0 %v7168_v19 }
0x29dc   :  { %7170 = vmatprep.subr.bf16.mxu0 %v7483_v23 }
0x29de   :  { %7023 = vmatmul.mubr.msk.f32.vlgmr.msra.gmra.mrb[24].mxu0 %vm3256_vm0, %v8253_v44 }
0x29df   :  { %7033 = vmatprep.mubr.msk.f32.mxu0 %vm7484_vm1, %v7485_v35  ;;  %7172 = vmatpush3.bf16.msra.mxu0 %v7171_v52 }
0x29e0   :  { %7173 = vmatprep.subr.bf16.mxu0 %v7483_v23 }
0x29e3   :  { %7175 = vmatpush3.bf16.msra.mxu0 %v7174_v55 }
0x2aa9   :  { %v5369_v21 = vpop.f32.mrb[22].mxu0 }
0x2aaa   :  { %v5373_v63 = vadd.f32 %v5369_v21, %v8295_v22  ;;  %v7002_v24 = vpop.f32.mrb[23].mxu0 }
0x2aac   :  { %v6611_v25 = vmul.f32 -1.442695, %v5373_v63 }
0x2aae   :  { %7324 = vpow2.f32 %v6611_v25 }
0x2aaf   :  { %7326 = vtanh.f32 %v5373_v63 }
0x2ab8   :  { %v7325_v27 = vpop.eup %7324 }
0x2ab9   :  { %v5378_v28 = vadd.f32 1.0, %v7325_v27  ;;  %v7327_v29 = vpop.eup %7326 }
0x2abb   :  { %7328 = vrcp.f32 %v5378_v28 }
0x2ac5   :  { %v7329_v30 = vpop.eup %7328 }
0x2ac6   :  { %v5381_v59 = vsel %vm8128_vm4, %v7327_v29, %v7329_v30 }
0x2ac7   :  { %5384 = vrot.lane.b32.xlu0 %v5381_v59, %s7486_s10  ;;  %v5382_v35 = vmul.f32 %v5381_v59, %v5291_v7 }
0x2b39   :  { %v5385_v44 = vpop.permute.xlu0 %5384 }
0x2b3a   :  { %v5387_v31 = vmul.f32 %v5385_v44, %v5381_v59 }
0x2b3c   :  { %5389 = vrot.lane.b32.xlu1 %v5387_v31, %s7487_s24 }
0x2bae   :  { %v5390_v22 = vpop.permute.xlu1 %5389 }
0x2baf   :  { %v5392_v49 = vadd.f32 %v5390_v22, %v5382_v35 }
0x2bb1   :  { %7330 = vtanh.f32 %v5392_v49 }
0x2bbb   :  { %v7331_v32 = vpop.eup %7330 }
0x2bbc   :  { %5395 = vrot.lane.b32.xlu0 %v7331_v32, %s7486_s10 }
0x2c2e   :  { %v5396_v33 = vpop.permute.xlu0 %5395 }
0x2c2f   :  { %v5398_v36 = vmul.f32 %v5396_v33, %v5381_v59 }
0x2c31   :  { %5400 = vrot.lane.b32.xlu1 %v5398_v36, %s7487_s24 }
0x2ca3   :  { %v5401_v37 = vpop.permute.xlu1 %5400 }
0x2ca4   :  { %7012 = vmatmul.mubr.msk.f32.vlgmr.msra.gmra.mrb[26].mxu1 %vm3256_vm0, %v5401_v37 }
0x2d77   :  { %v5470_v38 = vpop.f32.mrb[26].mxu1 }
0x2d78   :  { %v5474_v39 = vadd.f32 %v5470_v38, %v8293_v20  ;;  %v7013_v40 = vpop.f32.mrb[27].mxu1 }
0x2d7a   :  { %v6613_v42 = vmul.f32 -1.442695, %v5474_v39 }
0x2d7c   :  { %7332 = vpow2.f32 %v6613_v42 }
0x2d7d   :  { %7334 = vtanh.f32 %v5474_v39 }
0x2d86   :  { %v7333_v43 = vpop.eup %7332 }
0x2d87   :  { %v5479_v45 = vadd.f32 1.0, %v7333_v43  ;;  %v7335_v34 = vpop.eup %7334 }
0x2d89   :  { %7336 = vrcp.f32 %v5479_v45 }
0x2d93   :  { %v7337_v46 = vpop.eup %7336 }
0x2d94   :  { %v5482_v47 = vsel %vm8128_vm4, %v7335_v34, %v7337_v46 }
0x2d95   :  { %5485 = vrot.lane.b32.xlu0 %v5482_v47, %s7486_s10  ;;  %v5483_v50 = vmul.f32 %v5482_v47, %v5392_v49 }
0x2e07   :  { %v5486_v57 = vpop.permute.xlu0 %5485 }
0x2e08   :  { %v5488_v48 = vmul.f32 %v5486_v57, %v5482_v47 }
0x2e0a   :  { %5490 = vrot.lane.b32.xlu1 %v5488_v48, %s7487_s24 }
0x2e7c   :  { %v5491_v20 = vpop.permute.xlu1 %5490 }
0x2e7d   :  { %v5493_v51 = vadd.f32 %v5491_v20, %v5483_v50 }
0x2e7f   :  { %7338 = vtanh.f32 %v5493_v51 }
0x2e89   :  { %v7339_v56 = vpop.eup %7338 }
0x2e8a   :  { %5496 = vrot.lane.b32.xlu0 %v7339_v56, %s7486_s10  ;;  %s7488_s10 = smov [#allocation17]  }
0x2efc   :  { %v5497_v58 = vpop.permute.xlu0 %5496 }
0x2efd   :  { %v5499_v60 = vmul.f32 %v5497_v58, %v5482_v47 }
0x2eff   :  { %5589 = vrot.lane.b32.xlu1 %v5499_v60, %s7487_s24  ;;  %s5702_s24 = sshll.u32 %s7488_s10, 4  ;;  %s5703_s24 = int_to_ptr.vmem [resolvable:$true] %s5702_s24 }
0x2f00   :  { %s7442_s3 = scalar_lea.vmem %s5703_s24, 128  ;;  %p7447_p8 = scmp.lt.s32.totalorder %s5703_s24, %s5703_s24 }
0x2f01   :  { %p7443_p7 = scmp.ne.s32.totalorder %s5703_s24, %s7442_s3  ;;  %p7448_p9 = scmp.lt.s32.totalorder %s7442_s3, %s7442_s3 }
0x2f03   :  { %p7449_p10 = por %p7448_p9, %p7447_p8 }
0x2f05   :  { %p7450_p11 = pnand %p7449_p10, %p7443_p7 }
0x2f71   :  { %v5590_v61 = vpop.permute.xlu1 %5589 }
0x2f72   :  { %7034 = vmatmul.mubr.msk.f32.vlgmr.msra.gmra.mrb[24].mxu0 %vm3256_vm0, %v5590_v61 }
0x3045   :  { %v5659_v1 = vpop.f32.mrb[24].mxu0 }
0x3046   :  { %v7184_v2 = vadd.f32 %v6615_v62, %v5659_v1  ;;  %v7035_v3 = vpop.f32.mrb[25].mxu0 }
0x3048   :  { %7340 = vtanh.f32 %v7184_v2 }
0x3052   :  { %v7341_v23 = vpop.eup %7340 }
0x3053   :  { %v5665_v4 = vsel %vm3256_vm0, %v7341_v23, 0.0 }
0x3054   :  { %5666 = vadd.xlane.f32.xlu0 %v5665_v4 }
0x30e1   :  { %v5667_v41 = vpop.xlane.xlu0 %5666 }
0x30e2   :  { %v5669_v6 = vmul.f32 0.03125, %v5667_v41 }
0x30e4   :  { %v5670_v0 = vsub.f32 %v7341_v23, %v5669_v6 }
0x30e6   :  { %v5671_v26 = vmul.f32 %v5670_v0, %v5670_v0 }
0x30e8   :  { %v5672_v16 = vsel %vm3256_vm0, %v5671_v26, 0.0 }
0x30e9   :  { %5673 = vadd.xlane.f32.xlu1 %v5672_v16 }
0x3176   :  { %v5674_v7 = vpop.xlane.xlu1 %5673 }
0x3177   :  { %v5675_v8 = vmul.f32 0.03125, %v5674_v7 }
0x3179   :  { %v5676_v9 = vadd.f32 1e-05, %v5675_v8 }
0x317b   :  { %7342 = vrsqrt.f32 %v5676_v9 }
0x3185   :  { %v7343_v10 = vpop.eup %7342 }
0x3186   :  { %v5678_v12 = vmul.f32 %v7343_v10, %v5670_v0 }
0x3188   :  { %v5686_v14 = vmul.f32 %v6617_v11, %v5678_v12 }
0x318a   :  { %v5694_v15 = vadd.f32 %v6618_v13, %v5686_v14 }
0x318c   :  { %5695 = vst.msk [vmem:[#allocation17] sm:$0xff] %vm3256_vm0, %v5694_v15 }
0x318d   :  { %7453 = shalt.err (!%p7450_p11)
}
0x318e   :  { %s8569_s6 = sld [smem:[#allocation139_spill]] }
0x3194   :  { %s7454_s2 = scalar_lea.hbm %s8569_s6, 128 }
0x3195   :  { %p7455_p12 = scmp.ne.s32.totalorder %s8569_s6, %s7454_s2  ;;  %p7458_p13 = scmp.lt.u32.totalorder %s7454_s2, %s8569_s6 }
0x3197   :  { %p7460_p0 = pnand %p7458_p13, %p7455_p12 }
0x3199   :  { %7463 = shalt.err (!%p7460_p0)
}
0x319a   :  { %5705 = dma.vmem_to_hbm [thread:$0]  %s5703_s24, 128, %s8569_s6, [#allocation9]  }
0x319b   :  { %7474 = dma.done.wait [#allocation9], 128  }
0x319c   :  { %7475 = vsyncadd [#allocation9], 4294967168 }
0x319d   :  { %5709 = vsyncpa [#allocation8], 1 }
0x319e   :  { %5710 = vsyncpa [#allocation13], 1 }
0x319f   :  { %5711 = vsyncpa [#allocation16], 1 }
0x31a0   :  { %5712 = vsyncpa [#allocation9], 1 }
0x31a1   :  { %5713 = vsyncpa [#allocation10], 1 }
0x31a2   :  { %5714 = vsyncmov [#allocation6] }
0x31a5   :  { %s5715_s7 = vpop.sfrf %5714 }
0x31a6   :  { %p6619_p1 = scmp.ne.s32.totalorder %s5715_s7, 0 }
0x31a8   :  { %5719 = shalt.err (%p6619_p1)  }

</bundles_post_ra>
